<compile_context>
chip_gen: v7x
topology: tpu7x:2x2x1
jax: 0.10.0
libtpu: 0.0.40
codegen_flags: <defaults>
</compile_context>

<pallas_src>
import jax
import jax.numpy as jnp
from jax.experimental import pallas as pl
from jax.experimental.pallas import tpu as pltpu

C_PAD = 8        # point channels padded 3 -> 8 (sublane-aligned contraction)
OUT_PAD = 128    # action||done output slab padded to one lane tile
FEAT = 1024      # PointNet global feature width
TOOL_FEAT = 16   # tool-state feature width


# ----------------------------------------------------------------------------
# Fused forward (single pallas_call)
# ----------------------------------------------------------------------------
def point_actor_cat_forward(x, s_tool, kp, action_dim, *, b_tile=None):
    """x: (B, N, 3) point cloud, s_tool: (B, dimtool) -> (action (B,A), done (B,1))."""
    B, N, C = x.shape
    dimtool = s_tool.shape[1]
    assert C <= C_PAD
    if b_tile is None:
        b_tile = B if (B <= 8 or B % 8 != 0) else 8
    assert B % b_tile == 0
    h1 = kp['a_w2'].shape[0]            # head hidden width after layer 1 (512)

    # Flatten points into a row slab (fills the MXU) and pad channels to C_PAD.
    x_flat = x.reshape(B * N, C)
    if C < C_PAD:
        x_flat = jnp.pad(x_flat, ((0, 0), (0, C_PAD - C)))

    f32, bf16 = jnp.float32, jnp.bfloat16

    def kernel(x_ref, st_ref,
               ew1, eb1, ew2, eb2, ew3, eb3,
               sw1, sb1, sw2, sb2, sw3, sb3,
               hw1p, hw1t, hb1,
               aw2, ab2, dw2, db2,
               hw3, hb3,
               out_ref):
        def lin(act, w_ref, b_ref):
            # bf16 x bf16 -> f32 accumulation on the MXU, f32 bias add.
            return jnp.dot(act.astype(bf16), w_ref[...],
                           preferred_element_type=f32) + b_ref[...]

        # --- PointNet encoder on a (b_tile*N, C_PAD) row slab (BN pre-folded) ---
        y = jnp.maximum(lin(x_ref[...], ew1, eb1), 0.0)            # (rows, 64)
        y = jnp.maximum(lin(y, ew2, eb2), 0.0)                     # (rows, 128)
        y = lin(y, ew3, eb3)                                       # (rows, 1024)
        # global max-pool over the point axis, per batch element
        h_dough = jnp.max(y.reshape(b_tile, N, FEAT), axis=1)      # (b_tile, 1024)

        # --- tool-state encoder ---
        t = jnp.maximum(lin(st_ref[...], sw1, sb1), 0.0)
        t = jnp.maximum(lin(t, sw2, sb2), 0.0)
        h_tool = lin(t, sw3, sb3)                                  # (b_tile, 16)

        # --- heads, layer 1 fused over {action, done}; the (1024+16)-d concat
        #     is realised as a split matmul (no odd-lane concat) ---
        z = (jnp.dot(h_dough.astype(bf16), hw1p[...], preferred_element_type=f32)
             + jnp.dot(h_tool.astype(bf16), hw1t[...], preferred_element_type=f32)
             + hb1[...])
        z = jnp.maximum(z, 0.0)                                    # (b_tile, 1024)
        a2 = jnp.maximum(lin(z[:, :h1], aw2, ab2), 0.0)            # (b_tile, 256)
        d2 = jnp.maximum(lin(z[:, h1:], dw2, db2), 0.0)            # (b_tile, 256)

        # --- layer 3: block-diagonal packed weight -> lane-dense (b_tile, 128) slab ---
        ad = jnp.concatenate([a2, d2], axis=-1)                    # (b_tile, 512)
        out_ref[...] = lin(ad, hw3, hb3) / 5.0

    def const_spec(shape):
        n = len(shape)
        return pl.BlockSpec(shape, lambda i, _n=n: (0,) * _n)      # replicated weight

    wnames = ['e_w1', 'e_b1', 'e_w2', 'e_b2', 'e_w3', 'e_b3',
              'st_w1', 'st_b1', 'st_w2', 'st_b2', 'st_w3', 'st_b3',
              'h_w1p', 'h_w1t', 'h_b1',
              'a_w2', 'a_b2', 'd_w2', 'd_b2',
              'h_w3', 'h_b3']
    wargs = [kp[name] for name in wnames]

    out = pl.pallas_call(
        kernel,
        out_shape=jax.ShapeDtypeStruct((B, OUT_PAD), f32),
        grid=(B // b_tile,),
        in_specs=[pl.BlockSpec((b_tile * N, C_PAD), lambda i: (i, 0)),
                  pl.BlockSpec((b_tile, dimtool), lambda i: (i, 0))]
                 + [const_spec(a.shape) for a in wargs],
        out_specs=pl.BlockSpec((b_tile, OUT_PAD), lambda i: (i, 0)),
        compiler_params=pltpu.CompilerParams(
            dimension_semantics=("parallel",)),
    )(x_flat, s_tool, *wargs)

    action = out[:, :action_dim]
    done = out[:, action_dim:action_dim + 1]
    return action, done


# ----------------------------------------------------------------------------
# Parameter construction (f32 masters) and kernel-facing packing (bf16)
# ----------------------------------------------------------------------------
def _fold_bn(w, b, gamma, beta, mean, var, eps=1e-5):
    scale = gamma / jnp.sqrt(var + eps)
    return w * scale[None, :], (b - mean) * scale + beta


def init_params(key, action_dim, dimtool=8, hidden=64):
    keys = jax.random.split(key, 64)
    it = iter(keys)

    def linear(fi, fo):
        bound = 1.0 / (fi ** 0.5)
        w = jax.random.uniform(next(it), (fi, fo), jnp.float32, -bound, bound)
        b = jax.random.uniform(next(it), (fo,), jnp.float32, -bound, bound)
        return w, b

    def bn(f):
        gamma = 1.0 + 0.1 * jax.random.normal(next(it), (f,), jnp.float32)
        beta = 0.1 * jax.random.normal(next(it), (f,), jnp.float32)
        mean = 0.1 * jax.random.normal(next(it), (f,), jnp.float32)
        var = jnp.abs(1.0 + 0.1 * jax.random.normal(next(it), (f,), jnp.float32))
        return gamma, beta, mean, var

    p = {}
    # Encoder: Conv1d(3,64,1)+BN, Conv1d(64,128,1)+BN, Conv1d(128,1024,1)+BN (eval mode, folded)
    for i, (fi, fo) in enumerate([(3, 64), (64, 128), (128, FEAT)], 1):
        w, b = linear(fi, fo)
        w, b = _fold_bn(w, b, *bn(fo))
        p[f'enc_w{i}'] = w
        p[f'enc_b{i}'] = b.reshape(1, fo)
    # state_encoder: Linear(dimtool,hidden) ReLU Linear(hidden,hidden) ReLU Linear(hidden,16)
    for i, (fi, fo) in enumerate([(dimtool, hidden), (hidden, hidden), (hidden, TOOL_FEAT)], 1):
        w, b = linear(fi, fo)
        p[f'st_w{i}'] = w
        p[f'st_b{i}'] = b.reshape(1, fo)
    # heads: mlp (1040->512->256->A) and done_mlp (1040->512->256->1)
    for name, dims in [('a', [(FEAT + TOOL_FEAT, 512), (512, 256), (256, action_dim)]),
                       ('d', [(FEAT + TOOL_FEAT, 512), (512, 256), (256, 1)])]:
        for i, (fi, fo) in enumerate(dims, 1):
            w, b = linear(fi, fo)
            p[f'{name}_w{i}'] = w
            p[f'{name}_b{i}'] = b.reshape(1, fo)
    return p


def pack_params(p, action_dim):
    """f32 master params -> kernel-facing packed params (bf16 weights, f32 biases)."""
    bf = lambda a: a.astype(jnp.bfloat16)
    k = {}
    # Encoder (layer-1 weight padded to C_PAD input channels).
    w1 = jnp.zeros((C_PAD, p['enc_w1'].shape[1]), jnp.float32)
    w1 = w1.at[:p['enc_w1'].shape[0]].set(p['enc_w1'])
    k['e_w1'], k['e_b1'] = bf(w1), p['enc_b1']
    k['e_w2'], k['e_b2'] = bf(p['enc_w2']), p['enc_b2']
    k['e_w3'], k['e_b3'] = bf(p['enc_w3']), p['enc_b3']
    # Tool-state encoder.
    for i in (1, 2, 3):
        k[f'st_w{i}'], k[f'st_b{i}'] = bf(p[f'st_w{i}']), p[f'st_b{i}']
    # Heads layer 1: fuse action/done along the output axis, split the 1040-d input
    # into point-feature (1024) and tool-feature (16) pieces.
    w1c = jnp.concatenate([p['a_w1'], p['d_w1']], axis=1)          # (1040, 1024)
    k['h_w1p'] = bf(w1c[:FEAT])                                    # (1024, 1024)
    k['h_w1t'] = bf(w1c[FEAT:])                                    # (16, 1024)
    k['h_b1'] = jnp.concatenate([p['a_b1'], p['d_b1']], axis=1)    # (1, 1024)
    # Heads layer 2 (separate; block-diagonal fusion would double MXU work).
    k['a_w2'], k['a_b2'] = bf(p['a_w2']), p['a_b2']
    k['d_w2'], k['d_b2'] = bf(p['d_w2']), p['d_b2']
    # Heads layer 3: block-diagonal, padded to a lane-dense 128-wide output slab.
    n2 = p['a_w2'].shape[1]                                        # 256
    w3 = jnp.zeros((2 * n2, OUT_PAD), jnp.float32)
    w3 = w3.at[:n2, :action_dim].set(p['a_w3'])
    w3 = w3.at[n2:, action_dim:action_dim + 1].set(p['d_w3'])
    b3 = jnp.zeros((1, OUT_PAD), jnp.float32)
    b3 = b3.at[:, :action_dim].set(p['a_b3'])
    b3 = b3.at[:, action_dim:action_dim + 1].set(p['d_b3'])
    k['h_w3'], k['h_b3'] = bf(w3), b3
    return k


# ----------------------------------------------------------------------------
# Module-structured reference (unfused heads, explicit concat, /5 at the end).
# Uses the same mixed-precision policy as the kernel (bf16 matmul inputs,
# f32 accumulation), so tolerances can stay tight.
# ----------------------------------------------------------------------------
def reference_forward(x, s_tool, p):
    def lin(a, w, b):
        return jnp.dot(a.astype(jnp.bfloat16), w.astype(jnp.bfloat16),
                       preferred_element_type=jnp.float32) + b

    y = jnp.maximum(lin(x, p['enc_w1'], p['enc_b1']), 0.0)
    y = jnp.maximum(lin(y, p['enc_w2'], p['enc_b2']), 0.0)
    y = lin(y, p['enc_w3'], p['enc_b3'])
    h_dough = jnp.max(y, axis=1)                                   # (B, 1024)

    t = jnp.maximum(lin(s_tool, p['st_w1'], p['st_b1']), 0.0)
    t = jnp.maximum(lin(t, p['st_w2'], p['st_b2']), 0.0)
    h_tool = lin(t, p['st_w3'], p['st_b3'])                        # (B, 16)

    h = jnp.concatenate([h_dough, h_tool], axis=-1)                # (B, 1040)

    def head(pre):
        z = jnp.maximum(lin(h, p[f'{pre}_w1'], p[f'{pre}_b1']), 0.0)
        z = jnp.maximum(lin(z, p[f'{pre}_w2'], p[f'{pre}_b2']), 0.0)
        return lin(z, p[f'{pre}_w3'], p[f'{pre}_b3'])

    return head('a') / 5.0, head('d') / 5.0


# ----------------------------------------------------------------------------
if __name__ == "__main__":
    key = jax.random.PRNGKey(0)
    kx, ks, kparam = jax.random.split(key, 3)

    B, N, ACTION_DIM = 2, 16, 8
    DIMTOOL, HIDDEN = 8, 64           # args.dimtool, args.actor_latent_dim

    x = jax.random.normal(kx, (B, N, 3), jnp.float32)              # (B, N, xyz)
    s_tool = jax.random.normal(ks, (B, DIMTOOL), jnp.float32)      # tool state

    params = init_params(kparam, ACTION_DIM, dimtool=DIMTOOL, hidden=HIDDEN)
    packed = pack_params(params, ACTION_DIM)

    action, done = point_actor_cat_forward(x, s_tool, packed, ACTION_DIM)
    jax.block_until_ready((action, done))

    a_ref, d_ref = reference_forward(x, s_tool, params)
    assert action.shape == (B, ACTION_DIM) and done.shape == (B, 1)
    assert jnp.allclose(action, a_ref, atol=1e-3, rtol=1e-3), \
        float(jnp.max(jnp.abs(action - a_ref)))
    assert jnp.allclose(done, d_ref, atol=1e-3, rtol=1e-3), \
        float(jnp.max(jnp.abs(done - d_ref)))

    print("KERNEL_OK")
</pallas_src>

<mosaic_0001>
module attributes {stable_mosaic.version = 11 : i64} {
  func.func @kernel(%arg0: i32, %arg1: memref<32x8xf32, #tpu.memory_space<vmem>>, %arg2: memref<2x8xf32, #tpu.memory_space<vmem>>, %arg3: memref<8x64xbf16, #tpu.memory_space<vmem>>, %arg4: memref<1x64xf32, #tpu.memory_space<vmem>>, %arg5: memref<64x128xbf16, #tpu.memory_space<vmem>>, %arg6: memref<1x128xf32, #tpu.memory_space<vmem>>, %arg7: memref<128x1024xbf16, #tpu.memory_space<vmem>>, %arg8: memref<1x1024xf32, #tpu.memory_space<vmem>>, %arg9: memref<8x64xbf16, #tpu.memory_space<vmem>>, %arg10: memref<1x64xf32, #tpu.memory_space<vmem>>, %arg11: memref<64x64xbf16, #tpu.memory_space<vmem>>, %arg12: memref<1x64xf32, #tpu.memory_space<vmem>>, %arg13: memref<64x16xbf16, #tpu.memory_space<vmem>>, %arg14: memref<1x16xf32, #tpu.memory_space<vmem>>, %arg15: memref<1024x1024xbf16, #tpu.memory_space<vmem>>, %arg16: memref<16x1024xbf16, #tpu.memory_space<vmem>>, %arg17: memref<1x1024xf32, #tpu.memory_space<vmem>>, %arg18: memref<512x256xbf16, #tpu.memory_space<vmem>>, %arg19: memref<1x256xf32, #tpu.memory_space<vmem>>, %arg20: memref<512x256xbf16, #tpu.memory_space<vmem>>, %arg21: memref<1x256xf32, #tpu.memory_space<vmem>>, %arg22: memref<512x128xbf16, #tpu.memory_space<vmem>>, %arg23: memref<1x128xf32, #tpu.memory_space<vmem>>, %arg24: memref<2x128xf32, #tpu.memory_space<vmem>>) attributes {dimension_semantics = [#tpu.dimension_semantics<parallel>], iteration_bounds = array<i64: 1>, scalar_prefetch = 0 : i64, scratch_operands = 0 : i64, tpu.core_type = #tpu.core_type<tc>, window_params = [{transform_indices = @transform_0, window_bounds = array<i64: 32, 8>}, {transform_indices = @transform_1, window_bounds = array<i64: 2, 8>}, {pipeline_mode = #tpu.pipeline_mode<synchronous>, transform_indices = @transform_2, window_bounds = array<i64: 8, 64>}, {pipeline_mode = #tpu.pipeline_mode<synchronous>, transform_indices = @transform_3, window_bounds = array<i64: 1, 64>}, {pipeline_mode = #tpu.pipeline_mode<synchronous>, transform_indices = @transform_4, window_bounds = array<i64: 64, 128>}, {pipeline_mode = #tpu.pipeline_mode<synchronous>, transform_indices = @transform_5, window_bounds = array<i64: 1, 128>}, {pipeline_mode = #tpu.pipeline_mode<synchronous>, transform_indices = @transform_6, window_bounds = array<i64: 128, 1024>}, {pipeline_mode = #tpu.pipeline_mode<synchronous>, transform_indices = @transform_7, window_bounds = array<i64: 1, 1024>}, {pipeline_mode = #tpu.pipeline_mode<synchronous>, transform_indices = @transform_8, window_bounds = array<i64: 8, 64>}, {pipeline_mode = #tpu.pipeline_mode<synchronous>, transform_indices = @transform_9, window_bounds = array<i64: 1, 64>}, {pipeline_mode = #tpu.pipeline_mode<synchronous>, transform_indices = @transform_10, window_bounds = array<i64: 64, 64>}, {pipeline_mode = #tpu.pipeline_mode<synchronous>, transform_indices = @transform_11, window_bounds = array<i64: 1, 64>}, {pipeline_mode = #tpu.pipeline_mode<synchronous>, transform_indices = @transform_12, window_bounds = array<i64: 64, 16>}, {pipeline_mode = #tpu.pipeline_mode<synchronous>, transform_indices = @transform_13, window_bounds = array<i64: 1, 16>}, {pipeline_mode = #tpu.pipeline_mode<synchronous>, transform_indices = @transform_14, window_bounds = array<i64: 1024, 1024>}, {pipeline_mode = #tpu.pipeline_mode<synchronous>, transform_indices = @transform_15, window_bounds = array<i64: 16, 1024>}, {pipeline_mode = #tpu.pipeline_mode<synchronous>, transform_indices = @transform_16, window_bounds = array<i64: 1, 1024>}, {pipeline_mode = #tpu.pipeline_mode<synchronous>, transform_indices = @transform_17, window_bounds = array<i64: 512, 256>}, {pipeline_mode = #tpu.pipeline_mode<synchronous>, transform_indices = @transform_18, window_bounds = array<i64: 1, 256>}, {pipeline_mode = #tpu.pipeline_mode<synchronous>, transform_indices = @transform_19, window_bounds = array<i64: 512, 256>}, {pipeline_mode = #tpu.pipeline_mode<synchronous>, transform_indices = @transform_20, window_bounds = array<i64: 1, 256>}, {pipeline_mode = #tpu.pipeline_mode<synchronous>, transform_indices = @transform_21, window_bounds = array<i64: 512, 128>}, {pipeline_mode = #tpu.pipeline_mode<synchronous>, transform_indices = @transform_22, window_bounds = array<i64: 1, 128>}, {transform_indices = @transform_23, window_bounds = array<i64: 2, 128>}]} {
    %c0 = arith.constant 0 : index
    %c0_0 = arith.constant 0 : index
    %0 = vector.load %arg1[%c0, %c0_0] : memref<32x8xf32, #tpu.memory_space<vmem>>, vector<32x8xf32>
    %1 = arith.truncf %0 : vector<32x8xf32> to vector<32x8xbf16>
    %c0_1 = arith.constant 0 : index
    %c0_2 = arith.constant 0 : index
    %2 = vector.load %arg3[%c0_1, %c0_2] : memref<8x64xbf16, #tpu.memory_space<vmem>>, vector<8x64xbf16>
    %cst = arith.constant dense<0.000000e+00> : vector<32x64xf32>
    %3 = tpu.matmul %1, %2, %cst {dimension_numbers = #tpu.dot_dimension_numbers<[1], [0], [0], [1], [0, 0, 1, 1], [], []>} : vector<32x8xbf16>, vector<8x64xbf16>, vector<32x64xf32> -> vector<32x64xf32>
    %c0_3 = arith.constant 0 : index
    %c0_4 = arith.constant 0 : index
    %4 = vector.load %arg4[%c0_3, %c0_4] : memref<1x64xf32, #tpu.memory_space<vmem>>, vector<1x64xf32>
    %5 = vector.broadcast %4 : vector<1x64xf32> to vector<32x64xf32>
    %6 = arith.addf %3, %5 : vector<32x64xf32>
    %cst_5 = arith.constant 0.000000e+00 : f32
    %7 = vector.broadcast %cst_5 : f32 to vector<32x64xf32>
    %8 = arith.maximumf %6, %7 : vector<32x64xf32>
    %9 = arith.truncf %8 : vector<32x64xf32> to vector<32x64xbf16>
    %c0_6 = arith.constant 0 : index
    %c0_7 = arith.constant 0 : index
    %10 = vector.load %arg5[%c0_6, %c0_7] : memref<64x128xbf16, #tpu.memory_space<vmem>>, vector<64x128xbf16>
    %cst_8 = arith.constant dense<0.000000e+00> : vector<32x128xf32>
    %11 = tpu.matmul %9, %10, %cst_8 {dimension_numbers = #tpu.dot_dimension_numbers<[1], [0], [0], [1], [0, 0, 1, 1], [], []>} : vector<32x64xbf16>, vector<64x128xbf16>, vector<32x128xf32> -> vector<32x128xf32>
    %c0_9 = arith.constant 0 : index
    %c0_10 = arith.constant 0 : index
    %12 = vector.load %arg6[%c0_9, %c0_10] : memref<1x128xf32, #tpu.memory_space<vmem>>, vector<1x128xf32>
    %13 = vector.broadcast %12 : vector<1x128xf32> to vector<32x128xf32>
    %14 = arith.addf %11, %13 : vector<32x128xf32>
    %cst_11 = arith.constant 0.000000e+00 : f32
    %15 = vector.broadcast %cst_11 : f32 to vector<32x128xf32>
    %16 = arith.maximumf %14, %15 : vector<32x128xf32>
    %17 = arith.truncf %16 : vector<32x128xf32> to vector<32x128xbf16>
    %c0_12 = arith.constant 0 : index
    %c0_13 = arith.constant 0 : index
    %18 = vector.load %arg7[%c0_12, %c0_13] : memref<128x1024xbf16, #tpu.memory_space<vmem>>, vector<128x1024xbf16>
    %cst_14 = arith.constant dense<0.000000e+00> : vector<32x1024xf32>
    %19 = tpu.matmul %17, %18, %cst_14 {dimension_numbers = #tpu.dot_dimension_numbers<[1], [0], [0], [1], [0, 0, 1, 1], [], []>} : vector<32x128xbf16>, vector<128x1024xbf16>, vector<32x1024xf32> -> vector<32x1024xf32>
    %c0_15 = arith.constant 0 : index
    %c0_16 = arith.constant 0 : index
    %20 = vector.load %arg8[%c0_15, %c0_16] : memref<1x1024xf32, #tpu.memory_space<vmem>>, vector<1x1024xf32>
    %21 = vector.broadcast %20 : vector<1x1024xf32> to vector<32x1024xf32>
    %22 = arith.addf %19, %21 : vector<32x1024xf32>
    %23 = vector.shape_cast %22 : vector<32x1024xf32> to vector<2x16x1024xf32>
    %cst_17 = arith.constant dense<0xFF800000> : vector<2x1024xf32>
    %24 = vector.multi_reduction <maximumf>, %23, %cst_17 [1] : vector<2x16x1024xf32> to vector<2x1024xf32>
    %c0_18 = arith.constant 0 : index
    %c0_19 = arith.constant 0 : index
    %25 = vector.load %arg2[%c0_18, %c0_19] : memref<2x8xf32, #tpu.memory_space<vmem>>, vector<2x8xf32>
    %26 = arith.truncf %25 : vector<2x8xf32> to vector<2x8xbf16>
    %c0_20 = arith.constant 0 : index
    %c0_21 = arith.constant 0 : index
    %27 = vector.load %arg9[%c0_20, %c0_21] : memref<8x64xbf16, #tpu.memory_space<vmem>>, vector<8x64xbf16>
    %cst_22 = arith.constant dense<0.000000e+00> : vector<2x64xf32>
    %28 = tpu.matmul %26, %27, %cst_22 {dimension_numbers = #tpu.dot_dimension_numbers<[1], [0], [0], [1], [0, 0, 1, 1], [], []>} : vector<2x8xbf16>, vector<8x64xbf16>, vector<2x64xf32> -> vector<2x64xf32>
    %c0_23 = arith.constant 0 : index
    %c0_24 = arith.constant 0 : index
    %29 = vector.load %arg10[%c0_23, %c0_24] : memref<1x64xf32, #tpu.memory_space<vmem>>, vector<1x64xf32>
    %30 = vector.broadcast %29 : vector<1x64xf32> to vector<2x64xf32>
    %31 = arith.addf %28, %30 : vector<2x64xf32>
    %cst_25 = arith.constant 0.000000e+00 : f32
    %32 = vector.broadcast %cst_25 : f32 to vector<2x64xf32>
    %33 = arith.maximumf %31, %32 : vector<2x64xf32>
    %34 = arith.truncf %33 : vector<2x64xf32> to vector<2x64xbf16>
    %c0_26 = arith.constant 0 : index
    %c0_27 = arith.constant 0 : index
    %35 = vector.load %arg11[%c0_26, %c0_27] : memref<64x64xbf16, #tpu.memory_space<vmem>>, vector<64x64xbf16>
    %cst_28 = arith.constant dense<0.000000e+00> : vector<2x64xf32>
    %36 = tpu.matmul %34, %35, %cst_28 {dimension_numbers = #tpu.dot_dimension_numbers<[1], [0], [0], [1], [0, 0, 1, 1], [], []>} : vector<2x64xbf16>, vector<64x64xbf16>, vector<2x64xf32> -> vector<2x64xf32>
    %c0_29 = arith.constant 0 : index
    %c0_30 = arith.constant 0 : index
    %37 = vector.load %arg12[%c0_29, %c0_30] : memref<1x64xf32, #tpu.memory_space<vmem>>, vector<1x64xf32>
    %38 = vector.broadcast %37 : vector<1x64xf32> to vector<2x64xf32>
    %39 = arith.addf %36, %38 : vector<2x64xf32>
    %cst_31 = arith.constant 0.000000e+00 : f32
    %40 = vector.broadcast %cst_31 : f32 to vector<2x64xf32>
    %41 = arith.maximumf %39, %40 : vector<2x64xf32>
    %42 = arith.truncf %41 : vector<2x64xf32> to vector<2x64xbf16>
    %c0_32 = arith.constant 0 : index
    %c0_33 = arith.constant 0 : index
    %43 = vector.load %arg13[%c0_32, %c0_33] : memref<64x16xbf16, #tpu.memory_space<vmem>>, vector<64x16xbf16>
    %cst_34 = arith.constant dense<0.000000e+00> : vector<2x16xf32>
    %44 = tpu.matmul %42, %43, %cst_34 {dimension_numbers = #tpu.dot_dimension_numbers<[1], [0], [0], [1], [0, 0, 1, 1], [], []>} : vector<2x64xbf16>, vector<64x16xbf16>, vector<2x16xf32> -> vector<2x16xf32>
    %c0_35 = arith.constant 0 : index
    %c0_36 = arith.constant 0 : index
    %45 = vector.load %arg14[%c0_35, %c0_36] : memref<1x16xf32, #tpu.memory_space<vmem>>, vector<1x16xf32>
    %46 = vector.broadcast %45 : vector<1x16xf32> to vector<2x16xf32>
    %47 = arith.addf %44, %46 : vector<2x16xf32>
    %48 = arith.truncf %24 : vector<2x1024xf32> to vector<2x1024xbf16>
    %c0_37 = arith.constant 0 : index
    %c0_38 = arith.constant 0 : index
    %49 = vector.load %arg15[%c0_37, %c0_38] : memref<1024x1024xbf16, #tpu.memory_space<vmem>>, vector<1024x1024xbf16>
    %cst_39 = arith.constant dense<0.000000e+00> : vector<2x1024xf32>
    %50 = tpu.matmul %48, %49, %cst_39 {dimension_numbers = #tpu.dot_dimension_numbers<[1], [0], [0], [1], [0, 0, 1, 1], [], []>} : vector<2x1024xbf16>, vector<1024x1024xbf16>, vector<2x1024xf32> -> vector<2x1024xf32>
    %51 = arith.truncf %47 : vector<2x16xf32> to vector<2x16xbf16>
    %c0_40 = arith.constant 0 : index
    %c0_41 = arith.constant 0 : index
    %52 = vector.load %arg16[%c0_40, %c0_41] : memref<16x1024xbf16, #tpu.memory_space<vmem>>, vector<16x1024xbf16>
    %cst_42 = arith.constant dense<0.000000e+00> : vector<2x1024xf32>
    %53 = tpu.matmul %51, %52, %cst_42 {dimension_numbers = #tpu.dot_dimension_numbers<[1], [0], [0], [1], [0, 0, 1, 1], [], []>} : vector<2x16xbf16>, vector<16x1024xbf16>, vector<2x1024xf32> -> vector<2x1024xf32>
    %54 = arith.addf %50, %53 : vector<2x1024xf32>
    %c0_43 = arith.constant 0 : index
    %c0_44 = arith.constant 0 : index
    %55 = vector.load %arg17[%c0_43, %c0_44] : memref<1x1024xf32, #tpu.memory_space<vmem>>, vector<1x1024xf32>
    %56 = vector.broadcast %55 : vector<1x1024xf32> to vector<2x1024xf32>
    %57 = arith.addf %54, %56 : vector<2x1024xf32>
    %cst_45 = arith.constant 0.000000e+00 : f32
    %58 = vector.broadcast %cst_45 : f32 to vector<2x1024xf32>
    %59 = arith.maximumf %57, %58 : vector<2x1024xf32>
    %60 = vector.extract_strided_slice %59 {offsets = [0, 0], sizes = [2, 512], strides = [1, 1]} : vector<2x1024xf32> to vector<2x512xf32>
    %61 = arith.truncf %60 : vector<2x512xf32> to vector<2x512xbf16>
    %c0_46 = arith.constant 0 : index
    %c0_47 = arith.constant 0 : index
    %62 = vector.load %arg18[%c0_46, %c0_47] : memref<512x256xbf16, #tpu.memory_space<vmem>>, vector<512x256xbf16>
    %cst_48 = arith.constant dense<0.000000e+00> : vector<2x256xf32>
    %63 = tpu.matmul %61, %62, %cst_48 {dimension_numbers = #tpu.dot_dimension_numbers<[1], [0], [0], [1], [0, 0, 1, 1], [], []>} : vector<2x512xbf16>, vector<512x256xbf16>, vector<2x256xf32> -> vector<2x256xf32>
    %c0_49 = arith.constant 0 : index
    %c0_50 = arith.constant 0 : index
    %64 = vector.load %arg19[%c0_49, %c0_50] : memref<1x256xf32, #tpu.memory_space<vmem>>, vector<1x256xf32>
    %65 = vector.broadcast %64 : vector<1x256xf32> to vector<2x256xf32>
    %66 = arith.addf %63, %65 : vector<2x256xf32>
    %cst_51 = arith.constant 0.000000e+00 : f32
    %67 = vector.broadcast %cst_51 : f32 to vector<2x256xf32>
    %68 = arith.maximumf %66, %67 : vector<2x256xf32>
    %69 = vector.extract_strided_slice %59 {offsets = [0, 512], sizes = [2, 512], strides = [1, 1]} : vector<2x1024xf32> to vector<2x512xf32>
    %70 = arith.truncf %69 : vector<2x512xf32> to vector<2x512xbf16>
    %c0_52 = arith.constant 0 : index
    %c0_53 = arith.constant 0 : index
    %71 = vector.load %arg20[%c0_52, %c0_53] : memref<512x256xbf16, #tpu.memory_space<vmem>>, vector<512x256xbf16>
    %cst_54 = arith.constant dense<0.000000e+00> : vector<2x256xf32>
    %72 = tpu.matmul %70, %71, %cst_54 {dimension_numbers = #tpu.dot_dimension_numbers<[1], [0], [0], [1], [0, 0, 1, 1], [], []>} : vector<2x512xbf16>, vector<512x256xbf16>, vector<2x256xf32> -> vector<2x256xf32>
    %c0_55 = arith.constant 0 : index
    %c0_56 = arith.constant 0 : index
    %73 = vector.load %arg21[%c0_55, %c0_56] : memref<1x256xf32, #tpu.memory_space<vmem>>, vector<1x256xf32>
    %74 = vector.broadcast %73 : vector<1x256xf32> to vector<2x256xf32>
    %75 = arith.addf %72, %74 : vector<2x256xf32>
    %cst_57 = arith.constant 0.000000e+00 : f32
    %76 = vector.broadcast %cst_57 : f32 to vector<2x256xf32>
    %77 = arith.maximumf %75, %76 : vector<2x256xf32>
    %78 = tpu.concatenate %68, %77 in 1 : vector<2x256xf32>, vector<2x256xf32> -> vector<2x512xf32>
    %79 = arith.truncf %78 : vector<2x512xf32> to vector<2x512xbf16>
    %c0_58 = arith.constant 0 : index
    %c0_59 = arith.constant 0 : index
    %80 = vector.load %arg22[%c0_58, %c0_59] : memref<512x128xbf16, #tpu.memory_space<vmem>>, vector<512x128xbf16>
    %cst_60 = arith.constant dense<0.000000e+00> : vector<2x128xf32>
    %81 = tpu.matmul %79, %80, %cst_60 {dimension_numbers = #tpu.dot_dimension_numbers<[1], [0], [0], [1], [0, 0, 1, 1], [], []>} : vector<2x512xbf16>, vector<512x128xbf16>, vector<2x128xf32> -> vector<2x128xf32>
    %c0_61 = arith.constant 0 : index
    %c0_62 = arith.constant 0 : index
    %82 = vector.load %arg23[%c0_61, %c0_62] : memref<1x128xf32, #tpu.memory_space<vmem>>, vector<1x128xf32>
    %83 = vector.broadcast %82 : vector<1x128xf32> to vector<2x128xf32>
    %84 = arith.addf %81, %83 : vector<2x128xf32>
    %cst_63 = arith.constant 5.000000e+00 : f32
    %85 = vector.broadcast %cst_63 : f32 to vector<2x128xf32>
    %86 = arith.divf %84, %85 : vector<2x128xf32>
    %c0_64 = arith.constant 0 : index
    %c0_65 = arith.constant 0 : index
    %87 = vector.load %arg24[%c0_64, %c0_65] : memref<2x128xf32, #tpu.memory_space<vmem>>, vector<2x128xf32>
    tpu.vector_store %arg24[%c0_64, %c0_65], %86 {strides = array<i32>} : memref<2x128xf32, #tpu.memory_space<vmem>>, vector<2x128xf32>,
    return
  }
  func.func @transform_0(%arg0: i32) -> (i32, i32) {
    %c0_i32 = arith.constant 0 : i32
    %c0_i32_0 = arith.constant 0 : i32
    return %arg0, %c0_i32 : i32, i32
  }
  func.func @transform_1(%arg0: i32) -> (i32, i32) {
    %c0_i32 = arith.constant 0 : i32
    %c0_i32_0 = arith.constant 0 : i32
    return %arg0, %c0_i32 : i32, i32
  }
  func.func @transform_2(%arg0: i32) -> (i32, i32) {
    %c0_i32 = arith.constant 0 : i32
    %c0_i32_0 = arith.constant 0 : i32
    %c0_i32_1 = arith.constant 0 : i32
    return %c0_i32, %c0_i32_0 : i32, i32
  }
  func.func @transform_3(%arg0: i32) -> (i32, i32) {
    %c0_i32 = arith.constant 0 : i32
    %c0_i32_0 = arith.constant 0 : i32
    %c0_i32_1 = arith.constant 0 : i32
    return %c0_i32, %c0_i32_0 : i32, i32
  }
  func.func @transform_4(%arg0: i32) -> (i32, i32) {
    %c0_i32 = arith.constant 0 : i32
    %c0_i32_0 = arith.constant 0 : i32
    %c0_i32_1 = arith.constant 0 : i32
    return %c0_i32, %c0_i32_0 : i32, i32
  }
  func.func @transform_5(%arg0: i32) -> (i32, i32) {
    %c0_i32 = arith.constant 0 : i32
    %c0_i32_0 = arith.constant 0 : i32
    %c0_i32_1 = arith.constant 0 : i32
    return %c0_i32, %c0_i32_0 : i32, i32
  }
  func.func @transform_6(%arg0: i32) -> (i32, i32) {
    %c0_i32 = arith.constant 0 : i32
    %c0_i32_0 = arith.constant 0 : i32
    %c0_i32_1 = arith.constant 0 : i32
    return %c0_i32, %c0_i32_0 : i32, i32
  }
  func.func @transform_7(%arg0: i32) -> (i32, i32) {
    %c0_i32 = arith.constant 0 : i32
    %c0_i32_0 = arith.constant 0 : i32
    %c0_i32_1 = arith.constant 0 : i32
    return %c0_i32, %c0_i32_0 : i32, i32
  }
  func.func @transform_8(%arg0: i32) -> (i32, i32) {
    %c0_i32 = arith.constant 0 : i32
    %c0_i32_0 = arith.constant 0 : i32
    %c0_i32_1 = arith.constant 0 : i32
    return %c0_i32, %c0_i32_0 : i32, i32
  }
  func.func @transform_9(%arg0: i32) -> (i32, i32) {
    %c0_i32 = arith.constant 0 : i32
    %c0_i32_0 = arith.constant 0 : i32
    %c0_i32_1 = arith.constant 0 : i32
    return %c0_i32, %c0_i32_0 : i32, i32
  }
  func.func @transform_10(%arg0: i32) -> (i32, i32) {
    %c0_i32 = arith.constant 0 : i32
    %c0_i32_0 = arith.constant 0 : i32
    %c0_i32_1 = arith.constant 0 : i32
    return %c0_i32, %c0_i32_0 : i32, i32
  }
  func.func @transform_11(%arg0: i32) -> (i32, i32) {
    %c0_i32 = arith.constant 0 : i32
    %c0_i32_0 = arith.constant 0 : i32
    %c0_i32_1 = arith.constant 0 : i32
    return %c0_i32, %c0_i32_0 : i32, i32
  }
  func.func @transform_12(%arg0: i32) -> (i32, i32) {
    %c0_i32 = arith.constant 0 : i32
    %c0_i32_0 = arith.constant 0 : i32
    %c0_i32_1 = arith.constant 0 : i32
    return %c0_i32, %c0_i32_0 : i32, i32
  }
  func.func @transform_13(%arg0: i32) -> (i32, i32) {
    %c0_i32 = arith.constant 0 : i32
    %c0_i32_0 = arith.constant 0 : i32
    %c0_i32_1 = arith.constant 0 : i32
    return %c0_i32, %c0_i32_0 : i32, i32
  }
  func.func @transform_14(%arg0: i32) -> (i32, i32) {
    %c0_i32 = arith.constant 0 : i32
    %c0_i32_0 = arith.constant 0 : i32
    %c0_i32_1 = arith.constant 0 : i32
    return %c0_i32, %c0_i32_0 : i32, i32
  }
  func.func @transform_15(%arg0: i32) -> (i32, i32) {
    %c0_i32 = arith.constant 0 : i32
    %c0_i32_0 = arith.constant 0 : i32
    %c0_i32_1 = arith.constant 0 : i32
    return %c0_i32, %c0_i32_0 : i32, i32
  }
  func.func @transform_16(%arg0: i32) -> (i32, i32) {
    %c0_i32 = arith.constant 0 : i32
    %c0_i32_0 = arith.constant 0 : i32
    %c0_i32_1 = arith.constant 0 : i32
    return %c0_i32, %c0_i32_0 : i32, i32
  }
  func.func @transform_17(%arg0: i32) -> (i32, i32) {
    %c0_i32 = arith.constant 0 : i32
    %c0_i32_0 = arith.constant 0 : i32
    %c0_i32_1 = arith.constant 0 : i32
    return %c0_i32, %c0_i32_0 : i32, i32
  }
  func.func @transform_18(%arg0: i32) -> (i32, i32) {
    %c0_i32 = arith.constant 0 : i32
    %c0_i32_0 = arith.constant 0 : i32
    %c0_i32_1 = arith.constant 0 : i32
    return %c0_i32, %c0_i32_0 : i32, i32
  }
  func.func @transform_19(%arg0: i32) -> (i32, i32) {
    %c0_i32 = arith.constant 0 : i32
    %c0_i32_0 = arith.constant 0 : i32
    %c0_i32_1 = arith.constant 0 : i32
    return %c0_i32, %c0_i32_0 : i32, i32
  }
  func.func @transform_20(%arg0: i32) -> (i32, i32) {
    %c0_i32 = arith.constant 0 : i32
    %c0_i32_0 = arith.constant 0 : i32
    %c0_i32_1 = arith.constant 0 : i32
    return %c0_i32, %c0_i32_0 : i32, i32
  }
  func.func @transform_21(%arg0: i32) -> (i32, i32) {
    %c0_i32 = arith.constant 0 : i32
    %c0_i32_0 = arith.constant 0 : i32
    %c0_i32_1 = arith.constant 0 : i32
    return %c0_i32, %c0_i32_0 : i32, i32
  }
  func.func @transform_22(%arg0: i32) -> (i32, i32) {
    %c0_i32 = arith.constant 0 : i32
    %c0_i32_0 = arith.constant 0 : i32
    %c0_i32_1 = arith.constant 0 : i32
    return %c0_i32, %c0_i32_0 : i32, i32
  }
  func.func @transform_23(%arg0: i32) -> (i32, i32) {
    %c0_i32 = arith.constant 0 : i32
    %c0_i32_0 = arith.constant 0 : i32
    return %arg0, %c0_i32 : i32, i32
  }
}

</mosaic_0001>

<bundles_post_ra>
// kernel: tpu_custom_call.1
= control target key start
LH: loop header
LB: loop body
LE: loop exit
PB: predicated region body
PF: predicated region fallthrough
CT: control target
= control target key end

     0   :  { %s9311_s0 = inlined_call_operand.vmem [shape: f32[32,8], index: 0, kind: input, shape index: {}]   ;;  %s9312_s1 = inlined_call_operand.hbm [shape: f32[2,8], index: 1, kind: input, shape index: {}]   ;;  %s9313_s2 = inlined_call_operand.hbm [shape: bf16[8,64], index: 2, kind: input, shape index: {}]   ;;  %s9314_s3 = inlined_call_operand.hbm [shape: f32[1,64], index: 3, kind: input, shape index: {}]   ;;  %s9315_s4 = inlined_call_operand.hbm [shape: bf16[64,128], index: 4, kind: input, shape index: {}]   ;;  %s9316_s5 = inlined_call_operand.hbm [shape: f32[1,128], index: 5, kind: input, shape index: {}]   ;;  %s9317_s6 = inlined_call_operand.hbm [shape: bf16[128,1024], index: 6, kind: input, shape index: {}]   ;;  %s9318_s7 = inlined_call_operand.hbm [shape: f32[1,1024], index: 7, kind: input, shape index: {}]   ;;  %s9319_s8 = inlined_call_operand.hbm [shape: bf16[8,64], index: 8, kind: input, shape index: {}]   ;;  %s9320_s9 = inlined_call_operand.hbm [shape: f32[1,64], index: 9, kind: input, shape index: {}]   ;;  %s9321_s10 = inlined_call_operand.hbm [shape: bf16[64,64], index: 10, kind: input, shape index: {}]   ;;  %s9322_s11 = inlined_call_operand.hbm [shape: f32[1,64], index: 11, kind: input, shape index: {}]   ;;  %s9323_s12 = inlined_call_operand.vmem [shape: bf16[64,16], index: 12, kind: input, shape index: {}]   ;;  %s9324_s13 = inlined_call_operand.hbm [shape: f32[1,16], index: 13, kind: input, shape index: {}]   ;;  %s9325_s14 = inlined_call_operand.hbm [shape: bf16[1024,1024], index: 14, kind: input, shape index: {}]   ;;  %s9326_s15 = inlined_call_operand.hbm [shape: bf16[16,1024], index: 15, kind: input, shape index: {}]   ;;  %s9327_s16 = inlined_call_operand.hbm [shape: f32[1,1024], index: 16, kind: input, shape index: {}]   ;;  %s9328_s17 = inlined_call_operand.hbm [shape: bf16[512,256], index: 17, kind: input, shape index: {}]   ;;  %s9329_s18 = inlined_call_operand.hbm [shape: f32[1,256], index: 18, kind: input, shape index: {}]   ;;  %s9330_s19 = inlined_call_operand.hbm [shape: bf16[512,256], index: 19, kind: input, shape index: {}]   ;;  %s9331_s20 = inlined_call_operand.hbm [shape: f32[1,256], index: 20, kind: input, shape index: {}]   ;;  %s9332_s21 = inlined_call_operand.hbm [shape: bf16[512,128], index: 21, kind: input, shape index: {}]   ;;  %s9333_s22 = inlined_call_operand.hbm [shape: f32[1,128], index: 22, kind: input, shape index: {}]   ;;  %s9334_s23 = inlined_call_operand.hbm [shape: f32[2,128], index: 23, kind: output, shape index: {}]  }
   0x1   :  { %9349 = sst [smem:[#allocation48_spill]] %s9311_s0 }
   0x2   :  { %9350 = sst [smem:[#allocation49_spill]] %s9312_s1 }
   0x3   :  { %9351 = sst [smem:[#allocation50_spill]] %s9313_s2 }
   0x4   :  { %9352 = sst [smem:[#allocation51_spill]] %s9314_s3 }
   0x5   :  { %9353 = sst [smem:[#allocation52_spill]] %s9315_s4 }
   0x6   :  { %9354 = sst [smem:[#allocation53_spill]] %s9316_s5 }
   0x7   :  { %9355 = sst [smem:[#allocation54_spill]] %s9317_s6 }
   0x8   :  { %9356 = sst [smem:[#allocation55_spill]] %s9318_s7 }
   0x9   :  { %9357 = sst [smem:[#allocation56_spill]] %s9323_s12 }
   0xa   :  { %9358 = sst [smem:[#allocation57_spill]] %s9334_s23 }
   0xb   :  { %28 = vsyncpa [#allocation3], 0 }
   0xc   :  { %29 = vsyncpa [#allocation6], 0 }
   0xd   :  { %30 = vsyncpa [#allocation9], 0 }
   0xe   :  { %31 = vsyncpa [#allocation12], 0 }
   0xf   :  { %32 = vsyncpa [#allocation15], 0 }
  0x10   :  { %33 = vsyncpa [#allocation18], 0 }
  0x11   :  { %34 = vsyncpa [#allocation21], 0 }
  0x12   :  { %35 = vsyncpa [#allocation24], 0 }
  0x13   :  { %36 = vsyncpa [#allocation27], 0 }
  0x14   :  { %37 = vsyncpa [#allocation30], 0 }
  0x15   :  { %38 = vsyncpa [#allocation33], 0 }
  0x16   :  { %39 = vsyncpa [#allocation4], 0  ;;  %s8582_s4 = smov [#allocation5]   ;;  %s8583_s24 = smov [#allocation8]  }
  0x17   :  { %s58_s30 = sshll.u32 %s8582_s4, 4  ;;  %s77_s25 = sshll.u32 %s8583_s24, 4  ;;  %s59_s30 = int_to_ptr.vmem [resolvable:$true] %s58_s30  ;;  %s8733_s25 = int_to_ptr.vmem [resolvable:$true] %s77_s25 }
  0x18   :  { %s9359_s26 = sld [smem:[#allocation50_spill]] }
  0x1e   :  { %s8074_s2 = scalar_lea.hbm %s9359_s26, 64 }
  0x1f   :  { %p8075_p0 = scmp.ne.s32.totalorder %s9359_s26, %s8074_s2  ;;  %p8078_p1 = scmp.lt.u32.totalorder %s8074_s2, %s9359_s26 }
  0x21   :  { %p8080_p2 = pnand %p8078_p1, %p8075_p0 }
  0x23   :  { %8083 = shalt.err (!%p8080_p2)
}
  0x24   :  { %s8084_s29 = scalar_lea.vmem %s59_s30, 64  ;;  %p8089_p4 = scmp.lt.s32.totalorder %s59_s30, %s59_s30 }
  0x25   :  { %p8085_p3 = scmp.ne.s32.totalorder %s59_s30, %s8084_s29  ;;  %p8090_p5 = scmp.lt.s32.totalorder %s8084_s29, %s8084_s29 }
  0x27   :  { %p8091_p6 = por %p8090_p5, %p8089_p4 }
  0x29   :  { %p8092_p7 = pnand %p8091_p6, %p8085_p3 }
  0x2b   :  { %8095 = shalt.err (!%p8092_p7)
}
  0x2c   :  { %61 = dma.hbm_to_vmem [thread:$0]  %s9359_s26, 64, %s59_s30, [#allocation6]  }
  0x2d   :  { %s9360_s5 = sld [smem:[#allocation52_spill]] }
  0x33   :  { %s8096_s1 = scalar_lea.hbm %s9360_s5, 512 }
  0x34   :  { %p8097_p8 = scmp.ne.s32.totalorder %s9360_s5, %s8096_s1  ;;  %p8100_p9 = scmp.lt.u32.totalorder %s8096_s1, %s9360_s5 }
  0x36   :  { %p8102_p10 = pnand %p8100_p9, %p8097_p8 }
  0x38   :  { %8105 = shalt.err (!%p8102_p10)
}
  0x39   :  { %s8106_s28 = scalar_lea.vmem %s8733_s25, 512  ;;  %p8111_p12 = scmp.lt.s32.totalorder %s8733_s25, %s8733_s25 }
  0x3a   :  { %p8107_p11 = scmp.ne.s32.totalorder %s8733_s25, %s8106_s28  ;;  %p8112_p13 = scmp.lt.s32.totalorder %s8106_s28, %s8106_s28 }
  0x3c   :  { %p8113_p0 = por %p8112_p13, %p8111_p12 }
  0x3e   :  { %p8114_p1 = pnand %p8113_p0, %p8107_p11 }
  0x40   :  { %8117 = shalt.err (!%p8114_p1)
}
  0x41   :  { %s9345_s30 = smov 64   ;;  %s9347_s26 = smov 4  }
  0x42   :  { %83 = dma.hbm_to_vmem [thread:$0]  %s9360_s5, 512, %s8733_s25, [#allocation9], %s9345_s30, %s9345_s30, %s9347_s26  }
  0x43   :  { %s8586_s0 = smov [#allocation11]   ;;  %s9361_s6 = sld [smem:[#allocation54_spill]] }
  0x44   :  { %s99_s4 = sshll.u32 %s8586_s0, 4  ;;  %s100_s4 = int_to_ptr.vmem [resolvable:$true] %s99_s4 }
  0x49   :  { %s8118_s27 = scalar_lea.hbm %s9361_s6, 8192 }
  0x4a   :  { %p8119_p2 = scmp.ne.s32.totalorder %s9361_s6, %s8118_s27  ;;  %p8122_p3 = scmp.lt.u32.totalorder %s8118_s27, %s9361_s6 }
  0x4c   :  { %p8124_p4 = pnand %p8122_p3, %p8119_p2 }
  0x4e   :  { %8127 = shalt.err (!%p8124_p4)
}
  0x4f   :  { %s8128_s12 = scalar_lea.vmem %s100_s4, 8192  ;;  %p8133_p6 = scmp.lt.s32.totalorder %s100_s4, %s100_s4 }
  0x50   :  { %p8129_p5 = scmp.ne.s32.totalorder %s100_s4, %s8128_s12  ;;  %p8134_p7 = scmp.lt.s32.totalorder %s8128_s12, %s8128_s12 }
  0x52   :  { %p8135_p8 = por %p8134_p7, %p8133_p6 }
  0x54   :  { %p8136_p9 = pnand %p8135_p8, %p8129_p5 }
  0x56   :  { %8139 = shalt.err (!%p8136_p9)
}
  0x57   :  { %s8587_s25 = smov 512   ;;  %s8588_s5 = smov 32  }
  0x58   :  { %105 = dma.hbm_to_vmem [thread:$0]  %s9361_s6, 8192, %s100_s4, [#allocation12], %s8587_s25, %s8587_s25, %s8588_s5  }
  0x59   :  { %s8589_s23 = smov [#allocation14]   ;;  %s8590_s24 = smov [#allocation17]  }
  0x5a   :  { %s122_s0 = sshll.u32 %s8589_s23, 4  ;;  %s141_s1 = sshll.u32 %s8590_s24, 4  ;;  %s123_s0 = int_to_ptr.vmem [resolvable:$true] %s122_s0  ;;  %s142_s1 = int_to_ptr.vmem [resolvable:$true] %s141_s1 }
  0x5b   :  { %s8140_s12 = scalar_lea.hbm %s9319_s8, 64 }
  0x5c   :  { %p8141_p10 = scmp.ne.s32.totalorder %s9319_s8, %s8140_s12  ;;  %p8144_p11 = scmp.lt.u32.totalorder %s8140_s12, %s9319_s8 }
  0x5e   :  { %p8146_p12 = pnand %p8144_p11, %p8141_p10 }
  0x60   :  { %8149 = shalt.err (!%p8146_p12)
}
  0x61   :  { %s8150_s4 = scalar_lea.vmem %s123_s0, 64  ;;  %p8155_p0 = scmp.lt.s32.totalorder %s123_s0, %s123_s0 }
  0x62   :  { %p8151_p13 = scmp.ne.s32.totalorder %s123_s0, %s8150_s4  ;;  %p8156_p1 = scmp.lt.s32.totalorder %s8150_s4, %s8150_s4 }
  0x64   :  { %p8157_p2 = por %p8156_p1, %p8155_p0 }
  0x66   :  { %p8158_p3 = pnand %p8157_p2, %p8151_p13 }
  0x68   :  { %8161 = shalt.err (!%p8158_p3)
}
  0x69   :  { %125 = dma.hbm_to_vmem [thread:$0]  %s9319_s8, 64, %s123_s0, [#allocation15]  }
  0x6a   :  { %s8162_s24 = scalar_lea.hbm %s9321_s10, 512 }
  0x6b   :  { %p8163_p4 = scmp.ne.s32.totalorder %s9321_s10, %s8162_s24  ;;  %p8166_p5 = scmp.lt.u32.totalorder %s8162_s24, %s9321_s10 }
  0x6d   :  { %p8168_p6 = pnand %p8166_p5, %p8163_p4 }
  0x6f   :  { %8171 = shalt.err (!%p8168_p6)
}
  0x70   :  { %s8172_s12 = scalar_lea.vmem %s142_s1, 512  ;;  %p8177_p8 = scmp.lt.s32.totalorder %s142_s1, %s142_s1 }
  0x71   :  { %p8173_p7 = scmp.ne.s32.totalorder %s142_s1, %s8172_s12  ;;  %p8178_p9 = scmp.lt.s32.totalorder %s8172_s12, %s8172_s12 }
  0x73   :  { %p8179_p10 = por %p8178_p9, %p8177_p8 }
  0x75   :  { %p8180_p11 = pnand %p8179_p10, %p8173_p7 }
  0x77   :  { %8183 = shalt.err (!%p8180_p11)
}
  0x78   :  { %s9362_s8 = smov 4   ;;  %s9363_s0 = smov 64  }
  0x79   :  { %147 = dma.hbm_to_vmem [thread:$0]  %s9321_s10, 512, %s142_s1, [#allocation18], %s9363_s0, %s9363_s0, %s9362_s8  }
  0x7a   :  { %s8591_s4 = smov [#allocation20]   ;;  %s8592_s29 = smov [#allocation23]  }
  0x7b   :  { %s166_s6 = sshll.u32 %s8591_s4, 4  ;;  %s187_s3 = sshll.u32 %s8592_s29, 4  ;;  %s167_s6 = int_to_ptr.vmem [resolvable:$true] %s166_s6  ;;  %s188_s3 = int_to_ptr.vmem [resolvable:$true] %s187_s3 }
  0x7c   :  { %s8184_s30 = scalar_lea.hbm %s9324_s13, 16 }
  0x7d   :  { %p8185_p12 = scmp.ne.s32.totalorder %s9324_s13, %s8184_s30  ;;  %p8188_p13 = scmp.lt.u32.totalorder %s8184_s30, %s9324_s13 }
  0x7f   :  { %p8190_p0 = pnand %p8188_p13, %p8185_p12 }
  0x81   :  { %8193 = shalt.err (!%p8190_p0)
}
  0x82   :  { %s8194_s10 = scalar_lea.vmem %s167_s6, 16  ;;  %s8198_s1 = scalar_lea.vmem %s167_s6, 32 }
  0x83   :  { %p8195_p1 = scmp.ne.s32.totalorder %s167_s6, %s8194_s10  ;;  %p8199_p2 = scmp.lt.s32.totalorder %s167_s6, %s167_s6 }
  0x84   :  { %p8200_p3 = scmp.lt.s32.totalorder %s8198_s1, %s8194_s10 }
  0x86   :  { %p8201_p4 = por %p8200_p3, %p8199_p2 }
  0x88   :  { %p8202_p5 = pnand %p8201_p4, %p8195_p1 }
  0x8a   :  { %8205 = shalt.err (!%p8202_p5)
}
  0x8b   :  { %169 = dma.hbm_to_vmem [thread:$0]  %s9324_s13, 16, %s167_s6, [#allocation21]  }
  0x8c   :  { %s8206_s23 = scalar_lea.hbm %s9326_s15, 1024 }
  0x8d   :  { %p8207_p6 = scmp.ne.s32.totalorder %s9326_s15, %s8206_s23  ;;  %p8210_p7 = scmp.lt.u32.totalorder %s8206_s23, %s9326_s15 }
  0x8f   :  { %p8212_p8 = pnand %p8210_p7, %p8207_p6 }
  0x91   :  { %8215 = shalt.err (!%p8212_p8)
}
  0x92   :  { %s8216_s2 = scalar_lea.vmem %s188_s3, 1024  ;;  %p8221_p10 = scmp.lt.s32.totalorder %s188_s3, %s188_s3 }
  0x93   :  { %p8217_p9 = scmp.ne.s32.totalorder %s188_s3, %s8216_s2  ;;  %p8222_p11 = scmp.lt.s32.totalorder %s8216_s2, %s8216_s2 }
  0x95   :  { %p8223_p12 = por %p8222_p11, %p8221_p10 }
  0x97   :  { %p8224_p13 = pnand %p8223_p12, %p8217_p9 }
  0x99   :  { %8227 = shalt.err (!%p8224_p13)
}
  0x9a   :  { %193 = dma.hbm_to_vmem [thread:$0]  %s9326_s15, 1024, %s188_s3, [#allocation24], %s8587_s25, %s8587_s25, %s8588_s5  }
  0x9b   :  { %s8593_s12 = smov [#allocation26]   ;;  %s8228_s28 = scalar_lea.hbm %s9328_s17, 8192 }
  0x9c   :  { %s209_s10 = sshll.u32 %s8593_s12, 4  ;;  %p8229_p0 = scmp.ne.s32.totalorder %s9328_s17, %s8228_s28  ;;  %s210_s10 = int_to_ptr.vmem [resolvable:$true] %s209_s10 }
  0x9d   :  { %p8232_p1 = scmp.lt.u32.totalorder %s8228_s28, %s9328_s17 }
  0x9f   :  { %p8234_p2 = pnand %p8232_p1, %p8229_p0 }
  0xa1   :  { %8237 = shalt.err (!%p8234_p2)
}
  0xa2   :  { %s8238_s30 = scalar_lea.vmem %s210_s10, 8192  ;;  %p8243_p4 = scmp.lt.s32.totalorder %s210_s10, %s210_s10 }
  0xa3   :  { %p8239_p3 = scmp.ne.s32.totalorder %s210_s10, %s8238_s30  ;;  %p8244_p5 = scmp.lt.s32.totalorder %s8238_s30, %s8238_s30 }
  0xa5   :  { %p8245_p6 = por %p8244_p5, %p8243_p4 }
  0xa7   :  { %p8246_p7 = pnand %p8245_p6, %p8239_p3 }
  0xa9   :  { %8249 = shalt.err (!%p8246_p7)
}
  0xaa   :  { %s8594_s15 = smov 128   ;;  %s8595_s3 = smov 8  }
  0xab   :  { %215 = dma.hbm_to_vmem [thread:$0]  %s9328_s17, 8192, %s210_s10, [#allocation27], %s8594_s15, %s8594_s15, %s8595_s3  }
  0xac   :  { %s8596_s2 = smov [#allocation29]   ;;  %s8597_s6 = smov [#allocation32]  }
  0xad   :  { %s231_s13 = sshll.u32 %s8596_s2, 4  ;;  %s253_s12 = sshll.u32 %s8597_s6, 4  ;;  %s232_s13 = int_to_ptr.vmem [resolvable:$true] %s231_s13  ;;  %s8848_s12 = int_to_ptr.vmem [resolvable:$true] %s253_s12 }
  0xae   :  { %s8250_s28 = scalar_lea.hbm %s9330_s19, 8192 }
  0xaf   :  { %p8251_p8 = scmp.ne.s32.totalorder %s9330_s19, %s8250_s28  ;;  %p8254_p9 = scmp.lt.u32.totalorder %s8250_s28, %s9330_s19 }
  0xb1   :  { %p8256_p10 = pnand %p8254_p9, %p8251_p8 }
  0xb3   :  { %8259 = shalt.err (!%p8256_p10)
}
  0xb4   :  { %s8260_s17 = scalar_lea.vmem %s232_s13, 8192  ;;  %p8265_p12 = scmp.lt.s32.totalorder %s232_s13, %s232_s13 }
  0xb5   :  { %p8261_p11 = scmp.ne.s32.totalorder %s232_s13, %s8260_s17  ;;  %p8266_p13 = scmp.lt.s32.totalorder %s8260_s17, %s8260_s17 }
  0xb7   :  { %p8267_p0 = por %p8266_p13, %p8265_p12 }
  0xb9   :  { %p8268_p1 = pnand %p8267_p0, %p8261_p11 }
  0xbb   :  { %8271 = shalt.err (!%p8268_p1)
}
  0xbc   :  { %237 = dma.hbm_to_vmem [thread:$0]  %s9330_s19, 8192, %s232_s13, [#allocation30], %s8594_s15, %s8594_s15, %s8595_s3  }
  0xbd   :  { %s8272_s2 = scalar_lea.hbm %s9332_s21, 4096 }
  0xbe   :  { %p8273_p2 = scmp.ne.s32.totalorder %s9332_s21, %s8272_s2  ;;  %p8276_p3 = scmp.lt.u32.totalorder %s8272_s2, %s9332_s21 }
  0xc0   :  { %p8278_p4 = pnand %p8276_p3, %p8273_p2 }
  0xc2   :  { %8281 = shalt.err (!%p8278_p4)
}
  0xc3   :  { %s8282_s4 = scalar_lea.vmem %s8848_s12, 4096  ;;  %p8287_p6 = scmp.lt.s32.totalorder %s8848_s12, %s8848_s12 }
  0xc4   :  { %p8283_p5 = scmp.ne.s32.totalorder %s8848_s12, %s8282_s4  ;;  %p8288_p7 = scmp.lt.s32.totalorder %s8282_s4, %s8282_s4 }
  0xc6   :  { %p8289_p8 = por %p8288_p7, %p8287_p6 }
  0xc8   :  { %p8290_p9 = pnand %p8289_p8, %p8283_p5 }
  0xca   :  { %8293 = shalt.err (!%p8290_p9)
}
  0xcb   :  { %259 = dma.hbm_to_vmem [thread:$0]  %s9332_s21, 4096, %s8848_s12, [#allocation33], %s9363_s0, %s9363_s0, %s9362_s8  }
  0xcc   :  { %s8598_s3 = smov [#allocation2]   ;;  %s8599_s29 = smov [#allocation7]  }
  0xcd   :  { %s48_s13 = sshll.u32 %s8598_s3, 4  ;;  %s68_s23 = sshll.u32 %s8599_s29, 4  ;;  %s49_s13 = int_to_ptr.vmem [resolvable:$true] %s48_s13  ;;  %s69_s23 = int_to_ptr.vmem [resolvable:$true] %s68_s23 }
  0xce   :  { %s9364_s10 = sld [smem:[#allocation49_spill]] }
  0xd4   :  { %s8294_s30 = scalar_lea.hbm %s9364_s10, 32 }
  0xd5   :  { %p8295_p10 = scmp.ne.s32.totalorder %s9364_s10, %s8294_s30  ;;  %p8298_p11 = scmp.lt.u32.totalorder %s8294_s30, %s9364_s10 }
  0xd7   :  { %p8300_p12 = pnand %p8298_p11, %p8295_p10 }
  0xd9   :  { %8303 = shalt.err (!%p8300_p12)
}
  0xda   :  { %s8304_s21 = scalar_lea.vmem %s49_s13, 32  ;;  %p8309_p0 = scmp.lt.s32.totalorder %s49_s13, %s49_s13 }
  0xdb   :  { %p8305_p13 = scmp.ne.s32.totalorder %s49_s13, %s8304_s21  ;;  %p8310_p1 = scmp.lt.s32.totalorder %s8304_s21, %s8304_s21 }
  0xdd   :  { %p8311_p2 = por %p8310_p1, %p8309_p0 }
  0xdf   :  { %p8312_p3 = pnand %p8311_p2, %p8305_p13 }
  0xe1   :  { %8315 = shalt.err (!%p8312_p3)
}
  0xe2   :  { %51 = dma.hbm_to_vmem [thread:$0]  %s9364_s10, 32, %s49_s13, [#allocation3]  }
  0xe3   :  { %s9365_s7 = sld [smem:[#allocation51_spill]] }
  0xe9   :  { %s8316_s28 = scalar_lea.hbm %s9365_s7, 16 }
  0xea   :  { %p8317_p4 = scmp.ne.s32.totalorder %s9365_s7, %s8316_s28  ;;  %p8320_p5 = scmp.lt.u32.totalorder %s8316_s28, %s9365_s7 }
  0xec   :  { %p8322_p6 = pnand %p8320_p5, %p8317_p4 }
  0xee   :  { %8325 = shalt.err (!%p8322_p6)
}
  0xef   :  { %s8326_s29 = scalar_lea.vmem %s69_s23, 16  ;;  %s8330_s24 = scalar_lea.vmem %s69_s23, 32 }
  0xf0   :  { %p8327_p7 = scmp.ne.s32.totalorder %s69_s23, %s8326_s29  ;;  %p8331_p8 = scmp.lt.s32.totalorder %s69_s23, %s69_s23 }
  0xf1   :  { %p8332_p9 = scmp.lt.s32.totalorder %s8330_s24, %s8326_s29 }
  0xf3   :  { %p8333_p10 = por %p8332_p9, %p8331_p8 }
  0xf5   :  { %p8334_p11 = pnand %p8333_p10, %p8327_p7 }
  0xf7   :  { %8337 = shalt.err (!%p8334_p11)
}
  0xf8   :  { %71 = dma.hbm_to_vmem [thread:$0]  %s9365_s7, 16, %s69_s23, [#allocation6]  }
  0xf9   :  { %s8600_s10 = smov [#allocation10]   ;;  %s8601_s26 = smov [#allocation13]  }
  0xfa   :  { %s90_s30 = sshll.u32 %s8600_s10, 4  ;;  %s112_s27 = sshll.u32 %s8601_s26, 4  ;;  %s91_s30 = int_to_ptr.vmem [resolvable:$true] %s90_s30  ;;  %s113_s27 = int_to_ptr.vmem [resolvable:$true] %s112_s27 }
  0xfb   :  { %s9366_s21 = sld [smem:[#allocation53_spill]] }
 0x101   :  { %s8338_s8 = scalar_lea.hbm %s9366_s21, 16 }
 0x102   :  { %p8339_p12 = scmp.ne.s32.totalorder %s9366_s21, %s8338_s8  ;;  %p8342_p13 = scmp.lt.u32.totalorder %s8338_s8, %s9366_s21 }
 0x104   :  { %p8344_p0 = pnand %p8342_p13, %p8339_p12 }
 0x106   :  { %8347 = shalt.err (!%p8344_p0)
}
 0x107   :  { %s8348_s23 = scalar_lea.vmem %s91_s30, 16  ;;  %s8352_s7 = scalar_lea.vmem %s91_s30, 32 }
 0x108   :  { %p8349_p1 = scmp.ne.s32.totalorder %s91_s30, %s8348_s23  ;;  %p8353_p2 = scmp.lt.s32.totalorder %s91_s30, %s91_s30 }
 0x109   :  { %p8354_p3 = scmp.lt.s32.totalorder %s8352_s7, %s8348_s23 }
 0x10b   :  { %p8355_p4 = por %p8354_p3, %p8353_p2 }
 0x10d   :  { %p8356_p5 = pnand %p8355_p4, %p8349_p1 }
 0x10f   :  { %8359 = shalt.err (!%p8356_p5)
}
 0x110   :  { %93 = dma.hbm_to_vmem [thread:$0]  %s9366_s21, 16, %s91_s30, [#allocation9]  }
 0x111   :  { %s9367_s29 = sld [smem:[#allocation55_spill]] }
 0x117   :  { %s8360_s24 = scalar_lea.hbm %s9367_s29, 128 }
 0x118   :  { %p8361_p6 = scmp.ne.s32.totalorder %s9367_s29, %s8360_s24  ;;  %p8364_p7 = scmp.lt.u32.totalorder %s8360_s24, %s9367_s29 }
 0x11a   :  { %p8366_p8 = pnand %p8364_p7, %p8361_p6 }
 0x11c   :  { %8369 = shalt.err (!%p8366_p8)
}
 0x11d   :  { %s8370_s2 = scalar_lea.vmem %s113_s27, 128  ;;  %p8375_p10 = scmp.lt.s32.totalorder %s113_s27, %s113_s27 }
 0x11e   :  { %p8371_p9 = scmp.ne.s32.totalorder %s113_s27, %s8370_s2  ;;  %p8376_p11 = scmp.lt.s32.totalorder %s8370_s2, %s8370_s2 }
 0x120   :  { %p8377_p12 = por %p8376_p11, %p8375_p10 }
 0x122   :  { %p8378_p13 = pnand %p8377_p12, %p8371_p9 }
 0x124   :  { %8381 = shalt.err (!%p8378_p13)
}
 0x125   :  { %115 = dma.hbm_to_vmem [thread:$0]  %s9367_s29, 128, %s113_s27, [#allocation12]  }
 0x126   :  { %s8602_s21 = smov [#allocation16]   ;;  %s8603_s0 = smov [#allocation19]  }
 0x127   :  { %s132_s8 = sshll.u32 %s8602_s21, 4  ;;  %s154_s12 = sshll.u32 %s8603_s0, 4  ;;  %s133_s8 = int_to_ptr.vmem [resolvable:$true] %s132_s8  ;;  %s155_s12 = int_to_ptr.vmem [resolvable:$true] %s154_s12 }
 0x128   :  { %s8382_s23 = scalar_lea.hbm %s9320_s9, 16 }
 0x129   :  { %p8383_p0 = scmp.ne.s32.totalorder %s9320_s9, %s8382_s23  ;;  %p8386_p1 = scmp.lt.u32.totalorder %s8382_s23, %s9320_s9 }
 0x12b   :  { %p8388_p2 = pnand %p8386_p1, %p8383_p0 }
 0x12d   :  { %8391 = shalt.err (!%p8388_p2)
}
 0x12e   :  { %s8392_s27 = scalar_lea.vmem %s133_s8, 16  ;;  %s8396_s3 = scalar_lea.vmem %s133_s8, 32 }
 0x12f   :  { %p8393_p3 = scmp.ne.s32.totalorder %s133_s8, %s8392_s27  ;;  %p8397_p4 = scmp.lt.s32.totalorder %s133_s8, %s133_s8 }
 0x130   :  { %p8398_p5 = scmp.lt.s32.totalorder %s8396_s3, %s8392_s27 }
 0x132   :  { %p8399_p6 = por %p8398_p5, %p8397_p4 }
 0x134   :  { %p8400_p7 = pnand %p8399_p6, %p8393_p3 }
 0x136   :  { %8403 = shalt.err (!%p8400_p7)
}
 0x137   :  { %135 = dma.hbm_to_vmem [thread:$0]  %s9320_s9, 16, %s133_s8, [#allocation15]  }
 0x138   :  { %s8404_s10 = scalar_lea.hbm %s9322_s11, 16 }
 0x139   :  { %p8405_p8 = scmp.ne.s32.totalorder %s9322_s11, %s8404_s10  ;;  %p8408_p9 = scmp.lt.u32.totalorder %s8404_s10, %s9322_s11 }
 0x13b   :  { %p8410_p10 = pnand %p8408_p9, %p8405_p8 }
 0x13d   :  { %8413 = shalt.err (!%p8410_p10)
}
 0x13e   :  { %s8414_s21 = scalar_lea.vmem %s155_s12, 16  ;;  %s8418_s0 = scalar_lea.vmem %s155_s12, 32 }
 0x13f   :  { %p8415_p11 = scmp.ne.s32.totalorder %s155_s12, %s8414_s21  ;;  %p8419_p12 = scmp.lt.s32.totalorder %s155_s12, %s155_s12 }
 0x140   :  { %p8420_p13 = scmp.lt.s32.totalorder %s8418_s0, %s8414_s21 }
 0x142   :  { %p8421_p0 = por %p8420_p13, %p8419_p12 }
 0x144   :  { %p8422_p1 = pnand %p8421_p0, %p8415_p11 }
 0x146   :  { %8425 = shalt.err (!%p8422_p1)
}
 0x147   :  { %157 = dma.hbm_to_vmem [thread:$0]  %s9322_s11, 16, %s155_s12, [#allocation18]  }
 0x148   :  { %s8604_s1 = smov [#allocation22]   ;;  %s8605_s23 = smov [#allocation25]  }
 0x149   :  { %s175_s28 = sshll.u32 %s8604_s1, 4  ;;  %s200_s7 = sshll.u32 %s8605_s23, 4  ;;  %s176_s28 = int_to_ptr.vmem [resolvable:$true] %s175_s28  ;;  %s201_s7 = int_to_ptr.vmem [resolvable:$true] %s200_s7 }
 0x14a   :  { %s8426_s15 = scalar_lea.hbm %s9325_s14, 65536 }
 0x14b   :  { %p8427_p2 = scmp.ne.s32.totalorder %s9325_s14, %s8426_s15  ;;  %p8430_p3 = scmp.lt.u32.totalorder %s8426_s15, %s9325_s14 }
 0x14d   :  { %p8432_p4 = pnand %p8430_p3, %p8427_p2 }
 0x14f   :  { %8435 = shalt.err (!%p8432_p4)
}
 0x150   :  { %s8436_s11 = scalar_lea.vmem %s176_s28, 65536  ;;  %p8441_p6 = scmp.lt.s32.totalorder %s176_s28, %s176_s28 }
 0x151   :  { %p8437_p5 = scmp.ne.s32.totalorder %s176_s28, %s8436_s11  ;;  %p8442_p7 = scmp.lt.s32.totalorder %s8436_s11, %s8436_s11 }
 0x153   :  { %p8443_p8 = por %p8442_p7, %p8441_p6 }
 0x155   :  { %p8444_p9 = pnand %p8443_p8, %p8437_p5 }
 0x157   :  { %8447 = shalt.err (!%p8444_p9)
}
 0x158   :  { %181 = dma.hbm_to_vmem [thread:$0]  %s9325_s14, 65536, %s176_s28, [#allocation21], %s8587_s25, %s8587_s25, %s8588_s5  }
 0x159   :  { %s8448_s26 = scalar_lea.hbm %s9327_s16, 128 }
 0x15a   :  { %p8449_p10 = scmp.ne.s32.totalorder %s9327_s16, %s8448_s26  ;;  %p8452_p11 = scmp.lt.u32.totalorder %s8448_s26, %s9327_s16 }
 0x15c   :  { %p8454_p12 = pnand %p8452_p11, %p8449_p10 }
 0x15e   :  { %8457 = shalt.err (!%p8454_p12)
}
 0x15f   :  { %s8458_s0 = scalar_lea.vmem %s201_s7, 128  ;;  %p8463_p0 = scmp.lt.s32.totalorder %s201_s7, %s201_s7 }
 0x160   :  { %p8459_p13 = scmp.ne.s32.totalorder %s201_s7, %s8458_s0  ;;  %p8464_p1 = scmp.lt.s32.totalorder %s8458_s0, %s8458_s0 }
 0x162   :  { %p8465_p2 = por %p8464_p1, %p8463_p0 }
 0x164   :  { %p8466_p3 = pnand %p8465_p2, %p8459_p13 }
 0x166   :  { %8469 = shalt.err (!%p8466_p3)
}
 0x167   :  { %203 = dma.hbm_to_vmem [thread:$0]  %s9327_s16, 128, %s201_s7, [#allocation24]  }
 0x168   :  { %s8606_s5 = smov [#allocation28]   ;;  %s8607_s8 = smov [#allocation31]  }
 0x169   :  { %s222_s9 = sshll.u32 %s8606_s5, 4  ;;  %s244_s1 = sshll.u32 %s8607_s8, 4  ;;  %s223_s9 = int_to_ptr.vmem [resolvable:$true] %s222_s9  ;;  %s245_s1 = int_to_ptr.vmem [resolvable:$true] %s244_s1 }
 0x16a   :  { %s8470_s4 = scalar_lea.hbm %s9329_s18, 32 }
 0x16b   :  { %p8471_p4 = scmp.ne.s32.totalorder %s9329_s18, %s8470_s4  ;;  %p8474_p5 = scmp.lt.u32.totalorder %s8470_s4, %s9329_s18 }
 0x16d   :  { %p8476_p6 = pnand %p8474_p5, %p8471_p4 }
 0x16f   :  { %8479 = shalt.err (!%p8476_p6)
}
 0x170   :  { %s8480_s16 = scalar_lea.vmem %s223_s9, 32  ;;  %p8485_p8 = scmp.lt.s32.totalorder %s223_s9, %s223_s9 }
 0x171   :  { %p8481_p7 = scmp.ne.s32.totalorder %s223_s9, %s8480_s16  ;;  %p8486_p9 = scmp.lt.s32.totalorder %s8480_s16, %s8480_s16 }
 0x173   :  { %p8487_p10 = por %p8486_p9, %p8485_p8 }
 0x175   :  { %p8488_p11 = pnand %p8487_p10, %p8481_p7 }
 0x177   :  { %8491 = shalt.err (!%p8488_p11)
}
 0x178   :  { %225 = dma.hbm_to_vmem [thread:$0]  %s9329_s18, 32, %s223_s9, [#allocation27]  }
 0x179   :  { %s8492_s12 = scalar_lea.hbm %s9331_s20, 32 }
 0x17a   :  { %p8493_p12 = scmp.ne.s32.totalorder %s9331_s20, %s8492_s12  ;;  %p8496_p13 = scmp.lt.u32.totalorder %s8492_s12, %s9331_s20 }
 0x17c   :  { %p8498_p0 = pnand %p8496_p13, %p8493_p12 }
 0x17e   :  { %8501 = shalt.err (!%p8498_p0)
}
 0x17f   :  { %s8502_s2 = scalar_lea.vmem %s245_s1, 32  ;;  %p8507_p2 = scmp.lt.s32.totalorder %s245_s1, %s245_s1 }
 0x180   :  { %p8503_p1 = scmp.ne.s32.totalorder %s245_s1, %s8502_s2  ;;  %p8508_p3 = scmp.lt.s32.totalorder %s8502_s2, %s8502_s2 }
 0x182   :  { %p8509_p4 = por %p8508_p3, %p8507_p2 }
 0x184   :  { %p8510_p5 = pnand %p8509_p4, %p8503_p1 }
 0x186   :  { %8513 = shalt.err (!%p8510_p5)
}
 0x187   :  { %247 = dma.hbm_to_vmem [thread:$0]  %s9331_s20, 32, %s245_s1, [#allocation30]  }
 0x188   :  { %s8608_s6 = smov [#allocation34]   ;;  %s8514_s25 = scalar_lea.hbm %s9333_s22, 16 }
 0x189   :  { %s266_s21 = sshll.u32 %s8608_s6, 4  ;;  %p8515_p6 = scmp.ne.s32.totalorder %s9333_s22, %s8514_s25  ;;  %s267_s21 = int_to_ptr.vmem [resolvable:$true] %s266_s21 }
 0x18a   :  { %p8518_p7 = scmp.lt.u32.totalorder %s8514_s25, %s9333_s22 }
 0x18c   :  { %p8520_p8 = pnand %p8518_p7, %p8515_p6 }
 0x18e   :  { %8523 = shalt.err (!%p8520_p8)
}
 0x18f   :  { %s8524_s23 = scalar_lea.vmem %s267_s21, 16  ;;  %s8528_s20 = scalar_lea.vmem %s267_s21, 32 }
 0x190   :  { %p8525_p9 = scmp.ne.s32.totalorder %s267_s21, %s8524_s23  ;;  %p8529_p10 = scmp.lt.s32.totalorder %s267_s21, %s267_s21 }
 0x191   :  { %p8530_p11 = scmp.lt.s32.totalorder %s8528_s20, %s8524_s23 }
 0x193   :  { %p8531_p12 = por %p8530_p11, %p8529_p10 }
 0x195   :  { %p8532_p13 = pnand %p8531_p12, %p8525_p9 }
 0x197   :  { %8535 = shalt.err (!%p8532_p13)
}
 0x198   :  { %269 = dma.hbm_to_vmem [thread:$0]  %s9333_s22, 16, %s267_s21, [#allocation33]  }
 0x199   :  { %8558 = dma.done.wait [#allocation3], 32  }
 0x19a   :  { %8559 = vsyncadd [#allocation3], 4294967264 }
 0x19b   :  { %8560 = dma.done.wait [#allocation6], 80  }
 0x19c   :  { %8561 = vsyncadd [#allocation6], 4294967216 }
 0x19d   :  { %8562 = dma.done.wait [#allocation9], 528  }
 0x19e   :  { %8563 = vsyncadd [#allocation9], 4294966768 }
 0x19f   :  { %8564 = dma.done.wait [#allocation12], 8320  }
 0x1a0   :  { %8565 = vsyncadd [#allocation12], 4294958976 }
 0x1a1   :  { %8566 = dma.done.wait [#allocation15], 80  }
 0x1a2   :  { %8567 = vsyncadd [#allocation15], 4294967216 }
 0x1a3   :  { %8568 = dma.done.wait [#allocation18], 528  }
 0x1a4   :  { %8569 = vsyncadd [#allocation18], 4294966768 }
 0x1a5   :  { %8570 = dma.done.wait [#allocation21], 65552  }
 0x1a6   :  { %8571 = vsyncadd [#allocation21], 4294901744 }
 0x1a7   :  { %8572 = dma.done.wait [#allocation24], 1152  }
 0x1a8   :  { %8573 = vsyncadd [#allocation24], 4294966144 }
 0x1a9   :  { %8574 = dma.done.wait [#allocation27], 8224  }
 0x1aa   :  { %8575 = vsyncadd [#allocation27], 4294959072 }
 0x1ab   :  { %8576 = dma.done.wait [#allocation30], 8224  }
 0x1ac   :  { %8577 = vsyncadd [#allocation30], 4294959072 }
 0x1ad   :  { %8578 = dma.done.wait [#allocation33], 4112  }
 0x1ae   :  { %8579 = vsyncadd [#allocation33], 4294963184  ;;  %vm355_vm0 = vcmask 1043456   ;;  %v340_v0 = vld [vmem:[#allocation5] sm:$0xf]  ;;  %s9368_s15 = sld [smem:[#allocation48_spill]] }
 0x1af   :  { %vm348_vm1 = vcmask 64512   ;;  %7806 = vmatprep.subr.msk.bf16.mxu0 %vm355_vm0, %v340_v0  ;;  %v357_v3 = vsel %vm355_vm0, %v340_v0, 0  ;;  %v7838_v8 = vld [vmem:[#allocation8] sm:$0xff]   ;;  %v7839_v9 = vld [vmem:[#allocation8 + $0x8] sm:$0xff]   ;;  %v7840_v10 = vld [vmem:[#allocation8 + $0x10] sm:$0xff]   ;;  %vm453_vm2 = vcmask 523264  }
 0x1b0   :  { %7747 = vmatpush3.bf16.msra.mxu0 %v357_v3  ;;  %7752 = vmatprep.subr.bf16.mxu1 %v7838_v8  ;;  %v7841_v11 = vld [vmem:[#allocation8 + $0x18] sm:$0xff]   ;;  %v515_v12 = vld [vmem:[#allocation11] sm:$0xff]  ;;  %v516_v14 = vld [vmem:[#allocation11 + $0x8] sm:$0xff]  ;;  %vm8611_vm3 = vmmov 0   ;;  %s9369_s13 = sld [smem:[#allocation56_spill]]  ;;  %vm2266_vm4 = vcmask 1041409  }
 0x1b1   :  { %7753 = vmatpush3.bf16.msra.mxu1 %v7838_v8  ;;  %v519_v13 = vld [vmem:[#allocation11 + $0x20] sm:$0xff]  ;;  %v520_v17 = vld [vmem:[#allocation11 + $0x28] sm:$0xff]  ;;  %v6908_v40 = vld [vmem:[#allocation7] ss:$0 sm:$0xff]  ;;  %vm2066_vm5 = vcmask 130048   ;;  %s8612_s6 = smov [#allocation35]  }
 0x1b2   :  { %7754 = vmatprep.subr.bf16.mxu1 %v7839_v9  ;;  %v6918_v15 = vcombine.low %v515_v12, %v519_v13  ;;  %v6919_v16 = vcombine.high %v515_v12, %v519_v13  ;;  %v523_v18 = vld [vmem:[#allocation11 + $0x40] sm:$0xff]  ;;  %v6920_v20 = vcombine.low %v516_v14, %v520_v17  ;;  %v6921_v21 = vcombine.high %v516_v14, %v520_v17  ;;  %v524_v53 = vld [vmem:[#allocation11 + $0x48] sm:$0xff]  ;;  %s6889_s21 = sshll.u32 %s8612_s6, 4  ;;  %s6890_s21 = int_to_ptr.vmem [resolvable:$true] %s6889_s21 }
 0x1b3   :  { %v527_v19 = vld [vmem:[#allocation11 + $0x60] sm:$0xff]  ;;  %v528_v54 = vld [vmem:[#allocation11 + $0x68] sm:$0xff]  ;;  %s8536_s0 = scalar_lea.vmem %s6890_s21, 32  ;;  %p8541_p1 = scmp.lt.s32.totalorder %s6890_s21, %s6890_s21 }
 0x1b4   :  { %v334_v1 = vld [vmem:[%s9368_s15] sm:$0xff]  ;;  %v335_v2 = vld [vmem:[%s9368_s15 + $0x8] sm:$0xff]  ;;  %v336_v5 = vld [vmem:[%s9368_s15 + $0x10] sm:$0xff]  ;;  %v6927_v22 = vcombine.high %v523_v18, %v527_v19  ;;  %941 = vmatprep.subr.bf16.mxu0 %v6919_v16  ;;  %v6926_v23 = vcombine.low %v523_v18, %v527_v19  ;;  %v6929_v57 = vcombine.high %v524_v53, %v528_v54  ;;  %v6928_v60 = vcombine.low %v524_v53, %v528_v54  ;;  %p8537_p0 = scmp.ne.s32.totalorder %s6890_s21, %s8536_s0  ;;  %p8542_p2 = scmp.lt.s32.totalorder %s8536_s0, %s8536_s0 }
 0x1b5   :  { %v338_v4 = vpack.c.bf16 %v335_v2, %v334_v1  ;;  %v337_v6 = vld [vmem:[%s9368_s15 + $0x18] sm:$0xff]  ;;  %7755 = vmatpush3.bf16.msra.mxu1 %v7839_v9  ;;  %v531_v24 = vld [vmem:[#allocation11 + $0x80] sm:$0xff] }
 0x1b6   :  { %v339_v7 = vpack.c.bf16 %v337_v6, %v336_v5  ;;  %7756 = vmatprep.subr.bf16.mxu1 %v7840_v10  ;;  %v535_v25 = vld [vmem:[#allocation11 + $0xa0] sm:$0xff]  ;;  %v532_v58 = vld [vmem:[#allocation11 + $0x88] sm:$0xff]  ;;  %p8543_p3 = por %p8542_p2, %p8541_p1 }
 0x1b7   :  { %7748 = vmatprep.mubr.msk.bf16.mxu0 %vm348_vm1, %v338_v4  ;;  %v6935_v26 = vcombine.high %v531_v24, %v535_v25  ;;  %v6934_v27 = vcombine.low %v531_v24, %v535_v25  ;;  %v539_v28 = vld [vmem:[#allocation11 + $0xc0] sm:$0xff]  ;;  %v536_v59 = vld [vmem:[#allocation11 + $0xa8] sm:$0xff] }
 0x1b8   :  { %7749 = vmatmul.mubr.msk.bf16.vlgmr.msra.gmra.mrb[0].mxu0 %vm348_vm1, %v339_v7  ;;  %v543_v29 = vld [vmem:[#allocation11 + $0xe0] sm:$0xff]  ;;  %v6937_v61 = vcombine.high %v532_v58, %v536_v59  ;;  %v540_v62 = vld [vmem:[#allocation11 + $0xc8] sm:$0xff]  ;;  %v6936_v0 = vcombine.low %v532_v58, %v536_v59  ;;  %v537_v58 = vld [vmem:[#allocation11 + $0xb0] sm:$0xff]  ;;  %p8544_p4 = pnand %p8543_p3, %p8537_p0 }
 0x1b9   :  { %7757 = vmatpush3.bf16.msra.mxu1 %v7840_v10  ;;  %942 = vmatpush1.bf16.msra.mxu0 %v6918_v15  ;;  %v6943_v30 = vcombine.high %v539_v28, %v543_v29  ;;  %v6942_v31 = vcombine.low %v539_v28, %v543_v29  ;;  %v547_v32 = vld [vmem:[#allocation11 + $0x100] sm:$0xff]  ;;  %v544_v63 = vld [vmem:[#allocation11 + $0xe8] sm:$0xff]  ;;  %v521_v28 = vld [vmem:[#allocation11 + $0x30] sm:$0xff] }
 0x1ba   :  { %7758 = vmatprep.subr.bf16.mxu1 %v7841_v11  ;;  %943 = vmatprep.subr.bf16.mxu0 %v6927_v22  ;;  %v551_v33 = vld [vmem:[#allocation11 + $0x120] sm:$0xff]  ;;  %v6945_v1 = vcombine.high %v540_v62, %v544_v63  ;;  %v548_v2 = vld [vmem:[#allocation11 + $0x108] sm:$0xff]  ;;  %v6944_v4 = vcombine.low %v540_v62, %v544_v63  ;;  %v518_v29 = vld [vmem:[#allocation11 + $0x18] sm:$0xff] }
 0x1bb   :  { %v6951_v34 = vcombine.high %v547_v32, %v551_v33  ;;  %v6950_v35 = vcombine.low %v547_v32, %v551_v33  ;;  %v555_v36 = vld [vmem:[#allocation11 + $0x140] sm:$0xff]  ;;  %v552_v3 = vld [vmem:[#allocation11 + $0x128] sm:$0xff]  ;;  %v534_v59 = vld [vmem:[#allocation11 + $0x98] sm:$0xff] }
 0x1bc   :  { %v559_v37 = vld [vmem:[#allocation11 + $0x160] sm:$0xff]  ;;  %v6953_v5 = vcombine.high %v548_v2, %v552_v3  ;;  %v556_v6 = vld [vmem:[#allocation11 + $0x148] sm:$0xff]  ;;  %v6952_v8 = vcombine.low %v548_v2, %v552_v3  ;;  %v545_v2 = vld [vmem:[#allocation11 + $0xf0] sm:$0xff] }
 0x1bd   :  { %7759 = vmatpush3.bf16.msra.mxu1 %v7841_v11  ;;  %944 = vmatpush1.bf16.msra.mxu0 %v6926_v23  ;;  %v6959_v38 = vcombine.high %v555_v36, %v559_v37  ;;  %v6958_v39 = vcombine.low %v555_v36, %v559_v37  ;;  %v560_v7 = vld [vmem:[#allocation11 + $0x168] sm:$0xff]  ;;  %v563_v11 = vld [vmem:[#allocation11 + $0x180] sm:$0xff]  ;;  %v6911_v36 = vld [vmem:[#allocation10] ss:$0 sm:$0xff] }
 0x1be   :  { %994 = vmatprep.subr.bf16.mxu1 %v6921_v21  ;;  %945 = vmatprep.subr.bf16.mxu0 %v6935_v26  ;;  %v6961_v9 = vcombine.high %v556_v6, %v560_v7  ;;  %v6960_v10 = vcombine.low %v556_v6, %v560_v7  ;;  %v567_v12 = vld [vmem:[#allocation11 + $0x1a0] sm:$0xff]  ;;  %v564_v13 = vld [vmem:[#allocation11 + $0x188] sm:$0xff]  ;;  %v542_v3 = vld [vmem:[#allocation11 + $0xd8] sm:$0xff] }
 0x1bf   :  { %v6967_v14 = vcombine.high %v563_v11, %v567_v12  ;;  %v568_v15 = vld [vmem:[#allocation11 + $0x1a8] sm:$0xff]  ;;  %v6966_v16 = vcombine.low %v563_v11, %v567_v12  ;;  %v571_v19 = vld [vmem:[#allocation11 + $0x1c0] sm:$0xff]  ;;  %v550_v11 = vld [vmem:[#allocation11 + $0x118] sm:$0xff] }
 0x1c0   :  { %v6968_v17 = vcombine.low %v564_v13, %v568_v15  ;;  %v6969_v18 = vcombine.high %v564_v13, %v568_v15  ;;  %v572_v21 = vld [vmem:[#allocation11 + $0x1c8] sm:$0xff]  ;;  %v554_v12 = vld [vmem:[#allocation11 + $0x138] sm:$0xff] }
 0x1c1   :  { %946 = vmatpush1.bf16.msra.mxu0 %v6934_v27  ;;  %v576_v23 = vld [vmem:[#allocation11 + $0x1e8] sm:$0xff]  ;;  %v517_v27 = vld [vmem:[#allocation11 + $0x10] sm:$0xff] }
 0x1c2   :  { %947 = vmatprep.subr.bf16.mxu0 %v6943_v30  ;;  %v6976_v25 = vcombine.low %v572_v21, %v576_v23  ;;  %v6977_v26 = vcombine.high %v572_v21, %v576_v23  ;;  %v6923_v30 = vcombine.high %v517_v27, %v521_v28  ;;  %v6922_v32 = vcombine.low %v517_v27, %v521_v28  ;;  %v566_v27 = vld [vmem:[#allocation11 + $0x198] sm:$0xff] }
 0x1c3   :  { %v570_v28 = vld [vmem:[#allocation11 + $0x1b8] sm:$0xff] }
 0x1c5   :  { %948 = vmatpush1.bf16.msra.mxu0 %v6942_v31  ;;  %v522_v31 = vld [vmem:[#allocation11 + $0x38] sm:$0xff] }
 0x1c6   :  { %949 = vmatprep.subr.bf16.mxu0 %v6951_v34  ;;  %v6924_v33 = vcombine.low %v518_v29, %v522_v31  ;;  %v6925_v34 = vcombine.high %v518_v29, %v522_v31 }
 0x1c9   :  { %950 = vmatpush1.bf16.msra.mxu0 %v6950_v35  ;;  %v8609_v35 = vmov 0  }
 0x1ca   :  { %951 = vmatprep.subr.bf16.mxu0 %v6959_v38  ;;  %973 = vmatprep.mubr.bf16.mxu0 %v8609_v35 }
 0x1cd   :  { %952 = vmatpush1.bf16.msra.mxu0 %v6958_v39 }
 0x1ce   :  { %953 = vmatprep.subr.bf16.mxu0 %v6967_v14 }
 0x1d1   :  { %954 = vmatpush1.bf16.msra.mxu0 %v6966_v16  ;;  %v6957_v16 = vcombine.high %v550_v11, %v554_v12 }
 0x28b   :  { %v7750_v41 = vpop.f32.mrb[0].mxu0 }
 0x28c   :  { %v402_v42 = vadd.f32 %v7750_v41, %v6908_v40  ;;  %v393_v43 = vpop.f32.mrb[1].mxu0 }
 0x28d   :  { %v394_v44 = vadd.f32 %v6908_v40, %v393_v43  ;;  %v7751_v45 = vpop.f32.mrb[2].mxu0 }
 0x28e   :  { %v405_v46 = vadd.f32 %v7751_v45, %v6908_v40  ;;  %v396_v47 = vpop.f32.mrb[3].mxu0  ;;  %v410_v49 = vmax.f32 %v402_v42, 0.0  ;;  %v525_v45 = vld [vmem:[#allocation11 + $0x50] sm:$0xff] }
 0x28f   :  { %v397_v48 = vadd.f32 %v6908_v40, %v396_v47  ;;  %v408_v51 = vmax.f32 %v394_v44, 0.0 }
 0x290   :  { %v411_v50 = vmax.f32 %v405_v46, 0.0 }
 0x291   :  { %v409_v52 = vmax.f32 %v397_v48, 0.0  ;;  %v529_v48 = vld [vmem:[#allocation11 + $0x70] sm:$0xff] }
 0x292   :  { %v413_v55 = vpack.c.bf16 %v411_v50, %v410_v49  ;;  %v526_v49 = vld [vmem:[#allocation11 + $0x58] sm:$0xff] }
 0x293   :  { %v412_v56 = vpack.c.bf16 %v409_v52, %v408_v51  ;;  %v530_v50 = vld [vmem:[#allocation11 + $0x78] sm:$0xff] }
 0x294   :  { %v6932_v62 = vcombine.low %v526_v49, %v530_v50 }
 0x295   :  { %7760 = vmatprep.mubr.msk.bf16.mxu1 %vm453_vm2, %v412_v56  ;;  %v6933_v56 = vcombine.high %v526_v49, %v530_v50  ;;  %v7842_v49 = vld [vmem:[#allocation17] sm:$0xff]   ;;  %v7843_v50 = vld [vmem:[#allocation17 + $0x8] sm:$0xff]  }
 0x296   :  { %7761 = vmatmul.mubr.msk.bf16.vlgmr.msra.gmra.mrb[0].mxu1 %vm453_vm2, %v413_v55  ;;  %v6931_v55 = vcombine.high %v525_v45, %v529_v48 }
 0x297   :  { %995 = vmatpush1.bf16.msra.mxu1 %v6920_v20  ;;  %v575_v20 = vld [vmem:[#allocation11 + $0x1e0] sm:$0xff]  ;;  %1026 = vmatprep.mubr.bf16.mxu1 %v8609_v35 }
 0x298   :  { %996 = vmatprep.subr.bf16.mxu1 %v6929_v57  ;;  %v6975_v22 = vcombine.high %v571_v19, %v575_v20  ;;  %v6974_v24 = vcombine.low %v571_v19, %v575_v20  ;;  %v533_v57 = vld [vmem:[#allocation11 + $0x90] sm:$0xff]  ;;  %v558_v19 = vld [vmem:[#allocation11 + $0x158] sm:$0xff] }
 0x299   :  { %v6939_v63 = vcombine.high %v533_v57, %v537_v58  ;;  %v562_v20 = vld [vmem:[#allocation11 + $0x178] sm:$0xff] }
 0x29a   :  { %955 = vmatprep.subr.bf16.mxu0 %v6975_v22  ;;  %v6956_v22 = vcombine.low %v550_v11, %v554_v12 }
 0x29b   :  { %997 = vmatpush1.bf16.msra.mxu1 %v6928_v60  ;;  %956 = vmatpush1.bf16.msra.mxu0 %v6974_v24  ;;  %v538_v60 = vld [vmem:[#allocation11 + $0xb8] sm:$0xff]  ;;  %v6965_v24 = vcombine.high %v558_v19, %v562_v20 }
 0x29c   :  { %998 = vmatprep.subr.bf16.mxu1 %v6937_v61  ;;  %1047 = vmatprep.subr.bf16.mxu0 %v6923_v30  ;;  %v6930_v61 = vcombine.low %v525_v45, %v529_v48  ;;  %v6940_v6 = vcombine.low %v534_v59, %v538_v60  ;;  %v6964_v30 = vcombine.low %v558_v19, %v562_v20  ;;  %v8610_v45 = vmov 0.0  }
 0x29f   :  { %999 = vmatpush1.bf16.msra.mxu1 %v6936_v0  ;;  %v6941_v0 = vcombine.high %v534_v59, %v538_v60  ;;  %v9080_v59 = vld [vmem:[#allocation13] sm:$0xff] }
 0x2a0   :  { %1000 = vmatprep.subr.bf16.mxu1 %v6945_v1  ;;  %v541_v1 = vld [vmem:[#allocation11 + $0xd0] sm:$0xff] }
 0x2a1   :  { %v6947_v7 = vcombine.high %v541_v1, %v545_v2  ;;  %v6946_v13 = vcombine.low %v541_v1, %v545_v2 }
 0x2a3   :  { %1001 = vmatpush1.bf16.msra.mxu1 %v6944_v4  ;;  %v546_v4 = vld [vmem:[#allocation11 + $0xf8] sm:$0xff] }
 0x2a4   :  { %1002 = vmatprep.subr.bf16.mxu1 %v6953_v5  ;;  %v6938_v5 = vcombine.low %v533_v57, %v537_v58  ;;  %v6948_v14 = vcombine.low %v542_v3, %v546_v4 }
 0x2a7   :  { %1003 = vmatpush1.bf16.msra.mxu1 %v6952_v8  ;;  %v6949_v8 = vcombine.high %v542_v3, %v546_v4 }
 0x2a8   :  { %1004 = vmatprep.subr.bf16.mxu1 %v6961_v9  ;;  %v549_v9 = vld [vmem:[#allocation11 + $0x110] sm:$0xff] }
 0x2ab   :  { %1005 = vmatpush1.bf16.msra.mxu1 %v6960_v10  ;;  %v553_v10 = vld [vmem:[#allocation11 + $0x130] sm:$0xff] }
 0x2ac   :  { %1006 = vmatprep.subr.bf16.mxu1 %v6969_v18  ;;  %v6955_v15 = vcombine.high %v549_v9, %v553_v10  ;;  %v561_v18 = vld [vmem:[#allocation11 + $0x170] sm:$0xff]  ;;  %v6954_v21 = vcombine.low %v549_v9, %v553_v10 }
 0x2af   :  { %1007 = vmatpush1.bf16.msra.mxu1 %v6968_v17  ;;  %v557_v17 = vld [vmem:[#allocation11 + $0x150] sm:$0xff] }
 0x2b0   :  { %1008 = vmatprep.subr.bf16.mxu1 %v6977_v26  ;;  %v6963_v23 = vcombine.high %v557_v17, %v561_v18  ;;  %v569_v26 = vld [vmem:[#allocation11 + $0x1b0] sm:$0xff]  ;;  %v6962_v29 = vcombine.low %v557_v17, %v561_v18 }
 0x2b3   :  { %1009 = vmatpush1.bf16.msra.mxu1 %v6976_v25  ;;  %v565_v25 = vld [vmem:[#allocation11 + $0x190] sm:$0xff] }
 0x2b4   :  { %1100 = vmatprep.subr.bf16.mxu1 %v6925_v34  ;;  %v6971_v31 = vcombine.high %v565_v25, %v569_v26  ;;  %v577_v34 = vld [vmem:[#allocation11 + $0x1f0] sm:$0xff] }
 0x369   :  { %v7762_v37 = vpop.f32.mrb[0].mxu1 }
 0x36a   :  { %v503_v38 = vadd.f32 %v7762_v37, %v6911_v36  ;;  %v494_v39 = vpop.f32.mrb[1].mxu1  ;;  %v578_v37 = vld [vmem:[#allocation11 + $0x1f8] sm:$0xff] }
 0x36b   :  { %v495_v40 = vadd.f32 %v6911_v36, %v494_v39  ;;  %v7763_v41 = vpop.f32.mrb[2].mxu1  ;;  %v6972_v39 = vcombine.low %v566_v27, %v570_v28 }
 0x36c   :  { %v506_v42 = vadd.f32 %v7763_v41, %v6911_v36  ;;  %v497_v43 = vpop.f32.mrb[3].mxu1  ;;  %v511_v46 = vmax.f32 %v503_v38, 0.0  ;;  %v6970_v38 = vcombine.low %v565_v25, %v569_v26 }
 0x36d   :  { %v498_v44 = vadd.f32 %v6911_v36, %v497_v43  ;;  %v509_v51 = vmax.f32 %v495_v40, 0.0  ;;  %v574_v36 = vld [vmem:[#allocation11 + $0x1d8] sm:$0xff] }
 0x36e   :  { %v512_v47 = vmax.f32 %v506_v42, 0.0  ;;  %v6981_v41 = vcombine.high %v574_v36, %v578_v37  ;;  %v6980_v43 = vcombine.low %v574_v36, %v578_v37 }
 0x36f   :  { %v510_v52 = vmax.f32 %v498_v44, 0.0  ;;  %v1267_v44 = vld [vmem:[#allocation14] sm:$0xf] }
 0x370   :  { %v9037_v53 = vpack.c.bf16 %v512_v47, %v511_v46  ;;  %v1279_v46 = vsel %vm355_vm0, %v1267_v44, 0  ;;  %v1265_v47 = vld [vmem:[#allocation2] sm:$0x3] }
 0x371   :  { %v9039_v54 = vpack.c.bf16 %v510_v52, %v509_v51  ;;  %v1266_v48 = vpack.c.bf16 %v1265_v47, %v1265_v47  ;;  %v7844_v51 = vld [vmem:[#allocation17 + $0x10] sm:$0xff]   ;;  %v7845_v52 = vld [vmem:[#allocation17 + $0x18] sm:$0xff]  }
 0x373   :  { %974 = vmatmul.mubr.bf16.vlgmr.msra.gmra.mrb[4].mxu0 %v9039_v54  ;;  %1027 = vmatmul.mubr.bf16.vlgmr.msra.gmra.mrb[4].mxu1 %v9039_v54 }
 0x374   :  { %1048 = vmatpush1.bf16.msra.mxu0 %v6922_v32  ;;  %1101 = vmatpush1.bf16.msra.mxu1 %v6924_v33  ;;  %v6973_v32 = vcombine.high %v566_v27, %v570_v28  ;;  %v573_v33 = vld [vmem:[#allocation11 + $0x1d0] sm:$0xff] }
 0x375   :  { %1049 = vmatprep.subr.bf16.mxu0 %v6931_v55  ;;  %1102 = vmatprep.subr.bf16.mxu1 %v6933_v56  ;;  %v6979_v40 = vcombine.high %v573_v33, %v577_v34  ;;  %v6978_v42 = vcombine.low %v573_v33, %v577_v34  ;;  %v581_v55 = vlaneseq }
 0x376   :  { %983 = vmatprep.mubr.bf16.mxu0 %v8609_v35  ;;  %1036 = vmatprep.mubr.bf16.mxu1 %v8609_v35 }
 0x377   :  { %v9074_v56 = vshrl.u32 %v581_v55, 7 }
 0x378   :  { %1050 = vmatpush1.bf16.msra.mxu0 %v6930_v61  ;;  %1103 = vmatpush1.bf16.msra.mxu1 %v6932_v62 }
 0x379   :  { %1051 = vmatprep.subr.bf16.mxu0 %v6939_v63  ;;  %1104 = vmatprep.subr.bf16.mxu1 %v6941_v0  ;;  %v9077_v57 = vsub.s32 0, %v9074_v56  ;;  %v591_v58 = vsub.s32 2, %v9074_v56  ;;  %v9083_v60 = vsub.s32 1, %v9074_v56  ;;  %v595_v61 = vsub.s32 3, %v9074_v56 }
 0x37b   :  { %984 = vmatmul.mubr.bf16.gmra.mrb[8].mxu0 %v9037_v53  ;;  %1037 = vmatmul.mubr.bf16.gmra.mrb[8].mxu1 %v9037_v53  ;;  %v584_v62 = vrot.slane %v9080_v59, %v9077_v57  ;;  %v592_v63 = vrot.slane %v9080_v59, %v591_v58  ;;  %v588_v2 = vrot.slane %v9080_v59, %v9083_v60 }
 0x37c   :  { %1052 = vmatpush1.bf16.msra.mxu0 %v6938_v5  ;;  %1105 = vmatpush1.bf16.msra.mxu1 %v6940_v6  ;;  %v596_v3 = vrot.slane %v9080_v59, %v595_v61 }
 0x37d   :  { %1053 = vmatprep.subr.bf16.mxu0 %v6947_v7  ;;  %1106 = vmatprep.subr.bf16.mxu1 %v6949_v8 }
 0x37e   :  { %1079 = vmatprep.mubr.bf16.mxu0 %v8609_v35  ;;  %1132 = vmatprep.mubr.bf16.mxu1 %v8609_v35 }
 0x380   :  { %1054 = vmatpush1.bf16.msra.mxu0 %v6946_v13  ;;  %1107 = vmatpush1.bf16.msra.mxu1 %v6948_v14 }
 0x381   :  { %1055 = vmatprep.subr.bf16.mxu0 %v6955_v15  ;;  %1108 = vmatprep.subr.bf16.mxu1 %v6957_v16 }
 0x384   :  { %1056 = vmatpush1.bf16.msra.mxu0 %v6954_v21  ;;  %1109 = vmatpush1.bf16.msra.mxu1 %v6956_v22 }
 0x385   :  { %1057 = vmatprep.subr.bf16.mxu0 %v6963_v23  ;;  %1110 = vmatprep.subr.bf16.mxu1 %v6965_v24 }
 0x388   :  { %1058 = vmatpush1.bf16.msra.mxu0 %v6962_v29  ;;  %1111 = vmatpush1.bf16.msra.mxu1 %v6964_v30 }
 0x389   :  { %1059 = vmatprep.subr.bf16.mxu0 %v6971_v31  ;;  %1112 = vmatprep.subr.bf16.mxu1 %v6973_v32 }
 0x38c   :  { %1060 = vmatpush1.bf16.msra.mxu0 %v6970_v38  ;;  %1113 = vmatpush1.bf16.msra.mxu1 %v6972_v39 }
 0x38d   :  { %1061 = vmatprep.subr.bf16.mxu0 %v6979_v40  ;;  %1114 = vmatprep.subr.bf16.mxu1 %v6981_v41 }
 0x390   :  { %1062 = vmatpush1.bf16.msra.mxu0 %v6978_v42  ;;  %1115 = vmatpush1.bf16.msra.mxu1 %v6980_v43 }
 0x391   :  { %7764 = vmatprep.subr.bf16.mxu0 %v8610_v45  ;;  %7770 = vmatprep.subr.bf16.mxu1 %v8610_v45 }
 0x393   :  { %1080 = vmatmul.mubr.bf16.vlgmr.msra.gmra.mrb[12].mxu0 %v9039_v54  ;;  %1133 = vmatmul.mubr.bf16.vlgmr.msra.gmra.mrb[12].mxu1 %v9039_v54  ;;  %v7847_v54 = vld [vmem:[%s9369_s13 + $0x8] sm:$0xff]  }
 0x394   :  { %7765 = vmatpush3.bf16.msra.mxu0 %v1279_v46  ;;  %1089 = vmatprep.mubr.bf16.mxu0 %v8609_v35 }
 0x395   :  { %1142 = vmatprep.mubr.bf16.mxu1 %v8609_v35  ;;  %7782 = vmatprep.subr.bf16.mxu0 %v8610_v45 }
 0x396   :  { %7771 = vmatpush3.bf16.msra.mxu1 %v7842_v49 }
 0x397   :  { %7772 = vmatprep.subr.bf16.mxu1 %v8610_v45 }
 0x39a   :  { %7773 = vmatpush3.bf16.msra.mxu1 %v7843_v50 }
 0x39b   :  { %1090 = vmatmul.mubr.bf16.gmra.mrb[16].mxu0 %v9037_v53  ;;  %1143 = vmatmul.mubr.bf16.gmra.mrb[16].mxu1 %v9037_v53  ;;  %v7846_v53 = vld [vmem:[%s9369_s13] sm:$0xff]  }
 0x39c   :  { %7766 = vmatprep.mubr.msk.bf16.mxu0 %vm8611_vm3, %v8610_v45  ;;  %7778 = vmatprep.mubr.msk.bf16.mxu1 %vm8611_vm3, %v8610_v45 }
 0x39d   :  { %7774 = vmatprep.subr.bf16.mxu1 %v8610_v45 }
 0x39e   :  { %7775 = vmatpush3.bf16.msra.mxu1 %v7844_v51 }
 0x39f   :  { %7776 = vmatprep.subr.bf16.mxu1 %v8610_v45 }
 0x3a2   :  { %7777 = vmatpush3.bf16.msra.mxu1 %v7845_v52 }
 0x3a3   :  { %7767 = vmatmul.mubr.msk.bf16.vlgmr.msra.gmra.mrb[20].mxu0 %vm348_vm1, %v1266_v48 }
 0x3a4   :  { %7790 = vmatprep.mubr.msk.bf16.mxu0 %vm8611_vm3, %v8610_v45  ;;  %7783 = vmatpush3.bf16.msra.mxu0 %v7846_v53 }
 0x3a5   :  { %7784 = vmatprep.subr.bf16.mxu0 %v8610_v45 }
 0x3a8   :  { %7785 = vmatpush3.bf16.msra.mxu0 %v7847_v54 }
 0x3a9   :  { %7786 = vmatprep.subr.bf16.mxu0 %v8610_v45 }
 0x446   :  { %v975_v0 = vpop.f32.mrb[4].mxu0  ;;  %v1028_v1 = vpop.f32.mrb[4].mxu1 }
 0x447   :  { %v977_v4 = vpop.f32.mrb[5].mxu0  ;;  %v1030_v5 = vpop.f32.mrb[5].mxu1  ;;  %v976_v8 = vadd.f32 %v975_v0, %v584_v62  ;;  %v1029_v9 = vadd.f32 %v1028_v1, %v592_v63 }
 0x448   :  { %v979_v6 = vpop.f32.mrb[6].mxu0  ;;  %v1032_v7 = vpop.f32.mrb[6].mxu1  ;;  %v978_v14 = vadd.f32 %v977_v4, %v588_v2  ;;  %v1031_v15 = vadd.f32 %v1030_v5, %v596_v3 }
 0x449   :  { %v980_v10 = vadd.f32 %v979_v6, %v584_v62  ;;  %v1033_v11 = vadd.f32 %v1032_v7, %v592_v63  ;;  %v981_v12 = vpop.f32.mrb[7].mxu0  ;;  %v1034_v13 = vpop.f32.mrb[7].mxu1 }
 0x44a   :  { %v982_v16 = vadd.f32 %v981_v12, %v588_v2  ;;  %v1035_v17 = vadd.f32 %v1034_v13, %v596_v3 }
 0x44b   :  { %v1153_v18 = vmax.f32 %v976_v8, %v980_v10  ;;  %v1167_v19 = vmax.f32 %v1029_v9, %v1033_v11 }
 0x44c   :  { %v1160_v20 = vmax.f32 %v978_v14, %v982_v16  ;;  %v1174_v21 = vmax.f32 %v1031_v15, %v1035_v17 }
 0x44d   :  { %v1154_v22 = vrot.slane %v1153_v18, 4  ;;  %v1168_v23 = vrot.slane %v1167_v19, 4 }
 0x44e   :  { %v1161_v24 = vrot.slane %v1160_v20, 4  ;;  %v1175_v25 = vrot.slane %v1174_v21, 4  ;;  %v985_v26 = vpop.f32.mrb[8].mxu0  ;;  %v1038_v27 = vpop.f32.mrb[8].mxu1 }
 0x44f   :  { %v1155_v28 = vmax.f32 %v1153_v18, %v1154_v22  ;;  %v1169_v29 = vmax.f32 %v1167_v19, %v1168_v23  ;;  %v986_v30 = vadd.f32 %v985_v26, %v584_v62  ;;  %v1039_v31 = vadd.f32 %v1038_v27, %v592_v63  ;;  %v987_v32 = vpop.f32.mrb[9].mxu0  ;;  %v1040_v33 = vpop.f32.mrb[9].mxu1 }
 0x450   :  { %v1162_v34 = vmax.f32 %v1160_v20, %v1161_v24  ;;  %v1176_v36 = vmax.f32 %v1174_v21, %v1175_v25  ;;  %v988_v37 = vadd.f32 %v987_v32, %v588_v2  ;;  %v1041_v38 = vadd.f32 %v1040_v33, %v596_v3  ;;  %v989_v39 = vpop.f32.mrb[10].mxu0  ;;  %v1042_v40 = vpop.f32.mrb[10].mxu1 }
 0x451   :  { %v1156_v41 = vrot.slane %v1155_v28, 2  ;;  %v1170_v42 = vrot.slane %v1169_v29, 2  ;;  %v990_v43 = vadd.f32 %v989_v39, %v584_v62  ;;  %v1043_v44 = vadd.f32 %v1042_v40, %v592_v63  ;;  %v991_v46 = vpop.f32.mrb[11].mxu0  ;;  %v1044_v47 = vpop.f32.mrb[11].mxu1 }
 0x452   :  { %v1163_v48 = vrot.slane %v1162_v34, 2  ;;  %v1177_v49 = vrot.slane %v1176_v36, 2  ;;  %v992_v50 = vadd.f32 %v991_v46, %v588_v2  ;;  %v1045_v51 = vadd.f32 %v1044_v47, %v596_v3 }
 0x453   :  { %v1157_v52 = vmax.f32 %v1155_v28, %v1156_v41  ;;  %v1171_v53 = vmax.f32 %v1169_v29, %v1170_v42  ;;  %v1209_v54 = vmax.f32 %v986_v30, %v990_v43  ;;  %v1223_v55 = vmax.f32 %v1039_v31, %v1043_v44 }
 0x454   :  { %v1164_v0 = vmax.f32 %v1162_v34, %v1163_v48  ;;  %v1178_v1 = vmax.f32 %v1176_v36, %v1177_v49  ;;  %v1216_v4 = vmax.f32 %v988_v37, %v992_v50  ;;  %v1230_v5 = vmax.f32 %v1041_v38, %v1045_v51 }
 0x455   :  { %v1210_v6 = vrot.slane %v1209_v54, 4  ;;  %v1224_v7 = vrot.slane %v1223_v55, 4  ;;  %v1158_v62 = vrot.slane %v1157_v52, 1  ;;  %v1172_v63 = vrot.slane %v1171_v53, 1 }
 0x456   :  { %v1217_v8 = vrot.slane %v1216_v4, 4  ;;  %v1231_v9 = vrot.slane %v1230_v5, 4  ;;  %v1165_v12 = vrot.slane %v1164_v0, 1  ;;  %v1179_v13 = vrot.slane %v1178_v1, 1 }
 0x457   :  { %v1211_v10 = vmax.f32 %v1209_v54, %v1210_v6  ;;  %v1225_v11 = vmax.f32 %v1223_v55, %v1224_v7  ;;  %v1159_v18 = vmax.f32 %v1157_v52, %v1158_v62  ;;  %v1173_v19 = vmax.f32 %v1171_v53, %v1172_v63 }
 0x458   :  { %v1218_v2 = vmax.f32 %v1216_v4, %v1217_v8  ;;  %v1232_v3 = vmax.f32 %v1230_v5, %v1231_v9  ;;  %v1166_v22 = vmax.f32 %v1164_v0, %v1165_v12  ;;  %v1180_v23 = vmax.f32 %v1178_v1, %v1179_v13 }
 0x459   :  { %v1212_v14 = vrot.slane %v1211_v10, 2  ;;  %v1226_v15 = vrot.slane %v1225_v11, 2  ;;  %v599_v30 = vsub.s32 4, %v9074_v56  ;;  %v1489_v31 = vpack.c.bf16 %v1159_v18, %v1159_v18 }
 0x45a   :  { %v1219_v16 = vrot.slane %v1218_v2, 2  ;;  %v1233_v17 = vrot.slane %v1232_v3, 2  ;;  %v1491_v32 = vpack.c.bf16 %v1173_v19, %v1173_v19  ;;  %v1490_v36 = vpack.c.bf16 %v1166_v22, %v1166_v22 }
 0x45b   :  { %v1213_v20 = vmax.f32 %v1211_v10, %v1212_v14  ;;  %v1227_v21 = vmax.f32 %v1225_v11, %v1226_v15  ;;  %v1492_v37 = vpack.c.bf16 %v1180_v23, %v1180_v23  ;;  %v607_v42 = vsub.s32 6, %v9074_v56 }
 0x45c   :  { %v1220_v24 = vmax.f32 %v1218_v2, %v1219_v16  ;;  %v1234_v25 = vmax.f32 %v1232_v3, %v1233_v17  ;;  %v603_v43 = vsub.s32 5, %v9074_v56  ;;  %v611_v47 = vsub.s32 7, %v9074_v56  ;;  %v8058_v56 = vld [vmem:[#allocation32 + $0xc0] sm:$0xff]  }
 0x45d   :  { %v1214_v26 = vrot.slane %v1213_v20, 1  ;;  %v1228_v27 = vrot.slane %v1227_v21, 1  ;;  %v2250_v48 = vunpack.c.l.b16 %v1489_v31  ;;  %v2252_v49 = vunpack.c.l.b16 %v1491_v32 }
 0x45e   :  { %v1221_v28 = vrot.slane %v1220_v24, 1  ;;  %v1235_v29 = vrot.slane %v1234_v25, 1  ;;  %v2251_v52 = vunpack.c.l.b16 %v1490_v36  ;;  %v2253_v53 = vunpack.c.l.b16 %v1492_v37 }
 0x45f   :  { %v1215_v33 = vmax.f32 %v1213_v20, %v1214_v26  ;;  %v1229_v34 = vmax.f32 %v1227_v21, %v1228_v27  ;;  %v600_v0 = vrot.slane %v9080_v59, %v599_v30  ;;  %v608_v1 = vrot.slane %v9080_v59, %v607_v42 }
 0x460   :  { %v1222_v38 = vmax.f32 %v1220_v24, %v1221_v28  ;;  %v1236_v39 = vmax.f32 %v1234_v25, %v1235_v29  ;;  %v604_v8 = vrot.slane %v9080_v59, %v603_v43  ;;  %v612_v9 = vrot.slane %v9080_v59, %v611_v47 }
 0x461   :  { %v1497_v40 = vpack.c.bf16 %v1215_v33, %v1215_v33  ;;  %v1499_v41 = vpack.c.bf16 %v1229_v34, %v1229_v34 }
 0x462   :  { %v1498_v44 = vpack.c.bf16 %v1222_v38, %v1222_v38  ;;  %v1500_v46 = vpack.c.bf16 %v1236_v39, %v1236_v39 }
 0x463   :  { %v2258_v50 = vunpack.c.l.b16 %v1497_v40  ;;  %v2260_v51 = vunpack.c.l.b16 %v1499_v41 }
 0x464   :  { %v2259_v54 = vunpack.c.l.b16 %v1498_v44  ;;  %v2261_v55 = vunpack.c.l.b16 %v1500_v46 }
 0x465   :  { %v9107_v4 = vsel %vm2266_vm4, %v2258_v50, %v2250_v48  ;;  %v9110_v5 = vsel %vm2266_vm4, %v2260_v51, %v2252_v49 }
 0x466   :  { %v1081_v6 = vpop.f32.mrb[12].mxu0  ;;  %v1134_v7 = vpop.f32.mrb[12].mxu1  ;;  %v9119_v62 = vsel %vm2266_vm4, %v2259_v54, %v2251_v52  ;;  %v9122_v63 = vsel %vm2266_vm4, %v2261_v55, %v2253_v53 }
 0x467   :  { %v1083_v10 = vpop.f32.mrb[13].mxu0  ;;  %v1136_v11 = vpop.f32.mrb[13].mxu1  ;;  %v1082_v2 = vadd.f32 %v1081_v6, %v600_v0  ;;  %v1135_v3 = vadd.f32 %v1134_v7, %v608_v1 }
 0x468   :  { %v1085_v12 = vpop.f32.mrb[14].mxu0  ;;  %v1138_v13 = vpop.f32.mrb[14].mxu1  ;;  %v1084_v18 = vadd.f32 %v1083_v10, %v604_v8  ;;  %v1137_v19 = vadd.f32 %v1136_v11, %v612_v9 }
 0x469   :  { %v1086_v14 = vadd.f32 %v1085_v12, %v600_v0  ;;  %v1139_v15 = vadd.f32 %v1138_v13, %v608_v1  ;;  %v1087_v16 = vpop.f32.mrb[15].mxu0  ;;  %v1140_v17 = vpop.f32.mrb[15].mxu1 }
 0x46a   :  { %v1088_v20 = vadd.f32 %v1087_v16, %v604_v8  ;;  %v1141_v59 = vadd.f32 %v1140_v17, %v612_v9 }
 0x46b   :  { %v1181_v21 = vmax.f32 %v1082_v2, %v1086_v14  ;;  %v1195_v22 = vmax.f32 %v1135_v3, %v1139_v15 }
 0x46c   :  { %v1188_v23 = vmax.f32 %v1084_v18, %v1088_v20  ;;  %v1202_v24 = vmax.f32 %v1137_v19, %v1141_v59 }
 0x46d   :  { %v1182_v25 = vrot.slane %v1181_v21, 4  ;;  %v1196_v26 = vrot.slane %v1195_v22, 4 }
 0x46e   :  { %v1189_v27 = vrot.slane %v1188_v23, 4  ;;  %v1203_v28 = vrot.slane %v1202_v24, 4  ;;  %v1091_v29 = vpop.f32.mrb[16].mxu0  ;;  %v1144_v31 = vpop.f32.mrb[16].mxu1 }
 0x46f   :  { %v1183_v32 = vmax.f32 %v1181_v21, %v1182_v25  ;;  %v1197_v33 = vmax.f32 %v1195_v22, %v1196_v26  ;;  %v1092_v34 = vadd.f32 %v1091_v29, %v600_v0  ;;  %v1145_v36 = vadd.f32 %v1144_v31, %v608_v1  ;;  %v1093_v37 = vpop.f32.mrb[17].mxu0  ;;  %v1146_v38 = vpop.f32.mrb[17].mxu1 }
 0x470   :  { %v1190_v39 = vmax.f32 %v1188_v23, %v1189_v27  ;;  %v1204_v40 = vmax.f32 %v1202_v24, %v1203_v28  ;;  %v1094_v41 = vadd.f32 %v1093_v37, %v604_v8  ;;  %v1147_v44 = vadd.f32 %v1146_v38, %v612_v9  ;;  %v1095_v46 = vpop.f32.mrb[18].mxu0  ;;  %v1148_v48 = vpop.f32.mrb[18].mxu1 }
 0x471   :  { %v1184_v49 = vrot.slane %v1183_v32, 2  ;;  %v1198_v50 = vrot.slane %v1197_v33, 2  ;;  %v1096_v51 = vadd.f32 %v1095_v46, %v600_v0  ;;  %v1149_v52 = vadd.f32 %v1148_v48, %v608_v1  ;;  %v1097_v53 = vpop.f32.mrb[19].mxu0  ;;  %v1150_v54 = vpop.f32.mrb[19].mxu1 }
 0x472   :  { %v1191_v55 = vrot.slane %v1190_v39, 2  ;;  %v1205_v6 = vrot.slane %v1204_v40, 2  ;;  %v1098_v7 = vadd.f32 %v1097_v53, %v604_v8  ;;  %v1151_v10 = vadd.f32 %v1150_v54, %v612_v9 }
 0x473   :  { %v1185_v11 = vmax.f32 %v1183_v32, %v1184_v49  ;;  %v1199_v12 = vmax.f32 %v1197_v33, %v1198_v50  ;;  %v1237_v13 = vmax.f32 %v1092_v34, %v1096_v51  ;;  %v1251_v2 = vmax.f32 %v1145_v36, %v1149_v52  ;;  %v6982_v34 = vld [vmem:[#allocation16] ss:$0 sm:$0xff] }
 0x474   :  { %v1192_v3 = vmax.f32 %v1190_v39, %v1191_v55  ;;  %v1206_v14 = vmax.f32 %v1204_v40, %v1205_v6  ;;  %v1244_v15 = vmax.f32 %v1094_v41, %v1098_v7  ;;  %v1258_v16 = vmax.f32 %v1147_v44, %v1151_v10 }
 0x475   :  { %v1238_v17 = vrot.slane %v1237_v13, 4  ;;  %v1252_v18 = vrot.slane %v1251_v2, 4  ;;  %v1186_v19 = vrot.slane %v1185_v11, 1  ;;  %v1200_v59 = vrot.slane %v1199_v12, 1 }
 0x476   :  { %v1245_v20 = vrot.slane %v1244_v15, 4  ;;  %v1259_v0 = vrot.slane %v1258_v16, 4  ;;  %v1315_v1 = vpop.f32.mrb[20].mxu0  ;;  %v1193_v8 = vrot.slane %v1192_v3, 1  ;;  %v1207_v9 = vrot.slane %v1206_v14, 1 }
 0x477   :  { %v1239_v21 = vmax.f32 %v1237_v13, %v1238_v17  ;;  %v1253_v22 = vmax.f32 %v1251_v2, %v1252_v18  ;;  %v7768_v23 = vpop.f32.mrb[21].mxu0  ;;  %v1187_v31 = vmax.f32 %v1185_v11, %v1186_v19  ;;  %v1201_v36 = vmax.f32 %v1199_v12, %v1200_v59 }
 0x478   :  { %v1246_v24 = vmax.f32 %v1244_v15, %v1245_v20  ;;  %v1260_v25 = vmax.f32 %v1258_v16, %v1259_v0  ;;  %v1318_v26 = vpop.f32.mrb[22].mxu0  ;;  %v1194_v39 = vmax.f32 %v1192_v3, %v1193_v8  ;;  %v1208_v40 = vmax.f32 %v1206_v14, %v1207_v9  ;;  %v7848_v9 = vld [vmem:[%s9369_s13 + $0x10] sm:$0xff]  }
 0x479   :  { %v1240_v27 = vrot.slane %v1239_v21, 2  ;;  %v1254_v28 = vrot.slane %v1253_v22, 2  ;;  %v7769_v29 = vpop.f32.mrb[23].mxu0  ;;  %v1316_v49 = vadd.f32 %v6982_v34, %v1315_v1  ;;  %v1493_v50 = vpack.c.bf16 %v1187_v31, %v1187_v31  ;;  %7787 = vmatpush3.bf16.msra.mxu0 %v7848_v9  ;;  %v2022_v26 = vld [vmem:[#allocation23 + $0x20] sm:$0xff]  ;;  %v2023_v31 = vld [vmem:[#allocation23 + $0x28] sm:$0xff] }
 0x47a   :  { %v1247_v32 = vrot.slane %v1246_v24, 2  ;;  %v1261_v33 = vrot.slane %v1260_v25, 2  ;;  %v1495_v53 = vpack.c.bf16 %v1201_v36, %v1201_v36  ;;  %v1494_v7 = vpack.c.bf16 %v1194_v39, %v1194_v39  ;;  %7788 = vmatprep.subr.bf16.mxu0 %v8610_v45  ;;  %v6984_v34 = vld [vmem:[#allocation19] ss:$0 sm:$0xff] }
 0x47b   :  { %v1241_v37 = vmax.f32 %v1239_v21, %v1240_v27  ;;  %v1255_v38 = vmax.f32 %v1253_v22, %v1254_v28  ;;  %v1321_v6 = vmax.f32 %v1316_v49, 0.0  ;;  %v1496_v10 = vpack.c.bf16 %v1208_v40, %v1208_v40  ;;  %v2019_v27 = vld [vmem:[#allocation23 + $0x8] sm:$0xff] }
 0x47c   :  { %v1248_v41 = vmax.f32 %v1246_v24, %v1247_v32  ;;  %v1262_v44 = vmax.f32 %v1260_v25, %v1261_v33  ;;  %v2254_v16 = vunpack.c.l.b16 %v1493_v50  ;;  %v2256_v17 = vunpack.c.l.b16 %v1495_v53  ;;  %v7849_v24 = vld [vmem:[%s9369_s13 + $0x18] sm:$0xff]  }
 0x47d   :  { %v1242_v46 = vrot.slane %v1241_v37, 1  ;;  %v1256_v48 = vrot.slane %v1255_v38, 1  ;;  %v1322_v3 = vpack.c.bf16 %v1321_v6, %v1321_v6  ;;  %v2255_v20 = vunpack.c.l.b16 %v1494_v7  ;;  %7789 = vmatpush3.bf16.msra.mxu0 %v7849_v24  ;;  %v2018_v25 = vld [vmem:[#allocation23] sm:$0xff] }
 0x47e   :  { %v1249_v51 = vrot.slane %v1248_v41, 1  ;;  %v1263_v52 = vrot.slane %v1262_v44, 1  ;;  %v2257_v0 = vunpack.c.l.b16 %v1496_v10  ;;  %v6996_v28 = vcombine.low %v2018_v25, %v2022_v26  ;;  %v1505_v6 = vld [vmem:[#allocation22] sm:$0xff] }
 0x47f   :  { %v1243_v54 = vmax.f32 %v1241_v37, %v1242_v46  ;;  %v1257_v55 = vmax.f32 %v1255_v38, %v1256_v48  ;;  %7779 = vmatmul.mubr.msk.bf16.vlgmr.msra.gmra.mrb[20].mxu1 %vm453_vm2, %v1322_v3  ;;  %v6997_v29 = vcombine.high %v2018_v25, %v2022_v26  ;;  %v6998_v32 = vcombine.low %v2019_v27, %v2023_v31  ;;  %v2024_v46 = vld [vmem:[#allocation23 + $0x30] sm:$0xff]  ;;  %v2021_v48 = vld [vmem:[#allocation23 + $0x18] sm:$0xff]  ;;  %v1525_v25 = vld [vmem:[#allocation22 + $0xa0] sm:$0xff] }
 0x480   :  { %v1250_v11 = vmax.f32 %v1248_v41, %v1249_v51  ;;  %v1264_v12 = vmax.f32 %v1262_v44, %v1263_v52  ;;  %2102 = vmatprep.mubr.bf16.mxu1 %v8609_v35  ;;  %v6999_v33 = vcombine.high %v2019_v27, %v2023_v31  ;;  %v2020_v44 = vld [vmem:[#allocation23 + $0x10] sm:$0xff]  ;;  %v2025_v51 = vld [vmem:[#allocation23 + $0x38] sm:$0xff]  ;;  %v1649_v26 = vld [vmem:[#allocation22 + $0x480] sm:$0xff] }
 0x481   :  { %v1501_v13 = vpack.c.bf16 %v1243_v54, %v1243_v54  ;;  %v1503_v2 = vpack.c.bf16 %v1257_v55, %v1257_v55  ;;  %2070 = vmatprep.subr.bf16.mxu1 %v6997_v29  ;;  %v7000_v49 = vcombine.low %v2020_v44, %v2024_v46  ;;  %v7001_v50 = vcombine.high %v2020_v44, %v2024_v46  ;;  %v6990_v54 = vld [vmem:[#allocation20] ss:$0 sm:$0xff]  ;;  %v1653_v27 = vld [vmem:[#allocation22 + $0x4a0] sm:$0xff] }
 0x482   :  { %v1502_v14 = vpack.c.bf16 %v1250_v11, %v1250_v11  ;;  %v1504_v15 = vpack.c.bf16 %v1264_v12, %v1264_v12  ;;  %2071 = vmatpush1.bf16.msra.mxu1 %v6996_v28  ;;  %2111 = vmatprep.subr.bf16.mxu0 %v6999_v33  ;;  %v7002_v52 = vcombine.low %v2021_v48, %v2025_v51  ;;  %v1509_v11 = vld [vmem:[#allocation22 + $0x20] sm:$0xff] }
 0x483   :  { %v2262_v18 = vunpack.c.l.b16 %v1501_v13  ;;  %v2264_v19 = vunpack.c.l.b16 %v1503_v2  ;;  %v7003_v53 = vcombine.high %v2021_v48, %v2025_v51  ;;  %2152 = vmatprep.subr.bf16.mxu1 %v7001_v50  ;;  %v1633_v12 = vld [vmem:[#allocation22 + $0x400] sm:$0xff]  ;;  %v9159_v28 = vpack.c.b16 %v9122_v63, %v9122_v63 }
 0x484   :  { %v2263_v1 = vunpack.c.l.b16 %v1502_v14  ;;  %v2265_v59 = vunpack.c.l.b16 %v1504_v15  ;;  %v1637_v13 = vld [vmem:[#allocation22 + $0x420] sm:$0xff]  ;;  %v7009_v15 = vcombine.high %v1505_v6, %v1509_v11  ;;  %v7153_v33 = vcombine.high %v1649_v26, %v1653_v27 }
 0x485   :  { %v9127_v21 = vsel %vm2266_vm4, %v2262_v18, %v2254_v16  ;;  %v9130_v22 = vsel %vm2266_vm4, %v2264_v19, %v2256_v17  ;;  %v7137_v16 = vcombine.high %v1633_v12, %v1637_v13  ;;  %v1513_v17 = vld [vmem:[#allocation22 + $0x40] sm:$0xff] }
 0x486   :  { %v9133_v23 = vsel %vm2266_vm4, %v2263_v1, %v2255_v20  ;;  %v9136_v8 = vsel %vm2266_vm4, %v2265_v59, %v2257_v0  ;;  %v1517_v18 = vld [vmem:[#allocation22 + $0x60] sm:$0xff]  ;;  %v7008_v0 = vcombine.low %v1505_v6, %v1509_v11  ;;  %v7136_v1 = vcombine.low %v1633_v12, %v1637_v13 }
 0x487   :  { %v1641_v19 = vld [vmem:[#allocation22 + $0x440] sm:$0xff]  ;;  %v7017_v9 = vcombine.high %v1513_v17, %v1517_v18  ;;  %v7016_v29 = vcombine.low %v1513_v17, %v1517_v18 }
 0x488   :  { %v1645_v20 = vld [vmem:[#allocation22 + $0x460] sm:$0xff] }
 0x489   :  { %v1521_v59 = vld [vmem:[#allocation22 + $0x80] sm:$0xff]  ;;  %v7145_v24 = vcombine.high %v1641_v19, %v1645_v20  ;;  %v7144_v31 = vcombine.low %v1641_v19, %v1645_v20 }
 0x48a   :  { %v7024_v63 = vcombine.low %v1521_v59, %v1525_v25  ;;  %v1665_v44 = vld [vmem:[#allocation22 + $0x500] sm:$0xff] }
 0x48b   :  { %v1669_v46 = vld [vmem:[#allocation22 + $0x520] sm:$0xff] }
 0x48c   :  { %v7169_v51 = vcombine.high %v1665_v44, %v1669_v46  ;;  %v1553_v12 = vld [vmem:[#allocation22 + $0x180] sm:$0xff] }
 0x48d   :  { %v1557_v13 = vld [vmem:[#allocation22 + $0x1a0] sm:$0xff] }
 0x48e   :  { %v1561_v18 = vld [vmem:[#allocation22 + $0x1c0] sm:$0xff] }
 0x48f   :  { %v1565_v19 = vld [vmem:[#allocation22 + $0x1e0] sm:$0xff] }
 0x490   :  { %v1689_v20 = vld [vmem:[#allocation22 + $0x5c0] sm:$0xff] }
 0x552   :  { %v1399_v36 = vpop.f32.mrb[20].mxu1 }
 0x553   :  { %v1400_v37 = vadd.f32 %v6984_v34, %v1399_v36  ;;  %v7780_v45 = vpop.f32.mrb[21].mxu1  ;;  %v1529_v34 = vld [vmem:[#allocation22 + $0xc0] sm:$0xff] }
 0x554   :  { %v1402_v38 = vpop.f32.mrb[22].mxu1  ;;  %v1533_v36 = vld [vmem:[#allocation22 + $0xe0] sm:$0xff]  ;;  %v7152_v45 = vcombine.low %v1649_v26, %v1653_v27 }
 0x555   :  { %v1405_v39 = vmax.f32 %v1400_v37, 0.0  ;;  %v7781_v40 = vpop.f32.mrb[23].mxu1  ;;  %v1661_v37 = vld [vmem:[#allocation22 + $0x4e0] sm:$0xff]  ;;  %v7033_v38 = vcombine.high %v1529_v34, %v1533_v36  ;;  %v7032_v48 = vcombine.low %v1529_v34, %v1533_v36 }
 0x556   :  { %v1537_v40 = vld [vmem:[#allocation22 + $0x100] sm:$0xff] }
 0x557   :  { %v1406_v41 = vpack.c.bf16 %v1405_v39, %v1405_v39  ;;  %v1573_v26 = vld [vmem:[#allocation22 + $0x220] sm:$0xff] }
 0x558   :  { %v1697_v27 = vld [vmem:[#allocation22 + $0x600] sm:$0xff] }
 0x559   :  { %7791 = vmatmul.mubr.msk.bf16.vlgmr.msra.gmra.mrb[24].mxu0 %vm453_vm2, %v1406_v41  ;;  %v1541_v41 = vld [vmem:[#allocation22 + $0x120] sm:$0xff] }
 0x55a   :  { %2112 = vmatpush1.bf16.msra.mxu0 %v6998_v32  ;;  %2143 = vmatprep.mubr.bf16.mxu0 %v8609_v35  ;;  %v7025_v32 = vcombine.high %v1521_v59, %v1525_v25  ;;  %v7041_v50 = vcombine.high %v1537_v40, %v1541_v41  ;;  %v7040_v6 = vcombine.low %v1537_v40, %v1541_v41  ;;  %v1569_v25 = vld [vmem:[#allocation22 + $0x200] sm:$0xff] }
 0x55b   :  { %2193 = vmatprep.subr.bf16.mxu0 %v7003_v53  ;;  %v1549_v53 = vld [vmem:[#allocation22 + $0x160] sm:$0xff] }
 0x55c   :  { %v1577_v36 = vld [vmem:[#allocation22 + $0x240] sm:$0xff] }
 0x55d   :  { %v1585_v41 = vld [vmem:[#allocation22 + $0x280] sm:$0xff] }
 0x62c   :  { %v1483_v55 = vpop.f32.mrb[24].mxu0 }
 0x62d   :  { %v1484_v7 = vadd.f32 %v6990_v54, %v1483_v55  ;;  %v7792_v10 = vpop.f32.mrb[25].mxu0  ;;  %v1673_v54 = vld [vmem:[#allocation22 + $0x540] sm:$0xff] }
 0x62e   :  { %v1486_v2 = vpop.f32.mrb[26].mxu0  ;;  %v1677_v55 = vld [vmem:[#allocation22 + $0x560] sm:$0xff] }
 0x62f   :  { %v2017_v3 = vpack.c.bf16 %v1484_v7, %v1484_v7  ;;  %v7793_v14 = vpop.f32.mrb[27].mxu0  ;;  %v7168_v7 = vcombine.low %v1665_v44, %v1669_v46  ;;  %v7177_v11 = vcombine.high %v1673_v54, %v1677_v55  ;;  %v1681_v2 = vld [vmem:[#allocation22 + $0x580] sm:$0xff] }
 0x630   :  { %v1589_v44 = vld [vmem:[#allocation22 + $0x2a0] sm:$0xff] }
 0x631   :  { %7004 = vmatmul.mubr.msk.bf16.vlgmr.msra.gmra.mrb[24].mxu1 %vm2066_vm5, %v2017_v3  ;;  %7005 = vmatmul.mubr.msk.bf16.vlgmr.msra.gmra.mrb[28].mxu0 %vm2066_vm5, %v2017_v3  ;;  %v1713_v46 = vld [vmem:[#allocation22 + $0x680] sm:$0xff] }
 0x632   :  { %2153 = vmatpush1.bf16.msra.mxu1 %v7000_v49  ;;  %2194 = vmatpush1.bf16.msra.mxu0 %v7002_v52  ;;  %v1545_v52 = vld [vmem:[#allocation22 + $0x140] sm:$0xff] }
 0x633   :  { %2184 = vmatprep.mubr.bf16.mxu1 %v8609_v35  ;;  %2225 = vmatprep.mubr.bf16.mxu0 %v8609_v35  ;;  %v9155_v35 = vpack.c.b16 %v9119_v62, %v9119_v62  ;;  %v1657_v62 = vld [vmem:[#allocation22 + $0x4c0] sm:$0xff]  ;;  %v7049_v10 = vcombine.high %v1545_v52, %v1549_v53  ;;  %v7048_v14 = vcombine.low %v1545_v52, %v1549_v53 }
 0x634   :  { %4851 = vmatprep.subr.bf16.mxu1 %v7009_v15  ;;  %4892 = vmatprep.subr.bf16.mxu0 %v7137_v16  ;;  %v7161_v39 = vcombine.high %v1657_v62, %v1661_v37  ;;  %v7160_v49 = vcombine.low %v1657_v62, %v1661_v37  ;;  %v7176_v15 = vcombine.low %v1673_v54, %v1677_v55  ;;  %v1581_v62 = vld [vmem:[#allocation22 + $0x260] sm:$0xff] }
 0x635   :  { %v7057_v16 = vcombine.high %v1553_v12, %v1557_v13  ;;  %v1705_v37 = vld [vmem:[#allocation22 + $0x640] sm:$0xff] }
 0x636   :  { %v1593_v53 = vld [vmem:[#allocation22 + $0x2c0] sm:$0xff] }
 0x637   :  { %v1597_v54 = vld [vmem:[#allocation22 + $0x2e0] sm:$0xff] }
 0x638   :  { %v1721_v55 = vld [vmem:[#allocation22 + $0x6c0] sm:$0xff] }
 0x639   :  { %7006 = vmatmul.mubr.msk.bf16.vlgmr.msra.gmra.mrb[28].mxu1 %vm2066_vm5, %v2017_v3  ;;  %7007 = vmatmul.mubr.msk.bf16.vlgmr.msra.gmra.mrb[32].mxu0 %vm2066_vm5, %v2017_v3  ;;  %v1685_v3 = vld [vmem:[#allocation22 + $0x5a0] sm:$0xff] }
 0x63a   :  { %4852 = vmatpush1.bf16.msra.mxu1 %v7008_v0  ;;  %4893 = vmatpush1.bf16.msra.mxu0 %v7136_v1  ;;  %v7185_v17 = vcombine.high %v1681_v2, %v1685_v3  ;;  %v1693_v0 = vld [vmem:[#allocation22 + $0x5e0] sm:$0xff]  ;;  %v7056_v1 = vcombine.low %v1553_v12, %v1557_v13  ;;  %v7184_v59 = vcombine.low %v1681_v2, %v1685_v3 }
 0x63b   :  { %4883 = vmatprep.mubr.bf16.mxu1 %v9155_v35  ;;  %4924 = vmatprep.mubr.bf16.mxu0 %v9159_v28  ;;  %v1601_v13 = vld [vmem:[#allocation22 + $0x300] sm:$0xff] }
 0x63c   :  { %4853 = vmatprep.subr.bf16.mxu1 %v7017_v9  ;;  %4894 = vmatprep.subr.bf16.mxu0 %v7145_v24  ;;  %v7065_v9 = vcombine.high %v1561_v18, %v1565_v19  ;;  %v7193_v24 = vcombine.high %v1689_v20, %v1693_v0  ;;  %v1605_v2 = vld [vmem:[#allocation22 + $0x320] sm:$0xff] }
 0x63d   :  { %v1729_v3 = vld [vmem:[#allocation22 + $0x700] sm:$0xff] }
 0x63e   :  { %4854 = vmatpush1.bf16.msra.mxu1 %v7016_v29  ;;  %4895 = vmatpush1.bf16.msra.mxu0 %v7144_v31  ;;  %v1701_v29 = vld [vmem:[#allocation22 + $0x620] sm:$0xff]  ;;  %v7064_v31 = vcombine.low %v1561_v18, %v1565_v19 }
 0x63f   :  { %4855 = vmatprep.subr.bf16.mxu1 %v7025_v32  ;;  %4896 = vmatprep.subr.bf16.mxu0 %v7153_v33  ;;  %v7192_v32 = vcombine.low %v1689_v20, %v1693_v0  ;;  %v7073_v33 = vcombine.high %v1569_v25, %v1573_v26  ;;  %v7201_v34 = vcombine.high %v1697_v27, %v1701_v29  ;;  %v1609_v19 = vld [vmem:[#allocation22 + $0x340] sm:$0xff] }
 0x640   :  { %v1613_v20 = vld [vmem:[#allocation22 + $0x360] sm:$0xff] }
 0x641   :  { %v1737_v0 = vld [vmem:[#allocation22 + $0x740] sm:$0xff] }
 0x642   :  { %4856 = vmatpush1.bf16.msra.mxu1 %v7024_v63  ;;  %4897 = vmatpush1.bf16.msra.mxu0 %v7152_v45  ;;  %v1709_v63 = vld [vmem:[#allocation22 + $0x660] sm:$0xff]  ;;  %v7072_v45 = vcombine.low %v1569_v25, %v1573_v26 }
 0x643   :  { %4857 = vmatprep.subr.bf16.mxu1 %v7033_v38  ;;  %4898 = vmatprep.subr.bf16.mxu0 %v7161_v39  ;;  %v7200_v38 = vcombine.low %v1697_v27, %v1701_v29  ;;  %v7081_v39 = vcombine.high %v1577_v36, %v1581_v62  ;;  %v7209_v40 = vcombine.high %v1705_v37, %v1709_v63  ;;  %v1617_v26 = vld [vmem:[#allocation22 + $0x380] sm:$0xff] }
 0x644   :  { %v1621_v27 = vld [vmem:[#allocation22 + $0x3a0] sm:$0xff] }
 0x645   :  { %v1745_v29 = vld [vmem:[#allocation22 + $0x780] sm:$0xff] }
 0x646   :  { %4858 = vmatpush1.bf16.msra.mxu1 %v7032_v48  ;;  %4899 = vmatpush1.bf16.msra.mxu0 %v7160_v49  ;;  %v1717_v48 = vld [vmem:[#allocation22 + $0x6a0] sm:$0xff]  ;;  %v7080_v49 = vcombine.low %v1577_v36, %v1581_v62 }
 0x647   :  { %4859 = vmatprep.subr.bf16.mxu1 %v7041_v50  ;;  %4900 = vmatprep.subr.bf16.mxu0 %v7169_v51  ;;  %v7208_v50 = vcombine.low %v1705_v37, %v1709_v63  ;;  %v7089_v51 = vcombine.high %v1585_v41, %v1589_v44  ;;  %v7217_v52 = vcombine.high %v1713_v46, %v1717_v48  ;;  %v1625_v62 = vld [vmem:[#allocation22 + $0x3c0] sm:$0xff] }
 0x648   :  { %v1629_v37 = vld [vmem:[#allocation22 + $0x3e0] sm:$0xff] }
 0x649   :  { %v1753_v63 = vld [vmem:[#allocation22 + $0x7c0] sm:$0xff] }
 0x64a   :  { %4860 = vmatpush1.bf16.msra.mxu1 %v7040_v6  ;;  %4901 = vmatpush1.bf16.msra.mxu0 %v7168_v7  ;;  %v1725_v6 = vld [vmem:[#allocation22 + $0x6e0] sm:$0xff]  ;;  %v7088_v7 = vcombine.low %v1585_v41, %v1589_v44 }
 0x64b   :  { %4861 = vmatprep.subr.bf16.mxu1 %v7049_v10  ;;  %4902 = vmatprep.subr.bf16.mxu0 %v7177_v11  ;;  %v7216_v10 = vcombine.low %v1713_v46, %v1717_v48  ;;  %v7097_v11 = vcombine.high %v1593_v53, %v1597_v54  ;;  %v7225_v12 = vcombine.high %v1721_v55, %v1725_v6  ;;  %v1761_v44 = vld [vmem:[#allocation22 + $0x800] sm:$0xff] }
 0x64c   :  { %v1765_v46 = vld [vmem:[#allocation22 + $0x820] sm:$0xff] }
 0x64d   :  { %v1889_v48 = vld [vmem:[#allocation22 + $0xc00] sm:$0xff] }
 0x64e   :  { %4862 = vmatpush1.bf16.msra.mxu1 %v7048_v14  ;;  %4903 = vmatpush1.bf16.msra.mxu0 %v7176_v15  ;;  %v1733_v14 = vld [vmem:[#allocation22 + $0x720] sm:$0xff]  ;;  %v7096_v15 = vcombine.low %v1593_v53, %v1597_v54 }
 0x64f   :  { %4863 = vmatprep.subr.bf16.mxu1 %v7057_v16  ;;  %4904 = vmatprep.subr.bf16.mxu0 %v7185_v17  ;;  %v7224_v16 = vcombine.low %v1721_v55, %v1725_v6  ;;  %v7105_v17 = vcombine.high %v1601_v13, %v1605_v2  ;;  %v7233_v18 = vcombine.high %v1729_v3, %v1733_v14  ;;  %v1769_v54 = vld [vmem:[#allocation22 + $0x840] sm:$0xff] }
 0x650   :  { %v1773_v55 = vld [vmem:[#allocation22 + $0x860] sm:$0xff] }
 0x651   :  { %v1897_v6 = vld [vmem:[#allocation22 + $0xc40] sm:$0xff] }
 0x652   :  { %4864 = vmatpush1.bf16.msra.mxu1 %v7056_v1  ;;  %4905 = vmatpush1.bf16.msra.mxu0 %v7184_v59  ;;  %v1741_v1 = vld [vmem:[#allocation22 + $0x760] sm:$0xff]  ;;  %v7104_v59 = vcombine.low %v1601_v13, %v1605_v2  ;;  %v9173_v2 = vpack.c.b16 %v9133_v23, %v9133_v23 }
 0x653   :  { %4865 = vmatprep.subr.bf16.mxu1 %v7065_v9  ;;  %4906 = vmatprep.subr.bf16.mxu0 %v7193_v24  ;;  %v7232_v9 = vcombine.low %v1729_v3, %v1733_v14  ;;  %v7113_v24 = vcombine.high %v1609_v19, %v1613_v20  ;;  %v7241_v25 = vcombine.high %v1737_v0, %v1741_v1 }
 0x654   :  { %v7273_v3 = vcombine.high %v1769_v54, %v1773_v55 }
 0x656   :  { %4866 = vmatpush1.bf16.msra.mxu1 %v7064_v31  ;;  %4907 = vmatpush1.bf16.msra.mxu0 %v7192_v32  ;;  %v1749_v31 = vld [vmem:[#allocation22 + $0x7a0] sm:$0xff]  ;;  %v7112_v32 = vcombine.low %v1609_v19, %v1613_v20 }
 0x657   :  { %4867 = vmatprep.subr.bf16.mxu1 %v7073_v33  ;;  %4908 = vmatprep.subr.bf16.mxu0 %v7201_v34  ;;  %v7240_v33 = vcombine.low %v1737_v0, %v1741_v1  ;;  %v7121_v34 = vcombine.high %v1617_v26, %v1621_v27  ;;  %v7249_v36 = vcombine.high %v1745_v29, %v1749_v31  ;;  %v1785_v0 = vld [vmem:[#allocation22 + $0x8c0] sm:$0xff] }
 0x658   :  { %v1789_v1 = vld [vmem:[#allocation22 + $0x8e0] sm:$0xff] }
 0x65a   :  { %4868 = vmatpush1.bf16.msra.mxu1 %v7072_v45  ;;  %4909 = vmatpush1.bf16.msra.mxu0 %v7200_v38  ;;  %v1757_v45 = vld [vmem:[#allocation22 + $0x7e0] sm:$0xff]  ;;  %v7120_v38 = vcombine.low %v1617_v26, %v1621_v27 }
 0x65b   :  { %4869 = vmatprep.subr.bf16.mxu1 %v7081_v39  ;;  %4910 = vmatprep.subr.bf16.mxu0 %v7209_v40  ;;  %v7248_v39 = vcombine.low %v1745_v29, %v1749_v31  ;;  %v7129_v40 = vcombine.high %v1625_v62, %v1629_v37  ;;  %v7257_v41 = vcombine.high %v1753_v63, %v1757_v45  ;;  %v1793_v27 = vld [vmem:[#allocation22 + $0x900] sm:$0xff] }
 0x65c   :  { %v1797_v29 = vld [vmem:[#allocation22 + $0x920] sm:$0xff] }
 0x65d   :  { %v1921_v31 = vld [vmem:[#allocation22 + $0xd00] sm:$0xff] }
 0x65e   :  { %4870 = vmatpush1.bf16.msra.mxu1 %v7080_v49  ;;  %4911 = vmatpush1.bf16.msra.mxu0 %v7208_v50  ;;  %v1893_v49 = vld [vmem:[#allocation22 + $0xc20] sm:$0xff]  ;;  %v7128_v50 = vcombine.low %v1625_v62, %v1629_v37 }
 0x65f   :  { %4871 = vmatprep.subr.bf16.mxu1 %v7089_v51  ;;  %4912 = vmatprep.subr.bf16.mxu0 %v7217_v52  ;;  %v7256_v51 = vcombine.low %v1753_v63, %v1757_v45  ;;  %v7265_v52 = vcombine.high %v1761_v44, %v1765_v46  ;;  %v7393_v53 = vcombine.high %v1889_v48, %v1893_v49  ;;  %v1801_v37 = vld [vmem:[#allocation22 + $0x940] sm:$0xff] }
 0x660   :  { %v7392_v13 = vcombine.low %v1889_v48, %v1893_v49  ;;  %v1805_v63 = vld [vmem:[#allocation22 + $0x960] sm:$0xff] }
 0x661   :  { %v1929_v45 = vld [vmem:[#allocation22 + $0xd40] sm:$0xff] }
 0x662   :  { %4872 = vmatpush1.bf16.msra.mxu1 %v7088_v7  ;;  %4913 = vmatpush1.bf16.msra.mxu0 %v7216_v10  ;;  %v1901_v7 = vld [vmem:[#allocation22 + $0xc60] sm:$0xff]  ;;  %v7264_v10 = vcombine.low %v1761_v44, %v1765_v46 }
 0x663   :  { %4873 = vmatprep.subr.bf16.mxu1 %v7097_v11  ;;  %4914 = vmatprep.subr.bf16.mxu0 %v7225_v12  ;;  %v9165_v11 = vpack.c.b16 %v9107_v4, %v9107_v4  ;;  %v9169_v12 = vpack.c.b16 %v9110_v5, %v9110_v5  ;;  %v7401_v14 = vcombine.high %v1897_v6, %v1901_v7  ;;  %v1905_v5 = vld [vmem:[#allocation22 + $0xc80] sm:$0xff] }
 0x664   :  { %v9179_v4 = vpack.c.b16 %v9136_v8, %v9136_v8  ;;  %v7400_v23 = vcombine.low %v1897_v6, %v1901_v7  ;;  %v1809_v46 = vld [vmem:[#allocation22 + $0x980] sm:$0xff] }
 0x665   :  { %v1813_v48 = vld [vmem:[#allocation22 + $0x9a0] sm:$0xff] }
 0x666   :  { %4874 = vmatpush1.bf16.msra.mxu1 %v7096_v15  ;;  %4915 = vmatpush1.bf16.msra.mxu0 %v7224_v16  ;;  %v1777_v15 = vld [vmem:[#allocation22 + $0x880] sm:$0xff] }
 0x667   :  { %4875 = vmatprep.subr.bf16.mxu1 %v7105_v17  ;;  %4916 = vmatprep.subr.bf16.mxu0 %v7233_v18  ;;  %v1781_v16 = vld [vmem:[#allocation22 + $0x8a0] sm:$0xff]  ;;  %v7272_v18 = vcombine.low %v1769_v54, %v1773_v55 }
 0x668   :  { %v1909_v17 = vld [vmem:[#allocation22 + $0xca0] sm:$0xff]  ;;  %v7281_v19 = vcombine.high %v1777_v15, %v1781_v16  ;;  %v7280_v8 = vcombine.low %v1777_v15, %v1781_v16 }
 0x669   :  { %v7409_v20 = vcombine.high %v1905_v5, %v1909_v17  ;;  %v1937_v49 = vld [vmem:[#allocation22 + $0xd80] sm:$0xff] }
 0x66a   :  { %4876 = vmatpush1.bf16.msra.mxu1 %v7104_v59  ;;  %4917 = vmatpush1.bf16.msra.mxu0 %v7232_v9  ;;  %v1913_v59 = vld [vmem:[#allocation22 + $0xcc0] sm:$0xff] }
 0x66b   :  { %4877 = vmatprep.subr.bf16.mxu1 %v7113_v24  ;;  %4918 = vmatprep.subr.bf16.mxu0 %v7241_v25  ;;  %v1917_v9 = vld [vmem:[#allocation22 + $0xce0] sm:$0xff]  ;;  %v7408_v24 = vcombine.low %v1905_v5, %v1909_v17  ;;  %v7289_v25 = vcombine.high %v1785_v0, %v1789_v1 }
 0x66c   :  { %v7417_v26 = vcombine.high %v1913_v59, %v1917_v9  ;;  %v1817_v55 = vld [vmem:[#allocation22 + $0x9c0] sm:$0xff] }
 0x66d   :  { %v1821_v6 = vld [vmem:[#allocation22 + $0x9e0] sm:$0xff] }
 0x66e   :  { %4878 = vmatpush1.bf16.msra.mxu1 %v7112_v32  ;;  %4919 = vmatpush1.bf16.msra.mxu0 %v7240_v33  ;;  %v1925_v32 = vld [vmem:[#allocation22 + $0xd20] sm:$0xff]  ;;  %v7288_v33 = vcombine.low %v1785_v0, %v1789_v1 }
 0x66f   :  { %4879 = vmatprep.subr.bf16.mxu1 %v7121_v34  ;;  %4920 = vmatprep.subr.bf16.mxu0 %v7249_v36  ;;  %v7416_v34 = vcombine.low %v1913_v59, %v1917_v9  ;;  %v7297_v36 = vcombine.high %v1793_v27, %v1797_v29  ;;  %v7425_v62 = vcombine.high %v1921_v31, %v1925_v32  ;;  %v1945_v7 = vld [vmem:[#allocation22 + $0xdc0] sm:$0xff] }
 0x670   :  { %v1825_v16 = vld [vmem:[#allocation22 + $0xa00] sm:$0xff] }
 0x671   :  { %v1829_v5 = vld [vmem:[#allocation22 + $0xa20] sm:$0xff] }
 0x672   :  { %4880 = vmatpush1.bf16.msra.mxu1 %v7120_v38  ;;  %4921 = vmatpush1.bf16.msra.mxu0 %v7248_v39  ;;  %v1933_v38 = vld [vmem:[#allocation22 + $0xd60] sm:$0xff]  ;;  %v7296_v39 = vcombine.low %v1793_v27, %v1797_v29 }
 0x673   :  { %4881 = vmatprep.subr.bf16.mxu1 %v7129_v40  ;;  %4922 = vmatprep.subr.bf16.mxu0 %v7257_v41  ;;  %v7424_v40 = vcombine.low %v1921_v31, %v1925_v32  ;;  %v7305_v41 = vcombine.high %v1801_v37, %v1805_v63  ;;  %v7433_v44 = vcombine.high %v1929_v45, %v1933_v38  ;;  %v1953_v17 = vld [vmem:[#allocation22 + $0xe00] sm:$0xff] }
 0x674   :  { %v1833_v1 = vld [vmem:[#allocation22 + $0xa40] sm:$0xff] }
 0x675   :  { %v1837_v59 = vld [vmem:[#allocation22 + $0xa60] sm:$0xff] }
 0x676   :  { %4882 = vmatpush1.bf16.msra.mxu1 %v7128_v50  ;;  %4923 = vmatpush1.bf16.msra.mxu0 %v7256_v51  ;;  %v1941_v50 = vld [vmem:[#allocation22 + $0xda0] sm:$0xff]  ;;  %v7304_v51 = vcombine.low %v1801_v37, %v1805_v63 }
 0x677   :  { %4933 = vmatprep.subr.bf16.mxu1 %v7265_v52  ;;  %4974 = vmatprep.subr.bf16.mxu0 %v7393_v53  ;;  %v7432_v52 = vcombine.low %v1929_v45, %v1933_v38  ;;  %v7313_v53 = vcombine.high %v1809_v46, %v1813_v48  ;;  %v7441_v54 = vcombine.high %v1937_v49, %v1941_v50  ;;  %v1961_v9 = vld [vmem:[#allocation22 + $0xe40] sm:$0xff] }
 0x678   :  { %v1841_v29 = vld [vmem:[#allocation22 + $0xa80] sm:$0xff] }
 0x679   :  { %4884 = vmatmul.mubr.bf16.vlgmr.msra.gmra.mrb[32].mxu1 %v9165_v11  ;;  %4925 = vmatmul.mubr.bf16.vlgmr.msra.gmra.mrb[36].mxu0 %v9169_v12  ;;  %v1845_v31 = vld [vmem:[#allocation22 + $0xaa0] sm:$0xff] }
 0x67a   :  { %4934 = vmatpush1.bf16.msra.mxu1 %v7264_v10  ;;  %4965 = vmatprep.mubr.bf16.mxu1 %v9173_v2  ;;  %v1949_v10 = vld [vmem:[#allocation22 + $0xde0] sm:$0xff] }
 0x67b   :  { %4975 = vmatpush1.bf16.msra.mxu0 %v7392_v13  ;;  %5006 = vmatprep.mubr.bf16.mxu0 %v9179_v4  ;;  %v7312_v13 = vcombine.low %v1809_v46, %v1813_v48  ;;  %v7449_v15 = vcombine.high %v1945_v7, %v1949_v10  ;;  %v1969_v32 = vld [vmem:[#allocation22 + $0xe80] sm:$0xff] }
 0x67c   :  { %4935 = vmatprep.subr.bf16.mxu1 %v7273_v3  ;;  %4976 = vmatprep.subr.bf16.mxu0 %v7401_v14  ;;  %v7440_v3 = vcombine.low %v1937_v49, %v1941_v50  ;;  %v7321_v14 = vcombine.high %v1817_v55, %v1821_v6  ;;  %v1849_v63 = vld [vmem:[#allocation22 + $0xac0] sm:$0xff] }
 0x67d   :  { %v1853_v45 = vld [vmem:[#allocation22 + $0xae0] sm:$0xff] }
 0x67e   :  { %4936 = vmatpush1.bf16.msra.mxu1 %v7272_v18  ;;  %v1957_v18 = vld [vmem:[#allocation22 + $0xe20] sm:$0xff] }
 0x67f   :  { %4977 = vmatpush1.bf16.msra.mxu0 %v7400_v23  ;;  %4937 = vmatprep.subr.bf16.mxu1 %v7281_v19  ;;  %v7320_v23 = vcombine.low %v1817_v55, %v1821_v6  ;;  %v7448_v19 = vcombine.low %v1945_v7, %v1949_v10  ;;  %v7457_v0 = vcombine.high %v1953_v17, %v1957_v18  ;;  %v1977_v38 = vld [vmem:[#allocation22 + $0xec0] sm:$0xff] }
 0x680   :  { %4978 = vmatprep.subr.bf16.mxu0 %v7409_v20  ;;  %v7329_v20 = vcombine.high %v1825_v16, %v1829_v5  ;;  %v1857_v48 = vld [vmem:[#allocation22 + $0xb00] sm:$0xff] }
 0x681   :  { %v1861_v49 = vld [vmem:[#allocation22 + $0xb20] sm:$0xff] }
 0x682   :  { %4938 = vmatpush1.bf16.msra.mxu1 %v7280_v8  ;;  %v1965_v8 = vld [vmem:[#allocation22 + $0xe60] sm:$0xff] }
 0x683   :  { %4979 = vmatpush1.bf16.msra.mxu0 %v7408_v24  ;;  %4939 = vmatprep.subr.bf16.mxu1 %v7289_v25  ;;  %v7328_v24 = vcombine.low %v1825_v16, %v1829_v5  ;;  %v7456_v25 = vcombine.low %v1953_v17, %v1957_v18  ;;  %v7465_v27 = vcombine.high %v1961_v9, %v1965_v8  ;;  %v1985_v50 = vld [vmem:[#allocation22 + $0xf00] sm:$0xff] }
 0x684   :  { %4980 = vmatprep.subr.bf16.mxu0 %v7417_v26  ;;  %v7337_v26 = vcombine.high %v1833_v1, %v1837_v59  ;;  %v1865_v6 = vld [vmem:[#allocation22 + $0xb40] sm:$0xff] }
 0x685   :  { %v1869_v7 = vld [vmem:[#allocation22 + $0xb60] sm:$0xff] }
 0x686   :  { %4940 = vmatpush1.bf16.msra.mxu1 %v7288_v33  ;;  %v1973_v33 = vld [vmem:[#allocation22 + $0xea0] sm:$0xff] }
 0x687   :  { %4981 = vmatpush1.bf16.msra.mxu0 %v7416_v34  ;;  %4941 = vmatprep.subr.bf16.mxu1 %v7297_v36  ;;  %v7336_v34 = vcombine.low %v1833_v1, %v1837_v59  ;;  %v7464_v36 = vcombine.low %v1961_v9, %v1965_v8  ;;  %v7473_v37 = vcombine.high %v1969_v32, %v1973_v33  ;;  %v1993_v10 = vld [vmem:[#allocation22 + $0xf40] sm:$0xff] }
 0x688   :  { %4982 = vmatprep.subr.bf16.mxu0 %v7425_v62  ;;  %v7345_v62 = vcombine.high %v1841_v29, %v1845_v31  ;;  %v1873_v5 = vld [vmem:[#allocation22 + $0xb80] sm:$0xff] }
 0x689   :  { %v1877_v17 = vld [vmem:[#allocation22 + $0xba0] sm:$0xff] }
 0x68a   :  { %4942 = vmatpush1.bf16.msra.mxu1 %v7296_v39  ;;  %v1981_v39 = vld [vmem:[#allocation22 + $0xee0] sm:$0xff] }
 0x68b   :  { %4983 = vmatpush1.bf16.msra.mxu0 %v7424_v40  ;;  %4943 = vmatprep.subr.bf16.mxu1 %v7305_v41  ;;  %v7344_v40 = vcombine.low %v1841_v29, %v1845_v31  ;;  %v7472_v41 = vcombine.low %v1969_v32, %v1973_v33  ;;  %v7481_v46 = vcombine.high %v1977_v38, %v1981_v39  ;;  %v2001_v18 = vld [vmem:[#allocation22 + $0xf80] sm:$0xff]  ;;  %v1506_v31 = vld [vmem:[#allocation22 + $0x8] sm:$0xff] }
 0x68c   :  { %4984 = vmatprep.subr.bf16.mxu0 %v7433_v44  ;;  %v7353_v44 = vcombine.high %v1849_v63, %v1853_v45  ;;  %v1881_v59 = vld [vmem:[#allocation22 + $0xbc0] sm:$0xff]  ;;  %v1510_v32 = vld [vmem:[#allocation22 + $0x28] sm:$0xff] }
 0x68d   :  { %v1885_v9 = vld [vmem:[#allocation22 + $0xbe0] sm:$0xff]  ;;  %v1634_v33 = vld [vmem:[#allocation22 + $0x408] sm:$0xff] }
 0x68e   :  { %4944 = vmatpush1.bf16.msra.mxu1 %v7304_v51  ;;  %v1989_v51 = vld [vmem:[#allocation22 + $0xf20] sm:$0xff] }
 0x68f   :  { %4985 = vmatpush1.bf16.msra.mxu0 %v7432_v52  ;;  %4945 = vmatprep.subr.bf16.mxu1 %v7313_v53  ;;  %v7352_v52 = vcombine.low %v1849_v63, %v1853_v45  ;;  %v7480_v53 = vcombine.low %v1977_v38, %v1981_v39  ;;  %v7489_v55 = vcombine.high %v1985_v50, %v1989_v51  ;;  %v2009_v8 = vld [vmem:[#allocation22 + $0xfc0] sm:$0xff]  ;;  %v1514_v45 = vld [vmem:[#allocation22 + $0x48] sm:$0xff] }
 0x690   :  { %4986 = vmatprep.subr.bf16.mxu0 %v7441_v54  ;;  %v7361_v54 = vcombine.high %v1857_v48, %v1861_v49  ;;  %v1518_v38 = vld [vmem:[#allocation22 + $0x68] sm:$0xff]  ;;  %v7010_v39 = vcombine.low %v1506_v31, %v1510_v32 }
 0x692   :  { %4946 = vmatpush1.bf16.msra.mxu1 %v7312_v13  ;;  %v1997_v13 = vld [vmem:[#allocation22 + $0xf60] sm:$0xff] }
 0x693   :  { %4987 = vmatpush1.bf16.msra.mxu0 %v7440_v3  ;;  %4947 = vmatprep.subr.bf16.mxu1 %v7321_v14  ;;  %v7360_v3 = vcombine.low %v1857_v48, %v1861_v49  ;;  %v7488_v14 = vcombine.low %v1985_v50, %v1989_v51  ;;  %v7497_v16 = vcombine.high %v1993_v10, %v1997_v13  ;;  %v1522_v50 = vld [vmem:[#allocation22 + $0x88] sm:$0xff] }
 0x694   :  { %4988 = vmatprep.subr.bf16.mxu0 %v7449_v15  ;;  %v7369_v15 = vcombine.high %v1865_v6, %v1869_v7  ;;  %v9189_v48 = vpack.c.b16 %v9130_v22, %v9130_v22  ;;  %v7019_v49 = vcombine.high %v1514_v45, %v1518_v38  ;;  %v1526_v51 = vld [vmem:[#allocation22 + $0xa8] sm:$0xff] }
 0x696   :  { %4948 = vmatpush1.bf16.msra.mxu1 %v7320_v23  ;;  %v2005_v23 = vld [vmem:[#allocation22 + $0xfa0] sm:$0xff] }
 0x697   :  { %4989 = vmatpush1.bf16.msra.mxu0 %v7448_v19  ;;  %4949 = vmatprep.subr.bf16.mxu1 %v7329_v20  ;;  %v7368_v19 = vcombine.low %v1865_v6, %v1869_v7  ;;  %v7496_v20 = vcombine.low %v1993_v10, %v1997_v13  ;;  %v7505_v1 = vcombine.high %v2001_v18, %v2005_v23  ;;  %v1530_v7 = vld [vmem:[#allocation22 + $0xc8] sm:$0xff] }
 0x698   :  { %4990 = vmatprep.subr.bf16.mxu0 %v7457_v0  ;;  %v7377_v0 = vcombine.high %v1873_v5, %v1877_v17  ;;  %v7027_v6 = vcombine.high %v1522_v50, %v1526_v51  ;;  %v1534_v10 = vld [vmem:[#allocation22 + $0xe8] sm:$0xff] }
 0x699   :  { %v1658_v13 = vld [vmem:[#allocation22 + $0x4c8] sm:$0xff] }
 0x69a   :  { %4950 = vmatpush1.bf16.msra.mxu1 %v7328_v24  ;;  %v2013_v24 = vld [vmem:[#allocation22 + $0xfe0] sm:$0xff] }
 0x69b   :  { %4991 = vmatpush1.bf16.msra.mxu0 %v7456_v25  ;;  %4951 = vmatprep.subr.bf16.mxu1 %v7337_v26  ;;  %v7376_v25 = vcombine.low %v1873_v5, %v1877_v17  ;;  %v7504_v26 = vcombine.low %v2001_v18, %v2005_v23  ;;  %v7513_v29 = vcombine.high %v2009_v8, %v2013_v24  ;;  %v1538_v17 = vld [vmem:[#allocation22 + $0x108] sm:$0xff] }
 0x69c   :  { %4992 = vmatprep.subr.bf16.mxu0 %v7465_v27  ;;  %v7385_v27 = vcombine.high %v1881_v59, %v1885_v9  ;;  %v1542_v18 = vld [vmem:[#allocation22 + $0x128] sm:$0xff] }
 0x69d   :  { %v1666_v23 = vld [vmem:[#allocation22 + $0x508] sm:$0xff] }
 0x69e   :  { %4952 = vmatpush1.bf16.msra.mxu1 %v7336_v34  ;;  %v1638_v34 = vld [vmem:[#allocation22 + $0x428] sm:$0xff] }
 0x69f   :  { %4993 = vmatpush1.bf16.msra.mxu0 %v7464_v36  ;;  %4953 = vmatprep.subr.bf16.mxu1 %v7345_v62  ;;  %v7384_v36 = vcombine.low %v1881_v59, %v1885_v9  ;;  %v7512_v62 = vcombine.low %v2009_v8, %v2013_v24  ;;  %v7139_v63 = vcombine.high %v1634_v33, %v1638_v34  ;;  %v1546_v9 = vld [vmem:[#allocation22 + $0x148] sm:$0xff] }
 0x6a0   :  { %4994 = vmatprep.subr.bf16.mxu0 %v7473_v37  ;;  %v7011_v37 = vcombine.high %v1506_v31, %v1510_v32  ;;  %v1550_v8 = vld [vmem:[#allocation22 + $0x168] sm:$0xff] }
 0x6a1   :  { %v1674_v24 = vld [vmem:[#allocation22 + $0x548] sm:$0xff] }
 0x6a2   :  { %4954 = vmatpush1.bf16.msra.mxu1 %v7344_v40  ;;  %v1642_v40 = vld [vmem:[#allocation22 + $0x448] sm:$0xff] }
 0x6a3   :  { %4995 = vmatpush1.bf16.msra.mxu0 %v7472_v41  ;;  %4955 = vmatprep.subr.bf16.mxu1 %v7353_v44  ;;  %v1646_v41 = vld [vmem:[#allocation22 + $0x468] sm:$0xff]  ;;  %v9185_v44 = vpack.c.b16 %v9127_v21, %v9127_v21  ;;  %v7018_v21 = vcombine.low %v1514_v45, %v1518_v38 }
 0x6a4   :  { %4996 = vmatprep.subr.bf16.mxu0 %v7481_v46  ;;  %v7138_v46 = vcombine.low %v1634_v33, %v1638_v34  ;;  %v1554_v32 = vld [vmem:[#allocation22 + $0x188] sm:$0xff] }
 0x6a5   :  { %v1558_v33 = vld [vmem:[#allocation22 + $0x1a8] sm:$0xff] }
 0x6a6   :  { %4956 = vmatpush1.bf16.msra.mxu1 %v7352_v52  ;;  %v7147_v52 = vcombine.high %v1642_v40, %v1646_v41  ;;  %v1682_v34 = vld [vmem:[#allocation22 + $0x588] sm:$0xff] }
 0x6a7   :  { %4997 = vmatpush1.bf16.msra.mxu0 %v7480_v53  ;;  %4957 = vmatprep.subr.bf16.mxu1 %v7361_v54  ;;  %v1650_v53 = vld [vmem:[#allocation22 + $0x488] sm:$0xff] }
 0x6a8   :  { %4998 = vmatprep.subr.bf16.mxu0 %v7489_v55  ;;  %v1654_v54 = vld [vmem:[#allocation22 + $0x4a8] sm:$0xff]  ;;  %v7146_v55 = vcombine.low %v1642_v40, %v1646_v41 }
 0x6a9   :  { %v7155_v22 = vcombine.high %v1650_v53, %v1654_v54  ;;  %v1562_v38 = vld [vmem:[#allocation22 + $0x1c8] sm:$0xff] }
 0x6aa   :  { %4958 = vmatpush1.bf16.msra.mxu1 %v7360_v3  ;;  %v1662_v3 = vld [vmem:[#allocation22 + $0x4e8] sm:$0xff] }
 0x6ab   :  { %4999 = vmatpush1.bf16.msra.mxu0 %v7488_v14  ;;  %4959 = vmatprep.subr.bf16.mxu1 %v7369_v15  ;;  %v7026_v14 = vcombine.low %v1522_v50, %v1526_v51  ;;  %v7154_v15 = vcombine.low %v1650_v53, %v1654_v54  ;;  %v7163_v5 = vcombine.high %v1658_v13, %v1662_v3  ;;  %v1690_v40 = vld [vmem:[#allocation22 + $0x5c8] sm:$0xff] }
 0x6ac   :  { %5000 = vmatprep.subr.bf16.mxu0 %v7497_v16  ;;  %v7035_v16 = vcombine.high %v1530_v7, %v1534_v10  ;;  %v1694_v41 = vld [vmem:[#allocation22 + $0x5e8] sm:$0xff] }
 0x6ad   :  { %v7195_v51 = vcombine.high %v1690_v40, %v1694_v41  ;;  %v1574_v53 = vld [vmem:[#allocation22 + $0x228] sm:$0xff] }
 0x6ae   :  { %4960 = vmatpush1.bf16.msra.mxu1 %v7368_v19  ;;  %v1670_v19 = vld [vmem:[#allocation22 + $0x528] sm:$0xff] }
 0x6af   :  { %5001 = vmatpush1.bf16.msra.mxu0 %v7496_v20  ;;  %4961 = vmatprep.subr.bf16.mxu1 %v7377_v0  ;;  %v7034_v20 = vcombine.low %v1530_v7, %v1534_v10  ;;  %v7162_v0 = vcombine.low %v1658_v13, %v1662_v3  ;;  %v7171_v59 = vcombine.high %v1666_v23, %v1670_v19  ;;  %v1698_v54 = vld [vmem:[#allocation22 + $0x608] sm:$0xff] }
 0x6b0   :  { %5002 = vmatprep.subr.bf16.mxu0 %v7505_v1  ;;  %v7043_v1 = vcombine.high %v1538_v17, %v1542_v18  ;;  %v1578_v10 = vld [vmem:[#allocation22 + $0x248] sm:$0xff] }
 0x6b1   :  { %v1582_v13 = vld [vmem:[#allocation22 + $0x268] sm:$0xff] }
 0x6b2   :  { %4962 = vmatpush1.bf16.msra.mxu1 %v7376_v25  ;;  %v1678_v25 = vld [vmem:[#allocation22 + $0x568] sm:$0xff] }
 0x6b3   :  { %5003 = vmatpush1.bf16.msra.mxu0 %v7504_v26  ;;  %4963 = vmatprep.subr.bf16.mxu1 %v7385_v27  ;;  %v7042_v26 = vcombine.low %v1538_v17, %v1542_v18  ;;  %v7170_v27 = vcombine.low %v1666_v23, %v1670_v19  ;;  %v7179_v31 = vcombine.high %v1674_v24, %v1678_v25  ;;  %v1706_v3 = vld [vmem:[#allocation22 + $0x648] sm:$0xff] }
 0x6b4   :  { %5004 = vmatprep.subr.bf16.mxu0 %v7513_v29  ;;  %v7051_v29 = vcombine.high %v1546_v9, %v1550_v8  ;;  %v1586_v18 = vld [vmem:[#allocation22 + $0x288] sm:$0xff] }
 0x6b5   :  { %v1590_v23 = vld [vmem:[#allocation22 + $0x2a8] sm:$0xff] }
 0x6b6   :  { %4964 = vmatpush1.bf16.msra.mxu1 %v7384_v36  ;;  %v1686_v36 = vld [vmem:[#allocation22 + $0x5a8] sm:$0xff] }
 0x6b7   :  { %5005 = vmatpush1.bf16.msra.mxu0 %v7512_v62  ;;  %5015 = vmatprep.subr.bf16.mxu1 %v7011_v37  ;;  %v7050_v62 = vcombine.low %v1546_v9, %v1550_v8  ;;  %v7178_v37 = vcombine.low %v1674_v24, %v1678_v25  ;;  %v7187_v45 = vcombine.high %v1682_v34, %v1686_v36  ;;  %v1714_v19 = vld [vmem:[#allocation22 + $0x688] sm:$0xff] }
 0x6b8   :  { %5056 = vmatprep.subr.bf16.mxu0 %v7139_v63  ;;  %v7059_v63 = vcombine.high %v1554_v32, %v1558_v33  ;;  %v1594_v8 = vld [vmem:[#allocation22 + $0x2c8] sm:$0xff] }
 0x6b9   :  { %4966 = vmatmul.mubr.bf16.vlgmr.msra.gmra.mrb[36].mxu1 %v9185_v44  ;;  %v1598_v24 = vld [vmem:[#allocation22 + $0x2e8] sm:$0xff] }
 0x6ba   :  { %5007 = vmatmul.mubr.bf16.vlgmr.msra.gmra.mrb[40].mxu0 %v9189_v48  ;;  %5016 = vmatpush1.bf16.msra.mxu1 %v7010_v39  ;;  %v1566_v39 = vld [vmem:[#allocation22 + $0x1e8] sm:$0xff] }
 0x6bb   :  { %5047 = vmatprep.mubr.bf16.mxu1 %v9155_v35  ;;  %5057 = vmatpush1.bf16.msra.mxu0 %v7138_v46  ;;  %v7058_v46 = vcombine.low %v1554_v32, %v1558_v33  ;;  %v7067_v50 = vcombine.high %v1562_v38, %v1566_v39  ;;  %v1722_v25 = vld [vmem:[#allocation22 + $0x6c8] sm:$0xff] }
 0x6bc   :  { %5088 = vmatprep.mubr.bf16.mxu0 %v9159_v28  ;;  %5017 = vmatprep.subr.bf16.mxu1 %v7019_v49  ;;  %v7186_v49 = vcombine.low %v1682_v34, %v1686_v36  ;;  %v1602_v33 = vld [vmem:[#allocation22 + $0x308] sm:$0xff] }
 0x6bd   :  { %5058 = vmatprep.subr.bf16.mxu0 %v7147_v52  ;;  %v1570_v52 = vld [vmem:[#allocation22 + $0x208] sm:$0xff] }
 0x6be   :  { %5018 = vmatpush1.bf16.msra.mxu1 %v7018_v21  ;;  %v1702_v21 = vld [vmem:[#allocation22 + $0x628] sm:$0xff] }
 0x6bf   :  { %5059 = vmatpush1.bf16.msra.mxu0 %v7146_v55  ;;  %5019 = vmatprep.subr.bf16.mxu1 %v7027_v6  ;;  %v7066_v55 = vcombine.low %v1562_v38, %v1566_v39  ;;  %v7194_v6 = vcombine.low %v1690_v40, %v1694_v41  ;;  %v7203_v7 = vcombine.high %v1698_v54, %v1702_v21  ;;  %v1606_v34 = vld [vmem:[#allocation22 + $0x328] sm:$0xff] }
 0x6c0   :  { %5060 = vmatprep.subr.bf16.mxu0 %v7155_v22  ;;  %v7075_v22 = vcombine.high %v1570_v52, %v1574_v53  ;;  %v1730_v36 = vld [vmem:[#allocation22 + $0x708] sm:$0xff] }
 0x6c1   :  { %v1610_v39 = vld [vmem:[#allocation22 + $0x348] sm:$0xff] }
 0x6c2   :  { %5020 = vmatpush1.bf16.msra.mxu1 %v7026_v14  ;;  %v1710_v14 = vld [vmem:[#allocation22 + $0x668] sm:$0xff] }
 0x6c3   :  { %5061 = vmatpush1.bf16.msra.mxu0 %v7154_v15  ;;  %5021 = vmatprep.subr.bf16.mxu1 %v7035_v16  ;;  %v7074_v15 = vcombine.low %v1570_v52, %v1574_v53  ;;  %v7202_v16 = vcombine.low %v1698_v54, %v1702_v21  ;;  %v7211_v17 = vcombine.high %v1706_v3, %v1710_v14  ;;  %v1614_v40 = vld [vmem:[#allocation22 + $0x368] sm:$0xff] }
 0x6c4   :  { %5062 = vmatprep.subr.bf16.mxu0 %v7163_v5  ;;  %v7083_v5 = vcombine.high %v1578_v10, %v1582_v13  ;;  %v1738_v41 = vld [vmem:[#allocation22 + $0x748] sm:$0xff] }
 0x6c5   :  { %v1618_v53 = vld [vmem:[#allocation22 + $0x388] sm:$0xff] }
 0x6c6   :  { %5022 = vmatpush1.bf16.msra.mxu1 %v7034_v20  ;;  %v1718_v20 = vld [vmem:[#allocation22 + $0x6a8] sm:$0xff] }
 0x6c7   :  { %5063 = vmatpush1.bf16.msra.mxu0 %v7162_v0  ;;  %5023 = vmatprep.subr.bf16.mxu1 %v7043_v1  ;;  %v7082_v0 = vcombine.low %v1578_v10, %v1582_v13  ;;  %v7210_v1 = vcombine.low %v1706_v3, %v1710_v14  ;;  %v7219_v9 = vcombine.high %v1714_v19, %v1718_v20  ;;  %v1622_v54 = vld [vmem:[#allocation22 + $0x3a8] sm:$0xff] }
 0x6c8   :  { %5064 = vmatprep.subr.bf16.mxu0 %v7171_v59  ;;  %v7091_v59 = vcombine.high %v1586_v18, %v1590_v23  ;;  %v1746_v21 = vld [vmem:[#allocation22 + $0x788] sm:$0xff] }
 0x6c9   :  { %v1626_v13 = vld [vmem:[#allocation22 + $0x3c8] sm:$0xff] }
 0x6ca   :  { %5024 = vmatpush1.bf16.msra.mxu1 %v7042_v26  ;;  %v1726_v26 = vld [vmem:[#allocation22 + $0x6e8] sm:$0xff] }
 0x6cb   :  { %5065 = vmatpush1.bf16.msra.mxu0 %v7170_v27  ;;  %5025 = vmatprep.subr.bf16.mxu1 %v7051_v29  ;;  %v7090_v27 = vcombine.low %v1586_v18, %v1590_v23  ;;  %v7218_v29 = vcombine.low %v1714_v19, %v1718_v20  ;;  %v7227_v32 = vcombine.high %v1722_v25, %v1726_v26  ;;  %v1630_v3 = vld [vmem:[#allocation22 + $0x3e8] sm:$0xff] }
 0x6cc   :  { %5066 = vmatprep.subr.bf16.mxu0 %v7179_v31  ;;  %v7099_v31 = vcombine.high %v1594_v8, %v1598_v24  ;;  %v1754_v14 = vld [vmem:[#allocation22 + $0x7c8] sm:$0xff] }
 0x6cd   :  { %v1762_v23 = vld [vmem:[#allocation22 + $0x808] sm:$0xff] }
 0x6ce   :  { %5026 = vmatpush1.bf16.msra.mxu1 %v7050_v62  ;;  %v1734_v62 = vld [vmem:[#allocation22 + $0x728] sm:$0xff] }
 0x6cf   :  { %5067 = vmatpush1.bf16.msra.mxu0 %v7178_v37  ;;  %5027 = vmatprep.subr.bf16.mxu1 %v7059_v63  ;;  %v7098_v37 = vcombine.low %v1594_v8, %v1598_v24  ;;  %v7226_v63 = vcombine.low %v1722_v25, %v1726_v26  ;;  %v7235_v38 = vcombine.high %v1730_v36, %v1734_v62  ;;  %v1766_v19 = vld [vmem:[#allocation22 + $0x828] sm:$0xff] }
 0x6d0   :  { %5068 = vmatprep.subr.bf16.mxu0 %v7187_v45  ;;  %v7107_v45 = vcombine.high %v1602_v33, %v1606_v34  ;;  %v1890_v20 = vld [vmem:[#allocation22 + $0xc08] sm:$0xff]  ;;  %v7266_v26 = vcombine.low %v1762_v23, %v1766_v19 }
 0x6d1   :  { %v1770_v24 = vld [vmem:[#allocation22 + $0x848] sm:$0xff] }
 0x6d2   :  { %5028 = vmatpush1.bf16.msra.mxu1 %v7058_v46  ;;  %v1742_v46 = vld [vmem:[#allocation22 + $0x768] sm:$0xff] }
 0x6d3   :  { %5069 = vmatpush1.bf16.msra.mxu0 %v7186_v49  ;;  %5029 = vmatprep.subr.bf16.mxu1 %v7067_v50  ;;  %v7106_v49 = vcombine.low %v1602_v33, %v1606_v34  ;;  %v7234_v50 = vcombine.low %v1730_v36, %v1734_v62  ;;  %v7243_v52 = vcombine.high %v1738_v41, %v1742_v46  ;;  %v1774_v25 = vld [vmem:[#allocation22 + $0x868] sm:$0xff] }
 0x6d4   :  { %5070 = vmatprep.subr.bf16.mxu0 %v7195_v51  ;;  %v7115_v51 = vcombine.high %v1610_v39, %v1614_v40  ;;  %v1778_v33 = vld [vmem:[#allocation22 + $0x888] sm:$0xff] }
 0x6d5   :  { %v1782_v34 = vld [vmem:[#allocation22 + $0x8a8] sm:$0xff] }
 0x6d6   :  { %5030 = vmatpush1.bf16.msra.mxu1 %v7066_v55  ;;  %v1750_v55 = vld [vmem:[#allocation22 + $0x7a8] sm:$0xff] }
 0x6d7   :  { %5071 = vmatpush1.bf16.msra.mxu0 %v7194_v6  ;;  %5031 = vmatprep.subr.bf16.mxu1 %v7075_v22  ;;  %v7114_v6 = vcombine.low %v1610_v39, %v1614_v40  ;;  %v7242_v22 = vcombine.low %v1738_v41, %v1742_v46  ;;  %v7251_v10 = vcombine.high %v1746_v21, %v1750_v55  ;;  %v1906_v62 = vld [vmem:[#allocation22 + $0xc88] sm:$0xff] }
 0x6d8   :  { %5072 = vmatprep.subr.bf16.mxu0 %v7203_v7  ;;  %v7123_v7 = vcombine.high %v1618_v53, %v1622_v54  ;;  %v1786_v40 = vld [vmem:[#allocation22 + $0x8c8] sm:$0xff] }
 0x6d9   :  { %v1790_v41 = vld [vmem:[#allocation22 + $0x8e8] sm:$0xff] }
 0x6da   :  { %5032 = vmatpush1.bf16.msra.mxu1 %v7074_v15  ;;  %v1758_v15 = vld [vmem:[#allocation22 + $0x7e8] sm:$0xff] }
 0x6db   :  { %5073 = vmatpush1.bf16.msra.mxu0 %v7202_v16  ;;  %5033 = vmatprep.subr.bf16.mxu1 %v7083_v5  ;;  %v7122_v16 = vcombine.low %v1618_v53, %v1622_v54  ;;  %v7250_v5 = vcombine.low %v1746_v21, %v1750_v55  ;;  %v7259_v18 = vcombine.high %v1754_v14, %v1758_v15  ;;  %v1914_v46 = vld [vmem:[#allocation22 + $0xcc8] sm:$0xff] }
 0x6dc   :  { %5074 = vmatprep.subr.bf16.mxu0 %v7211_v17  ;;  %v7131_v17 = vcombine.high %v1626_v13, %v1630_v3  ;;  %v1794_v54 = vld [vmem:[#allocation22 + $0x908] sm:$0xff] }
 0x6dd   :  { %v1798_v21 = vld [vmem:[#allocation22 + $0x928] sm:$0xff] }
 0x6de   :  { %5034 = vmatpush1.bf16.msra.mxu1 %v7082_v0  ;;  %v1894_v0 = vld [vmem:[#allocation22 + $0xc28] sm:$0xff] }
 0x6df   :  { %5075 = vmatpush1.bf16.msra.mxu0 %v7210_v1  ;;  %5035 = vmatprep.subr.bf16.mxu1 %v7091_v59  ;;  %v7130_v1 = vcombine.low %v1626_v13, %v1630_v3  ;;  %v7258_v59 = vcombine.low %v1754_v14, %v1758_v15  ;;  %v7395_v8 = vcombine.high %v1890_v20, %v1894_v0  ;;  %v1922_v55 = vld [vmem:[#allocation22 + $0xd08] sm:$0xff] }
 0x6e0   :  { %5076 = vmatprep.subr.bf16.mxu0 %v7219_v9  ;;  %v7267_v9 = vcombine.high %v1762_v23, %v1766_v19  ;;  %v1802_v15 = vld [vmem:[#allocation22 + $0x948] sm:$0xff] }
 0x6e1   :  { %v1934_v23 = vld [vmem:[#allocation22 + $0xd68] sm:$0xff] }
 0x6e2   :  { %5036 = vmatpush1.bf16.msra.mxu1 %v7090_v27  ;;  %v1898_v27 = vld [vmem:[#allocation22 + $0xc48] sm:$0xff] }
 0x6e3   :  { %5077 = vmatpush1.bf16.msra.mxu0 %v7218_v29  ;;  %5037 = vmatprep.subr.bf16.mxu1 %v7099_v31  ;;  %v1902_v29 = vld [vmem:[#allocation22 + $0xc68] sm:$0xff]  ;;  %v7394_v31 = vcombine.low %v1890_v20, %v1894_v0  ;;  %v7298_v0 = vcombine.low %v1794_v54, %v1798_v21 }
 0x6e4   :  { %5078 = vmatprep.subr.bf16.mxu0 %v7227_v32  ;;  %v7275_v32 = vcombine.high %v1770_v24, %v1774_v25  ;;  %v7403_v36 = vcombine.high %v1898_v27, %v1902_v29 }
 0x6e6   :  { %5038 = vmatpush1.bf16.msra.mxu1 %v7098_v37  ;;  %v1910_v37 = vld [vmem:[#allocation22 + $0xca8] sm:$0xff] }
 0x6e7   :  { %5079 = vmatpush1.bf16.msra.mxu0 %v7226_v63  ;;  %5039 = vmatprep.subr.bf16.mxu1 %v7107_v45  ;;  %v7274_v63 = vcombine.low %v1770_v24, %v1774_v25  ;;  %v7402_v45 = vcombine.low %v1898_v27, %v1902_v29  ;;  %v7411_v39 = vcombine.high %v1906_v62, %v1910_v37  ;;  %v1810_v25 = vld [vmem:[#allocation22 + $0x988] sm:$0xff] }
 0x6e8   :  { %5080 = vmatprep.subr.bf16.mxu0 %v7235_v38  ;;  %v7283_v38 = vcombine.high %v1778_v33, %v1782_v34  ;;  %v1938_v27 = vld [vmem:[#allocation22 + $0xd88] sm:$0xff] }
 0x6e9   :  { %v1942_v29 = vld [vmem:[#allocation22 + $0xda8] sm:$0xff] }
 0x6ea   :  { %5040 = vmatpush1.bf16.msra.mxu1 %v7106_v49  ;;  %v1918_v49 = vld [vmem:[#allocation22 + $0xce8] sm:$0xff] }
 0x6eb   :  { %5081 = vmatpush1.bf16.msra.mxu0 %v7234_v50  ;;  %5041 = vmatprep.subr.bf16.mxu1 %v7115_v51  ;;  %v7282_v50 = vcombine.low %v1778_v33, %v1782_v34  ;;  %v7410_v51 = vcombine.low %v1906_v62, %v1910_v37  ;;  %v7419_v53 = vcombine.high %v1914_v46, %v1918_v49  ;;  %v1818_v37 = vld [vmem:[#allocation22 + $0x9c8] sm:$0xff] }
 0x6ec   :  { %5082 = vmatprep.subr.bf16.mxu0 %v7243_v52  ;;  %v7291_v52 = vcombine.high %v1786_v40, %v1790_v41  ;;  %v7443_v62 = vcombine.high %v1938_v27, %v1942_v29 }
 0x6ee   :  { %5042 = vmatpush1.bf16.msra.mxu1 %v7114_v6  ;;  %v1926_v6 = vld [vmem:[#allocation22 + $0xd28] sm:$0xff] }
 0x6ef   :  { %5083 = vmatpush1.bf16.msra.mxu0 %v7242_v22  ;;  %5043 = vmatprep.subr.bf16.mxu1 %v7123_v7  ;;  %v7290_v22 = vcombine.low %v1786_v40, %v1790_v41  ;;  %v7418_v7 = vcombine.low %v1914_v46, %v1918_v49  ;;  %v7427_v14 = vcombine.high %v1922_v55, %v1926_v6  ;;  %v1950_v40 = vld [vmem:[#allocation22 + $0xde8] sm:$0xff] }
 0x6f0   :  { %5084 = vmatprep.subr.bf16.mxu0 %v7251_v10  ;;  %v7299_v10 = vcombine.high %v1794_v54, %v1798_v21  ;;  %v1826_v21 = vld [vmem:[#allocation22 + $0xa08] sm:$0xff] }
 0x6f2   :  { %5044 = vmatpush1.bf16.msra.mxu1 %v7122_v16  ;;  %v1806_v16 = vld [vmem:[#allocation22 + $0x968] sm:$0xff] }
 0x6f3   :  { %5085 = vmatpush1.bf16.msra.mxu0 %v7250_v5  ;;  %5045 = vmatprep.subr.bf16.mxu1 %v7131_v17 }
 0x6f4   :  { %5086 = vmatprep.subr.bf16.mxu0 %v7259_v18  ;;  %v1930_v18 = vld [vmem:[#allocation22 + $0xd48] sm:$0xff] }
 0x6f5   :  { %v7435_v24 = vcombine.high %v1930_v18, %v1934_v23 }
 0x6f6   :  { %5046 = vmatpush1.bf16.msra.mxu1 %v7130_v1 }
 0x6f7   :  { %5087 = vmatpush1.bf16.msra.mxu0 %v7258_v59  ;;  %5097 = vmatprep.subr.bf16.mxu1 %v7267_v9  ;;  %v7426_v9 = vcombine.low %v1922_v55, %v1926_v6  ;;  %v1830_v55 = vld [vmem:[#allocation22 + $0xa28] sm:$0xff] }
 0x6f8   :  { %5138 = vmatprep.subr.bf16.mxu0 %v7395_v8  ;;  %v7307_v8 = vcombine.high %v1802_v15, %v1806_v16  ;;  %v1954_v6 = vld [vmem:[#allocation22 + $0xe08] sm:$0xff] }
 0x6f9   :  { %5048 = vmatmul.mubr.bf16.vlgmr.msra.gmra.mrb[40].mxu1 %v9165_v11 }
 0x6fa   :  { %5089 = vmatmul.mubr.bf16.vlgmr.msra.gmra.mrb[44].mxu0 %v9169_v12  ;;  %5098 = vmatpush1.bf16.msra.mxu1 %v7266_v26  ;;  %v1814_v26 = vld [vmem:[#allocation22 + $0x9a8] sm:$0xff] }
 0x6fb   :  { %5129 = vmatprep.mubr.bf16.mxu1 %v9173_v2  ;;  %5139 = vmatpush1.bf16.msra.mxu0 %v7394_v31  ;;  %v7306_v31 = vcombine.low %v1802_v15, %v1806_v16  ;;  %v7315_v33 = vcombine.high %v1810_v25, %v1814_v26  ;;  %v7314_v49 = vcombine.low %v1810_v25, %v1814_v26  ;;  %v1834_v16 = vld [vmem:[#allocation22 + $0xa48] sm:$0xff] }
 0x6fc   :  { %5170 = vmatprep.mubr.bf16.mxu0 %v9179_v4  ;;  %5099 = vmatprep.subr.bf16.mxu1 %v7275_v32  ;;  %v7434_v32 = vcombine.low %v1930_v18, %v1934_v23  ;;  %v1838_v18 = vld [vmem:[#allocation22 + $0xa68] sm:$0xff] }
 0x6fd   :  { %5140 = vmatprep.subr.bf16.mxu0 %v7403_v36  ;;  %v1962_v23 = vld [vmem:[#allocation22 + $0xe48] sm:$0xff]  ;;  %v7338_v26 = vcombine.low %v1834_v16, %v1838_v18 }
 0x6fe   :  { %5100 = vmatpush1.bf16.msra.mxu1 %v7274_v63  ;;  %v1822_v63 = vld [vmem:[#allocation22 + $0x9e8] sm:$0xff] }
 0x6ff   :  { %5141 = vmatpush1.bf16.msra.mxu0 %v7402_v45  ;;  %5101 = vmatprep.subr.bf16.mxu1 %v7283_v38  ;;  %v1974_v25 = vld [vmem:[#allocation22 + $0xea8] sm:$0xff] }
 0x700   :  { %5142 = vmatprep.subr.bf16.mxu0 %v7411_v39  ;;  %v1946_v39 = vld [vmem:[#allocation22 + $0xdc8] sm:$0xff] }
 0x701   :  { %v7451_v54 = vcombine.high %v1946_v39, %v1950_v40 }
 0x702   :  { %5102 = vmatpush1.bf16.msra.mxu1 %v7282_v50 }
 0x703   :  { %5143 = vmatpush1.bf16.msra.mxu0 %v7410_v51  ;;  %5103 = vmatprep.subr.bf16.mxu1 %v7291_v52  ;;  %v7442_v52 = vcombine.low %v1938_v27, %v1942_v29 }
 0x704   :  { %v9199_v13 = vpop.f32.mrb[24].mxu1  ;;  %v9201_v3 = vpop.f32.mrb[28].mxu0  ;;  %5144 = vmatprep.subr.bf16.mxu0 %v7419_v53  ;;  %v7323_v53 = vcombine.high %v1818_v37, %v1822_v63 }
 0x705   :  { %v9203_v5 = vpop.f32.mrb[25].mxu1  ;;  %v9205_v17 = vpop.f32.mrb[29].mxu0 }
 0x706   :  { %5104 = vmatpush1.bf16.msra.mxu1 %v7290_v22  ;;  %v2108_v19 = vpop.f32.mrb[26].mxu1  ;;  %v2149_v20 = vpop.f32.mrb[30].mxu0  ;;  %v1958_v22 = vld [vmem:[#allocation22 + $0xe28] sm:$0xff] }
 0x707   :  { %5145 = vmatpush1.bf16.msra.mxu0 %v7418_v7  ;;  %v2109_v1 = vpop.f32.mrb[27].mxu1  ;;  %v2150_v59 = vpop.f32.mrb[31].mxu0  ;;  %5105 = vmatprep.subr.bf16.mxu1 %v7299_v10  ;;  %v7322_v7 = vcombine.low %v1818_v37, %v1822_v63  ;;  %v7450_v10 = vcombine.low %v1946_v39, %v1950_v40  ;;  %v7459_v15 = vcombine.high %v1954_v6, %v1958_v22  ;;  %v1966_v19 = vld [vmem:[#allocation22 + $0xe68] sm:$0xff] }
 0x708   :  { %5146 = vmatprep.subr.bf16.mxu0 %v7427_v14  ;;  %v7331_v14 = vcombine.high %v1826_v21, %v1830_v55  ;;  %v7330_v20 = vcombine.low %v1826_v21, %v1830_v55  ;;  %v7339_v1 = vcombine.high %v1834_v16, %v1838_v18  ;;  %v7467_v59 = vcombine.high %v1962_v23, %v1966_v19  ;;  %v1982_v37 = vld [vmem:[#allocation22 + $0xee8] sm:$0xff] }
 0x709   :  { %v7466_v27 = vcombine.low %v1962_v23, %v1966_v19  ;;  %v1866_v55 = vld [vmem:[#allocation22 + $0xb48] sm:$0xff] }
 0x70a   :  { %5106 = vmatpush1.bf16.msra.mxu1 %v7298_v0  ;;  %v7458_v0 = vcombine.low %v1954_v6, %v1958_v22  ;;  %v1870_v6 = vld [vmem:[#allocation22 + $0xb68] sm:$0xff] }
 0x70b   :  { %5147 = vmatpush1.bf16.msra.mxu0 %v7426_v9  ;;  %5107 = vmatprep.subr.bf16.mxu1 %v7307_v8  ;;  %v1842_v9 = vld [vmem:[#allocation22 + $0xa88] sm:$0xff] }
 0x70c   :  { %v9207_v34 = vpop.f32.mrb[28].mxu1  ;;  %v9209_v36 = vpop.f32.mrb[32].mxu0  ;;  %5148 = vmatprep.subr.bf16.mxu0 %v7435_v24  ;;  %v1846_v8 = vld [vmem:[#allocation22 + $0xaa8] sm:$0xff] }
 0x70d   :  { %v9211_v45 = vpop.f32.mrb[29].mxu1  ;;  %v9213_v38 = vpop.f32.mrb[33].mxu0  ;;  %v1970_v24 = vld [vmem:[#allocation22 + $0xe88] sm:$0xff]  ;;  %v7347_v29 = vcombine.high %v1842_v9, %v1846_v8  ;;  %v7346_v63 = vcombine.low %v1842_v9, %v1846_v8 }
 0x70e   :  { %5108 = vmatpush1.bf16.msra.mxu1 %v7306_v31  ;;  %v2190_v41 = vpop.f32.mrb[30].mxu1  ;;  %v2231_v46 = vpop.f32.mrb[34].mxu0  ;;  %v7475_v31 = vcombine.high %v1970_v24, %v1974_v25  ;;  %v7474_v39 = vcombine.low %v1970_v24, %v1974_v25  ;;  %v1994_v22 = vld [vmem:[#allocation22 + $0xf48] sm:$0xff] }
 0x70f   :  { %5149 = vmatpush1.bf16.msra.mxu0 %v7434_v32  ;;  %v2191_v50 = vpop.f32.mrb[31].mxu1  ;;  %v2232_v51 = vpop.f32.mrb[35].mxu0  ;;  %5109 = vmatprep.subr.bf16.mxu1 %v7315_v33  ;;  %v1850_v32 = vld [vmem:[#allocation22 + $0xac8] sm:$0xff] }
 0x710   :  { %5150 = vmatprep.subr.bf16.mxu0 %v7443_v62  ;;  %v1854_v33 = vld [vmem:[#allocation22 + $0xae8] sm:$0xff] }
 0x711   :  { %v1978_v62 = vld [vmem:[#allocation22 + $0xec8] sm:$0xff]  ;;  %v7355_v40 = vcombine.high %v1850_v32, %v1854_v33 }
 0x712   :  { %5110 = vmatpush1.bf16.msra.mxu1 %v7314_v49  ;;  %v7483_v41 = vcombine.high %v1978_v62, %v1982_v37  ;;  %v1858_v46 = vld [vmem:[#allocation22 + $0xb08] sm:$0xff] }
 0x713   :  { %5151 = vmatpush1.bf16.msra.mxu0 %v7442_v52  ;;  %5111 = vmatprep.subr.bf16.mxu1 %v7323_v53  ;;  %v1862_v49 = vld [vmem:[#allocation22 + $0xb28] sm:$0xff]  ;;  %v7354_v52 = vcombine.low %v1850_v32, %v1854_v33  ;;  %v7482_v53 = vcombine.low %v1978_v62, %v1982_v37  ;;  %v1507_v33 = vld [vmem:[#allocation22 + $0x10] sm:$0xff] }
 0x714   :  { %5152 = vmatprep.subr.bf16.mxu0 %v7451_v54  ;;  %v1986_v50 = vld [vmem:[#allocation22 + $0xf08] sm:$0xff]  ;;  %v7363_v54 = vcombine.high %v1858_v46, %v1862_v49  ;;  %v1511_v62 = vld [vmem:[#allocation22 + $0x30] sm:$0xff] }
 0x715   :  { %v1990_v51 = vld [vmem:[#allocation22 + $0xf28] sm:$0xff]  ;;  %v1635_v37 = vld [vmem:[#allocation22 + $0x410] sm:$0xff] }
 0x716   :  { %5112 = vmatpush1.bf16.msra.mxu1 %v7322_v7  ;;  %v7491_v21 = vcombine.high %v1986_v50, %v1990_v51  ;;  %v1998_v7 = vld [vmem:[#allocation22 + $0xf68] sm:$0xff] }
 0x717   :  { %5153 = vmatpush1.bf16.msra.mxu0 %v7450_v10  ;;  %5113 = vmatprep.subr.bf16.mxu1 %v7331_v14  ;;  %v7362_v10 = vcombine.low %v1858_v46, %v1862_v49  ;;  %v7490_v14 = vcombine.low %v1986_v50, %v1990_v51  ;;  %v7499_v16 = vcombine.high %v1994_v22, %v1998_v7  ;;  %v1874_v18 = vld [vmem:[#allocation22 + $0xb88] sm:$0xff]  ;;  %v1515_v49 = vld [vmem:[#allocation22 + $0x50] sm:$0xff] }
 0x718   :  { %5154 = vmatprep.subr.bf16.mxu0 %v7459_v15  ;;  %v7371_v15 = vcombine.high %v1866_v55, %v1870_v6  ;;  %v1878_v23 = vld [vmem:[#allocation22 + $0xba8] sm:$0xff]  ;;  %v1519_v50 = vld [vmem:[#allocation22 + $0x70] sm:$0xff]  ;;  %v7012_v51 = vcombine.low %v1507_v33, %v1511_v62 }
 0x719   :  { %v2002_v19 = vld [vmem:[#allocation22 + $0xf88] sm:$0xff] }
 0x71a   :  { %5114 = vmatpush1.bf16.msra.mxu1 %v7330_v20  ;;  %v2006_v20 = vld [vmem:[#allocation22 + $0xfa8] sm:$0xff] }
 0x71b   :  { %5155 = vmatpush1.bf16.msra.mxu0 %v7458_v0  ;;  %5115 = vmatprep.subr.bf16.mxu1 %v7339_v1  ;;  %v7370_v0 = vcombine.low %v1866_v55, %v1870_v6  ;;  %v7498_v1 = vcombine.low %v1994_v22, %v1998_v7  ;;  %v7507_v9 = vcombine.high %v2002_v19, %v2006_v20  ;;  %v1882_v8 = vld [vmem:[#allocation22 + $0xbc8] sm:$0xff]  ;;  %v1523_v55 = vld [vmem:[#allocation22 + $0x90] sm:$0xff] }
 0x71c   :  { %5156 = vmatprep.subr.bf16.mxu0 %v7467_v59  ;;  %v7379_v59 = vcombine.high %v1874_v18, %v1878_v23  ;;  %v1886_v24 = vld [vmem:[#allocation22 + $0xbe8] sm:$0xff]  ;;  %v1527_v6 = vld [vmem:[#allocation22 + $0xb0] sm:$0xff] }
 0x71d   :  { %v2010_v25 = vld [vmem:[#allocation22 + $0xfc8] sm:$0xff]  ;;  %v1651_v7 = vld [vmem:[#allocation22 + $0x490] sm:$0xff] }
 0x71e   :  { %5116 = vmatpush1.bf16.msra.mxu1 %v7338_v26  ;;  %v2014_v26 = vld [vmem:[#allocation22 + $0xfe8] sm:$0xff] }
 0x71f   :  { %5157 = vmatpush1.bf16.msra.mxu0 %v7466_v27  ;;  %5117 = vmatprep.subr.bf16.mxu1 %v7347_v29  ;;  %v7378_v27 = vcombine.low %v1874_v18, %v1878_v23  ;;  %v7506_v29 = vcombine.low %v2002_v19, %v2006_v20  ;;  %v7515_v32 = vcombine.high %v2010_v25, %v2014_v26  ;;  %v1531_v23 = vld [vmem:[#allocation22 + $0xd0] sm:$0xff] }
 0x720   :  { %5158 = vmatprep.subr.bf16.mxu0 %v7475_v31  ;;  %v7387_v31 = vcombine.high %v1882_v8, %v1886_v24  ;;  %v1535_v19 = vld [vmem:[#allocation22 + $0xf0] sm:$0xff] }
 0x721   :  { %v1659_v20 = vld [vmem:[#allocation22 + $0x4d0] sm:$0xff] }
 0x722   :  { %5118 = vmatpush1.bf16.msra.mxu1 %v7346_v63  ;;  %v1639_v63 = vld [vmem:[#allocation22 + $0x430] sm:$0xff] }
 0x723   :  { %5159 = vmatpush1.bf16.msra.mxu0 %v7474_v39  ;;  %5119 = vmatprep.subr.bf16.mxu1 %v7355_v40  ;;  %v7386_v39 = vcombine.low %v1882_v8, %v1886_v24  ;;  %v7514_v40 = vcombine.low %v2010_v25, %v2014_v26  ;;  %v7141_v46 = vcombine.high %v1635_v37, %v1639_v63  ;;  %v1539_v24 = vld [vmem:[#allocation22 + $0x110] sm:$0xff] }
 0x724   :  { %5160 = vmatprep.subr.bf16.mxu0 %v7483_v41  ;;  %v7013_v41 = vcombine.high %v1507_v33, %v1511_v62  ;;  %v1543_v25 = vld [vmem:[#allocation22 + $0x130] sm:$0xff] }
 0x725   :  { %v1667_v26 = vld [vmem:[#allocation22 + $0x510] sm:$0xff] }
 0x726   :  { %5120 = vmatpush1.bf16.msra.mxu1 %v7354_v52  ;;  %v1643_v52 = vld [vmem:[#allocation22 + $0x450] sm:$0xff] }
 0x727   :  { %5161 = vmatpush1.bf16.msra.mxu0 %v7482_v53  ;;  %5121 = vmatprep.subr.bf16.mxu1 %v7363_v54  ;;  %v1647_v53 = vld [vmem:[#allocation22 + $0x470] sm:$0xff]  ;;  %v7140_v54 = vcombine.low %v1635_v37, %v1639_v63 }
 0x728   :  { %5162 = vmatprep.subr.bf16.mxu0 %v7491_v21  ;;  %v7021_v21 = vcombine.high %v1515_v49, %v1519_v50  ;;  %v7149_v22 = vcombine.high %v1643_v52, %v1647_v53  ;;  %v1547_v62 = vld [vmem:[#allocation22 + $0x150] sm:$0xff] }
 0x729   :  { %v1551_v37 = vld [vmem:[#allocation22 + $0x170] sm:$0xff] }
 0x72a   :  { %5122 = vmatpush1.bf16.msra.mxu1 %v7362_v10  ;;  %v1655_v10 = vld [vmem:[#allocation22 + $0x4b0] sm:$0xff] }
 0x72b   :  { %5163 = vmatpush1.bf16.msra.mxu0 %v7490_v14  ;;  %5123 = vmatprep.subr.bf16.mxu1 %v7371_v15  ;;  %v7020_v14 = vcombine.low %v1515_v49, %v1519_v50  ;;  %v7148_v15 = vcombine.low %v1643_v52, %v1647_v53  ;;  %v7157_v18 = vcombine.high %v1651_v7, %v1655_v10  ;;  %v1675_v63 = vld [vmem:[#allocation22 + $0x550] sm:$0xff] }
 0x72c   :  { %5164 = vmatprep.subr.bf16.mxu0 %v7499_v16  ;;  %v7029_v16 = vcombine.high %v1523_v55, %v1527_v6  ;;  %v1555_v50 = vld [vmem:[#allocation22 + $0x190] sm:$0xff] }
 0x72d   :  { %v1683_v52 = vld [vmem:[#allocation22 + $0x590] sm:$0xff] }
 0x72e   :  { %5124 = vmatpush1.bf16.msra.mxu1 %v7370_v0  ;;  %v1663_v0 = vld [vmem:[#allocation22 + $0x4f0] sm:$0xff] }
 0x72f   :  { %5165 = vmatpush1.bf16.msra.mxu0 %v7498_v1  ;;  %5125 = vmatprep.subr.bf16.mxu1 %v7379_v59  ;;  %v7028_v1 = vcombine.low %v1523_v55, %v1527_v6  ;;  %v7156_v59 = vcombine.low %v1651_v7, %v1655_v10  ;;  %v7165_v8 = vcombine.high %v1659_v20, %v1663_v0  ;;  %v1687_v53 = vld [vmem:[#allocation22 + $0x5b0] sm:$0xff] }
 0x730   :  { %5166 = vmatprep.subr.bf16.mxu0 %v7507_v9  ;;  %v7037_v9 = vcombine.high %v1531_v23, %v1535_v19  ;;  %v7189_v7 = vcombine.high %v1683_v52, %v1687_v53  ;;  %v1563_v10 = vld [vmem:[#allocation22 + $0x1d0] sm:$0xff] }
 0x732   :  { %5126 = vmatpush1.bf16.msra.mxu1 %v7378_v27  ;;  %v1671_v27 = vld [vmem:[#allocation22 + $0x530] sm:$0xff] }
 0x733   :  { %5167 = vmatpush1.bf16.msra.mxu0 %v7506_v29  ;;  %5127 = vmatprep.subr.bf16.mxu1 %v7387_v31  ;;  %v7036_v29 = vcombine.low %v1531_v23, %v1535_v19  ;;  %v7164_v31 = vcombine.low %v1659_v20, %v1663_v0  ;;  %v7173_v33 = vcombine.high %v1667_v26, %v1671_v27  ;;  %v1691_v23 = vld [vmem:[#allocation22 + $0x5d0] sm:$0xff] }
 0x734   :  { %5168 = vmatprep.subr.bf16.mxu0 %v7515_v32  ;;  %v7045_v32 = vcombine.high %v1539_v24, %v1543_v25  ;;  %v1695_v19 = vld [vmem:[#allocation22 + $0x5f0] sm:$0xff] }
 0x736   :  { %5128 = vmatpush1.bf16.msra.mxu1 %v7386_v39  ;;  %v1679_v39 = vld [vmem:[#allocation22 + $0x570] sm:$0xff] }
 0x737   :  { %5169 = vmatpush1.bf16.msra.mxu0 %v7514_v40  ;;  %5179 = vmatprep.subr.bf16.mxu1 %v7013_v41  ;;  %v7044_v40 = vcombine.low %v1539_v24, %v1543_v25  ;;  %v7172_v41 = vcombine.low %v1667_v26, %v1671_v27  ;;  %v7181_v49 = vcombine.high %v1675_v63, %v1679_v39 }
 0x738   :  { %5220 = vmatprep.subr.bf16.mxu0 %v7141_v46  ;;  %v7053_v46 = vcombine.high %v1547_v62, %v1551_v37  ;;  %v7188_v25 = vcombine.low %v1683_v52, %v1687_v53  ;;  %v1587_v53 = vld [vmem:[#allocation22 + $0x290] sm:$0xff] }
 0x739   :  { %5130 = vmatmul.mubr.bf16.vlgmr.msra.gmra.mrb[44].mxu1 %v9185_v44 }
 0x73a   :  { %5171 = vmatmul.mubr.bf16.vlgmr.msra.gmra.mrb[48].mxu0 %v9189_v48  ;;  %5180 = vmatpush1.bf16.msra.mxu1 %v7012_v51  ;;  %v1559_v51 = vld [vmem:[#allocation22 + $0x1b0] sm:$0xff] }
 0x73b   :  { %5211 = vmatprep.mubr.bf16.mxu1 %v9155_v35  ;;  %5221 = vmatpush1.bf16.msra.mxu0 %v7140_v54  ;;  %v7052_v54 = vcombine.low %v1547_v62, %v1551_v37  ;;  %v7061_v55 = vcombine.high %v1555_v50, %v1559_v51  ;;  %v7196_v62 = vcombine.low %v1691_v23, %v1695_v19 }
 0x73c   :  { %5252 = vmatprep.mubr.bf16.mxu0 %v9159_v28  ;;  %5181 = vmatprep.subr.bf16.mxu1 %v7021_v21  ;;  %v7180_v21 = vcombine.low %v1675_v63, %v1679_v39  ;;  %v1579_v39 = vld [vmem:[#allocation22 + $0x250] sm:$0xff] }
 0x73d   :  { %5222 = vmatprep.subr.bf16.mxu0 %v7149_v22 }
 0x73e   :  { %5182 = vmatpush1.bf16.msra.mxu1 %v7020_v14  ;;  %v1567_v14 = vld [vmem:[#allocation22 + $0x1f0] sm:$0xff] }
 0x73f   :  { %5223 = vmatpush1.bf16.msra.mxu0 %v7148_v15  ;;  %5183 = vmatprep.subr.bf16.mxu1 %v7029_v16  ;;  %v7069_v26 = vcombine.high %v1563_v10, %v1567_v14 }
 0x740   :  { %5224 = vmatprep.subr.bf16.mxu0 %v7157_v18 }
 0x742   :  { %5184 = vmatpush1.bf16.msra.mxu1 %v7028_v1 }
 0x743   :  { %5225 = vmatpush1.bf16.msra.mxu0 %v7156_v59  ;;  %5185 = vmatprep.subr.bf16.mxu1 %v7037_v9  ;;  %v7060_v59 = vcombine.low %v1555_v50, %v1559_v51 }
 0x744   :  { %5226 = vmatprep.subr.bf16.mxu0 %v7165_v8 }
 0x746   :  { %5186 = vmatpush1.bf16.msra.mxu1 %v7036_v29  ;;  %v1571_v29 = vld [vmem:[#allocation22 + $0x210] sm:$0xff] }
 0x747   :  { %5227 = vmatpush1.bf16.msra.mxu0 %v7164_v31  ;;  %5187 = vmatprep.subr.bf16.mxu1 %v7045_v32  ;;  %v1575_v31 = vld [vmem:[#allocation22 + $0x230] sm:$0xff] }
 0x748   :  { %5228 = vmatprep.subr.bf16.mxu0 %v7173_v33  ;;  %v1699_v32 = vld [vmem:[#allocation22 + $0x610] sm:$0xff]  ;;  %v7068_v33 = vcombine.low %v1563_v10, %v1567_v14  ;;  %v7077_v37 = vcombine.high %v1571_v29, %v1575_v31 }
 0x749   :  { %v1595_v14 = vld [vmem:[#allocation22 + $0x2d0] sm:$0xff] }
 0x74a   :  { %5188 = vmatpush1.bf16.msra.mxu1 %v7044_v40  ;;  %v1583_v40 = vld [vmem:[#allocation22 + $0x270] sm:$0xff] }
 0x74b   :  { %5229 = vmatpush1.bf16.msra.mxu0 %v7172_v41  ;;  %5189 = vmatprep.subr.bf16.mxu1 %v7053_v46  ;;  %v1707_v41 = vld [vmem:[#allocation22 + $0x650] sm:$0xff]  ;;  %v7085_v51 = vcombine.high %v1579_v39, %v1583_v40 }
 0x74c   :  { %v4885_v6 = vpop.f32.mrb[32].mxu1  ;;  %v4926_v22 = vpop.f32.mrb[36].mxu0  ;;  %5230 = vmatprep.subr.bf16.mxu0 %v7181_v49  ;;  %v1711_v46 = vld [vmem:[#allocation22 + $0x670] sm:$0xff]  ;;  %v7076_v49 = vcombine.low %v1571_v29, %v1575_v31 }
 0x74d   :  { %v4886_v15 = vadd.f32 %v4885_v6, %v9199_v13  ;;  %v4887_v16 = vpop.f32.mrb[33].mxu1  ;;  %v4928_v18 = vpop.f32.mrb[37].mxu0  ;;  %v7197_v13 = vcombine.high %v1691_v23, %v1695_v19  ;;  %v7213_v52 = vcombine.high %v1707_v41, %v1711_v46  ;;  %v7084_v6 = vcombine.low %v1579_v39, %v1583_v40  ;;  %v1611_v31 = vld [vmem:[#allocation22 + $0x350] sm:$0xff] }
 0x74e   :  { %v4888_v20 = vadd.f32 %v4887_v16, %v9203_v5  ;;  %v4889_v0 = vpop.f32.mrb[34].mxu1  ;;  %v4930_v1 = vpop.f32.mrb[38].mxu0  ;;  %5190 = vmatpush1.bf16.msra.mxu1 %v7052_v54  ;;  %v1703_v5 = vld [vmem:[#allocation22 + $0x630] sm:$0xff] }
 0x74f   :  { %v9221_v9 = vadd.f32 %v4926_v22, %v4886_v15  ;;  %5231 = vmatpush1.bf16.msra.mxu0 %v7180_v21  ;;  %v4890_v8 = vpop.f32.mrb[35].mxu1  ;;  %v4931_v24 = vpop.f32.mrb[39].mxu0  ;;  %5191 = vmatprep.subr.bf16.mxu1 %v7061_v55  ;;  %v7205_v63 = vcombine.high %v1699_v32, %v1703_v5  ;;  %v7204_v50 = vcombine.low %v1699_v32, %v1703_v5  ;;  %v1591_v54 = vld [vmem:[#allocation22 + $0x2b0] sm:$0xff] }
 0x750   :  { %v9223_v27 = vadd.f32 %v4928_v18, %v4888_v20  ;;  %5232 = vmatprep.subr.bf16.mxu0 %v7189_v7  ;;  %v1715_v21 = vld [vmem:[#allocation22 + $0x690] sm:$0xff]  ;;  %v7212_v22 = vcombine.low %v1707_v41, %v1711_v46  ;;  %v7093_v7 = vcombine.high %v1587_v53, %v1591_v54  ;;  %v7092_v23 = vcombine.low %v1587_v53, %v1591_v54 }
 0x751   :  { %v1719_v55 = vld [vmem:[#allocation22 + $0x6b0] sm:$0xff] }
 0x752   :  { %5192 = vmatpush1.bf16.msra.mxu1 %v7060_v59  ;;  %v7221_v10 = vcombine.high %v1715_v21, %v1719_v55  ;;  %v1599_v15 = vld [vmem:[#allocation22 + $0x2f0] sm:$0xff]  ;;  %v7220_v19 = vcombine.low %v1715_v21, %v1719_v55 }
 0x753   :  { %5233 = vmatpush1.bf16.msra.mxu0 %v7188_v25  ;;  %5193 = vmatprep.subr.bf16.mxu1 %v7069_v26  ;;  %v1723_v16 = vld [vmem:[#allocation22 + $0x6d0] sm:$0xff]  ;;  %v7101_v20 = vcombine.high %v1595_v14, %v1599_v15  ;;  %v7100_v25 = vcombine.low %v1595_v14, %v1599_v15 }
 0x754   :  { %5234 = vmatprep.subr.bf16.mxu0 %v7197_v13  ;;  %v1727_v18 = vld [vmem:[#allocation22 + $0x6f0] sm:$0xff] }
 0x755   :  { %v7229_v0 = vcombine.high %v1723_v16, %v1727_v18  ;;  %v1603_v1 = vld [vmem:[#allocation22 + $0x310] sm:$0xff]  ;;  %v7228_v26 = vcombine.low %v1723_v16, %v1727_v18 }
 0x756   :  { %5194 = vmatpush1.bf16.msra.mxu1 %v7068_v33  ;;  %v1607_v59 = vld [vmem:[#allocation22 + $0x330] sm:$0xff] }
 0x757   :  { %5235 = vmatpush1.bf16.msra.mxu0 %v7196_v62  ;;  %5195 = vmatprep.subr.bf16.mxu1 %v7077_v37  ;;  %v1731_v8 = vld [vmem:[#allocation22 + $0x710] sm:$0xff]  ;;  %v7109_v13 = vcombine.high %v1603_v1, %v1607_v59  ;;  %v7108_v62 = vcombine.low %v1603_v1, %v1607_v59 }
 0x758   :  { %5236 = vmatprep.subr.bf16.mxu0 %v7205_v63  ;;  %v1735_v24 = vld [vmem:[#allocation22 + $0x730] sm:$0xff] }
 0x759   :  { %v7237_v29 = vcombine.high %v1731_v8, %v1735_v24  ;;  %v1615_v32 = vld [vmem:[#allocation22 + $0x370] sm:$0xff]  ;;  %v7236_v37 = vcombine.low %v1731_v8, %v1735_v24 }
 0x75a   :  { %5196 = vmatpush1.bf16.msra.mxu1 %v7076_v49  ;;  %v1739_v5 = vld [vmem:[#allocation22 + $0x750] sm:$0xff]  ;;  %v7117_v63 = vcombine.high %v1611_v31, %v1615_v32 }
 0x75b   :  { %5237 = vmatpush1.bf16.msra.mxu0 %v7204_v50  ;;  %5197 = vmatprep.subr.bf16.mxu1 %v7085_v51  ;;  %v1743_v33 = vld [vmem:[#allocation22 + $0x770] sm:$0xff]  ;;  %v7116_v50 = vcombine.low %v1611_v31, %v1615_v32 }
 0x75c   :  { %5238 = vmatprep.subr.bf16.mxu0 %v7213_v52  ;;  %v7245_v39 = vcombine.high %v1739_v5, %v1743_v33  ;;  %v1619_v40 = vld [vmem:[#allocation22 + $0x390] sm:$0xff]  ;;  %v7244_v51 = vcombine.low %v1739_v5, %v1743_v33 }
 0x75d   :  { %v1623_v41 = vld [vmem:[#allocation22 + $0x3b0] sm:$0xff] }
 0x75e   :  { %5198 = vmatpush1.bf16.msra.mxu1 %v7084_v6  ;;  %v1747_v46 = vld [vmem:[#allocation22 + $0x790] sm:$0xff]  ;;  %v7125_v52 = vcombine.high %v1619_v40, %v1623_v41 }
 0x75f   :  { %5239 = vmatpush1.bf16.msra.mxu0 %v7212_v22  ;;  %5199 = vmatprep.subr.bf16.mxu1 %v7093_v7  ;;  %v1751_v49 = vld [vmem:[#allocation22 + $0x7b0] sm:$0xff]  ;;  %v7124_v22 = vcombine.low %v1619_v40, %v1623_v41 }
 0x760   :  { %5240 = vmatprep.subr.bf16.mxu0 %v7221_v10  ;;  %v7253_v53 = vcombine.high %v1747_v46, %v1751_v49  ;;  %v1627_v54 = vld [vmem:[#allocation22 + $0x3d0] sm:$0xff]  ;;  %v7252_v7 = vcombine.low %v1747_v46, %v1751_v49 }
 0x761   :  { %v1631_v21 = vld [vmem:[#allocation22 + $0x3f0] sm:$0xff] }
 0x762   :  { %5200 = vmatpush1.bf16.msra.mxu1 %v7092_v23  ;;  %v1755_v55 = vld [vmem:[#allocation22 + $0x7d0] sm:$0xff]  ;;  %v7133_v10 = vcombine.high %v1627_v54, %v1631_v21 }
 0x763   :  { %5241 = vmatpush1.bf16.msra.mxu0 %v7220_v19  ;;  %5201 = vmatprep.subr.bf16.mxu1 %v7101_v20  ;;  %v1759_v6 = vld [vmem:[#allocation22 + $0x7f0] sm:$0xff]  ;;  %v7132_v19 = vcombine.low %v1627_v54, %v1631_v21 }
 0x764   :  { %5242 = vmatprep.subr.bf16.mxu0 %v7229_v0  ;;  %v7261_v14 = vcombine.high %v1755_v55, %v1759_v6  ;;  %v1763_v15 = vld [vmem:[#allocation22 + $0x810] sm:$0xff]  ;;  %v7260_v20 = vcombine.low %v1755_v55, %v1759_v6 }
 0x765   :  { %v1767_v16 = vld [vmem:[#allocation22 + $0x830] sm:$0xff] }
 0x766   :  { %5202 = vmatpush1.bf16.msra.mxu1 %v7100_v25  ;;  %v1891_v18 = vld [vmem:[#allocation22 + $0xc10] sm:$0xff]  ;;  %v7269_v0 = vcombine.high %v1763_v15, %v1767_v16  ;;  %v7268_v24 = vcombine.low %v1763_v15, %v1767_v16 }
 0x767   :  { %5243 = vmatpush1.bf16.msra.mxu0 %v7228_v26  ;;  %5203 = vmatprep.subr.bf16.mxu1 %v7109_v13  ;;  %v1895_v23 = vld [vmem:[#allocation22 + $0xc30] sm:$0xff] }
 0x768   :  { %5244 = vmatprep.subr.bf16.mxu0 %v7237_v29  ;;  %v7397_v1 = vcombine.high %v1891_v18, %v1895_v23  ;;  %v1771_v59 = vld [vmem:[#allocation22 + $0x850] sm:$0xff]  ;;  %v7396_v13 = vcombine.low %v1891_v18, %v1895_v23 }
 0x769   :  { %v1775_v8 = vld [vmem:[#allocation22 + $0x870] sm:$0xff] }
 0x76a   :  { %5204 = vmatpush1.bf16.msra.mxu1 %v7108_v62  ;;  %v1899_v25 = vld [vmem:[#allocation22 + $0xc50] sm:$0xff]  ;;  %v7277_v29 = vcombine.high %v1771_v59, %v1775_v8 }
 0x76b   :  { %5245 = vmatpush1.bf16.msra.mxu0 %v7236_v37  ;;  %5205 = vmatprep.subr.bf16.mxu1 %v7117_v63  ;;  %v1903_v26 = vld [vmem:[#allocation22 + $0xc70] sm:$0xff]  ;;  %v7276_v37 = vcombine.low %v1771_v59, %v1775_v8 }
 0x76c   :  { %5246 = vmatprep.subr.bf16.mxu0 %v7245_v39  ;;  %v1779_v31 = vld [vmem:[#allocation22 + $0x890] sm:$0xff]  ;;  %v7405_v5 = vcombine.high %v1899_v25, %v1903_v26  ;;  %v7404_v63 = vcombine.low %v1899_v25, %v1903_v26 }
 0x76d   :  { %v1783_v32 = vld [vmem:[#allocation22 + $0x8b0] sm:$0xff] }
 0x76e   :  { %5206 = vmatpush1.bf16.msra.mxu1 %v7116_v50  ;;  %v1907_v33 = vld [vmem:[#allocation22 + $0xc90] sm:$0xff]  ;;  %v7285_v39 = vcombine.high %v1779_v31, %v1783_v32 }
 0x76f   :  { %5247 = vmatpush1.bf16.msra.mxu0 %v7244_v51  ;;  %5207 = vmatprep.subr.bf16.mxu1 %v7125_v52  ;;  %v1911_v62 = vld [vmem:[#allocation22 + $0xcb0] sm:$0xff]  ;;  %v7284_v51 = vcombine.low %v1779_v31, %v1783_v32 }
 0x770   :  { %5248 = vmatprep.subr.bf16.mxu0 %v7253_v53  ;;  %v7413_v40 = vcombine.high %v1907_v33, %v1911_v62  ;;  %v1787_v41 = vld [vmem:[#allocation22 + $0x8d0] sm:$0xff]  ;;  %v7412_v52 = vcombine.low %v1907_v33, %v1911_v62 }
 0x771   :  { %v1791_v46 = vld [vmem:[#allocation22 + $0x8f0] sm:$0xff] }
 0x772   :  { %5208 = vmatpush1.bf16.msra.mxu1 %v7124_v22  ;;  %v1915_v49 = vld [vmem:[#allocation22 + $0xcd0] sm:$0xff]  ;;  %v7293_v53 = vcombine.high %v1787_v41, %v1791_v46 }
 0x773   :  { %5249 = vmatpush1.bf16.msra.mxu0 %v7252_v7  ;;  %5209 = vmatprep.subr.bf16.mxu1 %v7133_v10  ;;  %v1919_v50 = vld [vmem:[#allocation22 + $0xcf0] sm:$0xff]  ;;  %v7292_v7 = vcombine.low %v1787_v41, %v1791_v46 }
 0x774   :  { %5250 = vmatprep.subr.bf16.mxu0 %v7261_v14  ;;  %v7421_v54 = vcombine.high %v1915_v49, %v1919_v50  ;;  %v1795_v21 = vld [vmem:[#allocation22 + $0x910] sm:$0xff]  ;;  %v7420_v10 = vcombine.low %v1915_v49, %v1919_v50 }
 0x775   :  { %v1799_v55 = vld [vmem:[#allocation22 + $0x930] sm:$0xff] }
 0x776   :  { %5210 = vmatpush1.bf16.msra.mxu1 %v7132_v19  ;;  %v1923_v6 = vld [vmem:[#allocation22 + $0xd10] sm:$0xff]  ;;  %v7301_v14 = vcombine.high %v1795_v21, %v1799_v55 }
 0x777   :  { %5251 = vmatpush1.bf16.msra.mxu0 %v7260_v20  ;;  %5261 = vmatprep.subr.bf16.mxu1 %v7269_v0  ;;  %v1927_v22 = vld [vmem:[#allocation22 + $0xd30] sm:$0xff]  ;;  %v7300_v20 = vcombine.low %v1795_v21, %v1799_v55 }
 0x778   :  { %5302 = vmatprep.subr.bf16.mxu0 %v7397_v1  ;;  %v7429_v15 = vcombine.high %v1923_v6, %v1927_v22  ;;  %v1803_v16 = vld [vmem:[#allocation22 + $0x950] sm:$0xff]  ;;  %v7428_v0 = vcombine.low %v1923_v6, %v1927_v22 }
 0x779   :  { %5212 = vmatmul.mubr.bf16.vlgmr.msra.gmra.mrb[48].mxu1 %v9165_v11  ;;  %v1807_v18 = vld [vmem:[#allocation22 + $0x970] sm:$0xff] }
 0x77a   :  { %5253 = vmatmul.mubr.bf16.vlgmr.msra.gmra.mrb[52].mxu0 %v9169_v12  ;;  %5262 = vmatpush1.bf16.msra.mxu1 %v7268_v24  ;;  %v1931_v23 = vld [vmem:[#allocation22 + $0xd50] sm:$0xff]  ;;  %v7309_v1 = vcombine.high %v1803_v16, %v1807_v18 }
 0x77b   :  { %5293 = vmatprep.mubr.bf16.mxu1 %v9173_v2  ;;  %5303 = vmatpush1.bf16.msra.mxu0 %v7396_v13  ;;  %v1935_v19 = vld [vmem:[#allocation22 + $0xd70] sm:$0xff]  ;;  %v7308_v13 = vcombine.low %v1803_v16, %v1807_v18 }
 0x77c   :  { %5334 = vmatprep.mubr.bf16.mxu0 %v9179_v4  ;;  %5263 = vmatprep.subr.bf16.mxu1 %v7277_v29  ;;  %v7437_v59 = vcombine.high %v1931_v23, %v1935_v19  ;;  %v1811_v8 = vld [vmem:[#allocation22 + $0x990] sm:$0xff]  ;;  %v7436_v29 = vcombine.low %v1931_v23, %v1935_v19 }
 0x77d   :  { %5304 = vmatprep.subr.bf16.mxu0 %v7405_v5  ;;  %v1815_v24 = vld [vmem:[#allocation22 + $0x9b0] sm:$0xff] }
 0x77e   :  { %5264 = vmatpush1.bf16.msra.mxu1 %v7276_v37  ;;  %v1939_v25 = vld [vmem:[#allocation22 + $0xd90] sm:$0xff]  ;;  %v7317_v31 = vcombine.high %v1811_v8, %v1815_v24 }
 0x77f   :  { %5305 = vmatpush1.bf16.msra.mxu0 %v7404_v63  ;;  %5265 = vmatprep.subr.bf16.mxu1 %v7285_v39  ;;  %v1943_v26 = vld [vmem:[#allocation22 + $0xdb0] sm:$0xff] }
 0x780   :  { %5306 = vmatprep.subr.bf16.mxu0 %v7413_v40  ;;  %v7445_v5 = vcombine.high %v1939_v25, %v1943_v26  ;;  %v1819_v33 = vld [vmem:[#allocation22 + $0x9d0] sm:$0xff]  ;;  %v7444_v21 = vcombine.low %v1939_v25, %v1943_v26 }
 0x781   :  { %v1823_v62 = vld [vmem:[#allocation22 + $0x9f0] sm:$0xff] }
 0x782   :  { %5266 = vmatpush1.bf16.msra.mxu1 %v7284_v51  ;;  %v1947_v40 = vld [vmem:[#allocation22 + $0xdd0] sm:$0xff]  ;;  %v7316_v51 = vcombine.low %v1811_v8, %v1815_v24  ;;  %v7325_v55 = vcombine.high %v1819_v33, %v1823_v62 }
 0x783   :  { %5307 = vmatpush1.bf16.msra.mxu0 %v7412_v52  ;;  %5267 = vmatprep.subr.bf16.mxu1 %v7293_v53  ;;  %v1951_v41 = vld [vmem:[#allocation22 + $0xdf0] sm:$0xff] }
 0x784   :  { %5308 = vmatprep.subr.bf16.mxu0 %v7421_v54  ;;  %v7453_v22 = vcombine.high %v1947_v40, %v1951_v41  ;;  %v7452_v16 = vcombine.low %v1947_v40, %v1951_v41  ;;  %v1835_v19 = vld [vmem:[#allocation22 + $0xa50] sm:$0xff] }
 0x785   :  { %v1843_v26 = vld [vmem:[#allocation22 + $0xa90] sm:$0xff] }
 0x786   :  { %5268 = vmatpush1.bf16.msra.mxu1 %v7292_v7  ;;  %v1827_v7 = vld [vmem:[#allocation22 + $0xa10] sm:$0xff] }
 0x787   :  { %5309 = vmatpush1.bf16.msra.mxu0 %v7420_v10  ;;  %5269 = vmatprep.subr.bf16.mxu1 %v7301_v14  ;;  %v1831_v10 = vld [vmem:[#allocation22 + $0xa30] sm:$0xff] }
 0x788   :  { %5310 = vmatprep.subr.bf16.mxu0 %v7429_v15  ;;  %v1959_v14 = vld [vmem:[#allocation22 + $0xe30] sm:$0xff]  ;;  %v7324_v15 = vcombine.low %v1819_v33, %v1823_v62  ;;  %v7333_v18 = vcombine.high %v1827_v7, %v1831_v10 }
 0x789   :  { %v1983_v40 = vld [vmem:[#allocation22 + $0xef0] sm:$0xff] }
 0x78a   :  { %5270 = vmatpush1.bf16.msra.mxu1 %v7300_v20  ;;  %v1839_v20 = vld [vmem:[#allocation22 + $0xa70] sm:$0xff] }
 0x78b   :  { %5311 = vmatpush1.bf16.msra.mxu0 %v7428_v0  ;;  %5271 = vmatprep.subr.bf16.mxu1 %v7309_v1  ;;  %v1963_v0 = vld [vmem:[#allocation22 + $0xe50] sm:$0xff]  ;;  %v7341_v24 = vcombine.high %v1835_v19, %v1839_v20 }
 0x78c   :  { %v4967_v32 = vpop.f32.mrb[36].mxu1  ;;  %5312 = vmatprep.subr.bf16.mxu0 %v7437_v59  ;;  %v1967_v1 = vld [vmem:[#allocation22 + $0xe70] sm:$0xff]  ;;  %v7332_v59 = vcombine.low %v1827_v7, %v1831_v10 }
 0x78d   :  { %v4968_v37 = vadd.f32 %v4967_v32, %v9221_v9  ;;  %v5008_v63 = vpop.f32.mrb[40].mxu0  ;;  %v4969_v39 = vpop.f32.mrb[37].mxu1  ;;  %v7469_v25 = vcombine.high %v1963_v0, %v1967_v1  ;;  %v7340_v32 = vcombine.low %v1835_v19, %v1839_v20  ;;  %v1867_v10 = vld [vmem:[#allocation22 + $0xb50] sm:$0xff] }
 0x78e   :  { %v4970_v46 = vadd.f32 %v4969_v39, %v9223_v27  ;;  %v5010_v49 = vpop.f32.mrb[41].mxu0  ;;  %v4971_v50 = vpop.f32.mrb[38].mxu1  ;;  %5272 = vmatpush1.bf16.msra.mxu1 %v7308_v13  ;;  %v1955_v27 = vld [vmem:[#allocation22 + $0xe10] sm:$0xff] }
 0x78f   :  { %v9231_v52 = vadd.f32 %v5008_v63, %v4968_v37  ;;  %v5012_v53 = vpop.f32.mrb[42].mxu0  ;;  %5313 = vmatpush1.bf16.msra.mxu0 %v7436_v29  ;;  %v4972_v54 = vpop.f32.mrb[39].mxu1  ;;  %5273 = vmatprep.subr.bf16.mxu1 %v7317_v31  ;;  %v7461_v23 = vcombine.high %v1955_v27, %v1959_v14  ;;  %v7460_v8 = vcombine.low %v1955_v27, %v1959_v14  ;;  %v1847_v13 = vld [vmem:[#allocation22 + $0xab0] sm:$0xff] }
 0x790   :  { %v9233_v6 = vadd.f32 %v5010_v49, %v4970_v46  ;;  %v5013_v9 = vpop.f32.mrb[43].mxu0  ;;  %5314 = vmatprep.subr.bf16.mxu0 %v7445_v5  ;;  %v1971_v29 = vld [vmem:[#allocation22 + $0xe90] sm:$0xff]  ;;  %v7468_v5 = vcombine.low %v1963_v0, %v1967_v1  ;;  %v7349_v33 = vcombine.high %v1843_v26, %v1847_v13  ;;  %v7348_v41 = vcombine.low %v1843_v26, %v1847_v13 }
 0x791   :  { %v1975_v31 = vld [vmem:[#allocation22 + $0xeb0] sm:$0xff] }
 0x792   :  { %5274 = vmatpush1.bf16.msra.mxu1 %v7316_v51  ;;  %v7477_v62 = vcombine.high %v1971_v29, %v1975_v31  ;;  %v1851_v37 = vld [vmem:[#allocation22 + $0xad0] sm:$0xff]  ;;  %v7476_v46 = vcombine.low %v1971_v29, %v1975_v31 }
 0x793   :  { %5315 = vmatpush1.bf16.msra.mxu0 %v7444_v21  ;;  %5275 = vmatprep.subr.bf16.mxu1 %v7325_v55  ;;  %v1855_v63 = vld [vmem:[#allocation22 + $0xaf0] sm:$0xff] }
 0x794   :  { %5316 = vmatprep.subr.bf16.mxu0 %v7453_v22  ;;  %v1979_v39 = vld [vmem:[#allocation22 + $0xed0] sm:$0xff]  ;;  %v7357_v49 = vcombine.high %v1851_v37, %v1855_v63  ;;  %v7356_v55 = vcombine.low %v1851_v37, %v1855_v63  ;;  %v1508_v63 = vld [vmem:[#allocation22 + $0x18] sm:$0xff] }
 0x795   :  { %v7485_v50 = vcombine.high %v1979_v39, %v1983_v40  ;;  %v1859_v51 = vld [vmem:[#allocation22 + $0xb10] sm:$0xff]  ;;  %v7484_v9 = vcombine.low %v1979_v39, %v1983_v40  ;;  %v1512_v39 = vld [vmem:[#allocation22 + $0x38] sm:$0xff] }
 0x796   :  { %5276 = vmatpush1.bf16.msra.mxu1 %v7324_v15  ;;  %v1863_v53 = vld [vmem:[#allocation22 + $0xb30] sm:$0xff]  ;;  %v1636_v40 = vld [vmem:[#allocation22 + $0x418] sm:$0xff] }
 0x797   :  { %5317 = vmatpush1.bf16.msra.mxu0 %v7452_v16  ;;  %5277 = vmatprep.subr.bf16.mxu1 %v7333_v18  ;;  %v1987_v54 = vld [vmem:[#allocation22 + $0xf10] sm:$0xff]  ;;  %v7365_v22 = vcombine.high %v1859_v51, %v1863_v53  ;;  %v7364_v16 = vcombine.low %v1859_v51, %v1863_v53  ;;  %v1516_v53 = vld [vmem:[#allocation22 + $0x58] sm:$0xff] }
 0x798   :  { %5318 = vmatprep.subr.bf16.mxu0 %v7461_v23  ;;  %v1991_v21 = vld [vmem:[#allocation22 + $0xf30] sm:$0xff] }
 0x799   :  { %v7493_v7 = vcombine.high %v1987_v54, %v1991_v21  ;;  %v1871_v27 = vld [vmem:[#allocation22 + $0xb70] sm:$0xff]  ;;  %v7492_v18 = vcombine.low %v1987_v54, %v1991_v21  ;;  %v1520_v54 = vld [vmem:[#allocation22 + $0x78] sm:$0xff]  ;;  %v7014_v21 = vcombine.low %v1508_v63, %v1512_v39 }
 0x79a   :  { %5278 = vmatpush1.bf16.msra.mxu1 %v7332_v59  ;;  %v1995_v14 = vld [vmem:[#allocation22 + $0xf50] sm:$0xff]  ;;  %v7373_v23 = vcombine.high %v1867_v10, %v1871_v27 }
 0x79b   :  { %5319 = vmatpush1.bf16.msra.mxu0 %v7460_v8  ;;  %5279 = vmatprep.subr.bf16.mxu1 %v7341_v24  ;;  %v1999_v15 = vld [vmem:[#allocation22 + $0xf70] sm:$0xff]  ;;  %v7372_v8 = vcombine.low %v1867_v10, %v1871_v27  ;;  %v1524_v10 = vld [vmem:[#allocation22 + $0x98] sm:$0xff] }
 0x79c   :  { %5320 = vmatprep.subr.bf16.mxu0 %v7469_v25  ;;  %v7501_v19 = vcombine.high %v1995_v14, %v1999_v15  ;;  %v1875_v20 = vld [vmem:[#allocation22 + $0xb90] sm:$0xff]  ;;  %v7500_v24 = vcombine.low %v1995_v14, %v1999_v15  ;;  %v1528_v27 = vld [vmem:[#allocation22 + $0xb8] sm:$0xff] }
 0x79d   :  { %v1879_v0 = vld [vmem:[#allocation22 + $0xbb0] sm:$0xff]  ;;  %v1652_v15 = vld [vmem:[#allocation22 + $0x498] sm:$0xff] }
 0x79e   :  { %5280 = vmatpush1.bf16.msra.mxu1 %v7340_v32  ;;  %v2003_v1 = vld [vmem:[#allocation22 + $0xf90] sm:$0xff]  ;;  %v7381_v25 = vcombine.high %v1875_v20, %v1879_v0 }
 0x79f   :  { %5321 = vmatpush1.bf16.msra.mxu0 %v7468_v5  ;;  %5281 = vmatprep.subr.bf16.mxu1 %v7349_v33  ;;  %v2007_v59 = vld [vmem:[#allocation22 + $0xfb0] sm:$0xff]  ;;  %v7380_v5 = vcombine.low %v1875_v20, %v1879_v0  ;;  %v1532_v0 = vld [vmem:[#allocation22 + $0xd8] sm:$0xff] }
 0x7a0   :  { %5322 = vmatprep.subr.bf16.mxu0 %v7477_v62  ;;  %v7509_v26 = vcombine.high %v2003_v1, %v2007_v59  ;;  %v1883_v13 = vld [vmem:[#allocation22 + $0xbd0] sm:$0xff]  ;;  %v7508_v33 = vcombine.low %v2003_v1, %v2007_v59  ;;  %v1536_v1 = vld [vmem:[#allocation22 + $0xf8] sm:$0xff] }
 0x7a1   :  { %v1887_v29 = vld [vmem:[#allocation22 + $0xbf0] sm:$0xff]  ;;  %v1660_v59 = vld [vmem:[#allocation22 + $0x4d8] sm:$0xff] }
 0x7a2   :  { %5282 = vmatpush1.bf16.msra.mxu1 %v7348_v41  ;;  %v2011_v31 = vld [vmem:[#allocation22 + $0xfd0] sm:$0xff]  ;;  %v7389_v62 = vcombine.high %v1883_v13, %v1887_v29  ;;  %v1640_v41 = vld [vmem:[#allocation22 + $0x438] sm:$0xff] }
 0x7a3   :  { %5323 = vmatpush1.bf16.msra.mxu0 %v7476_v46  ;;  %5283 = vmatprep.subr.bf16.mxu1 %v7357_v49  ;;  %v2015_v32 = vld [vmem:[#allocation22 + $0xff0] sm:$0xff]  ;;  %v7388_v46 = vcombine.low %v1883_v13, %v1887_v29  ;;  %v7143_v51 = vcombine.high %v1636_v40, %v1640_v41  ;;  %v1540_v13 = vld [vmem:[#allocation22 + $0x118] sm:$0xff] }
 0x7a4   :  { %5324 = vmatprep.subr.bf16.mxu0 %v7485_v50  ;;  %v7517_v37 = vcombine.high %v2011_v31, %v2015_v32  ;;  %v7516_v49 = vcombine.low %v2011_v31, %v2015_v32  ;;  %v7015_v50 = vcombine.high %v1508_v63, %v1512_v39  ;;  %v1544_v29 = vld [vmem:[#allocation22 + $0x138] sm:$0xff] }
 0x7a5   :  { %v1668_v31 = vld [vmem:[#allocation22 + $0x518] sm:$0xff] }
 0x7a6   :  { %5284 = vmatpush1.bf16.msra.mxu1 %v7356_v55  ;;  %v1644_v55 = vld [vmem:[#allocation22 + $0x458] sm:$0xff] }
 0x7a7   :  { %5325 = vmatpush1.bf16.msra.mxu0 %v7484_v9  ;;  %5285 = vmatprep.subr.bf16.mxu1 %v7365_v22  ;;  %v1648_v9 = vld [vmem:[#allocation22 + $0x478] sm:$0xff]  ;;  %v7142_v22 = vcombine.low %v1636_v40, %v1640_v41  ;;  %v7046_v41 = vcombine.low %v1540_v13, %v1544_v29 }
 0x7a8   :  { %5326 = vmatprep.subr.bf16.mxu0 %v7493_v7  ;;  %v7023_v7 = vcombine.high %v1516_v53, %v1520_v54  ;;  %v7151_v14 = vcombine.high %v1644_v55, %v1648_v9  ;;  %v1672_v32 = vld [vmem:[#allocation22 + $0x538] sm:$0xff] }
 0x7a9   :  { %v1552_v63 = vld [vmem:[#allocation22 + $0x178] sm:$0xff] }
 0x7aa   :  { %5286 = vmatpush1.bf16.msra.mxu1 %v7364_v16  ;;  %v1656_v16 = vld [vmem:[#allocation22 + $0x4b8] sm:$0xff] }
 0x7ab   :  { %5327 = vmatpush1.bf16.msra.mxu0 %v7492_v18  ;;  %5287 = vmatprep.subr.bf16.mxu1 %v7373_v23  ;;  %v7022_v18 = vcombine.low %v1516_v53, %v1520_v54  ;;  %v7150_v23 = vcombine.low %v1644_v55, %v1648_v9  ;;  %v7159_v20 = vcombine.high %v1652_v15, %v1656_v16  ;;  %v1676_v39 = vld [vmem:[#allocation22 + $0x558] sm:$0xff] }
 0x7ac   :  { %5328 = vmatprep.subr.bf16.mxu0 %v7501_v19  ;;  %v7031_v19 = vcombine.high %v1524_v10, %v1528_v27  ;;  %v1680_v40 = vld [vmem:[#allocation22 + $0x578] sm:$0xff] }
 0x7ad   :  { %v1560_v53 = vld [vmem:[#allocation22 + $0x1b8] sm:$0xff]  ;;  %v7182_v9 = vcombine.low %v1676_v39, %v1680_v40 }
 0x7ae   :  { %5288 = vmatpush1.bf16.msra.mxu1 %v7372_v8  ;;  %v1664_v8 = vld [vmem:[#allocation22 + $0x4f8] sm:$0xff] }
 0x7af   :  { %5329 = vmatpush1.bf16.msra.mxu0 %v7500_v24  ;;  %5289 = vmatprep.subr.bf16.mxu1 %v7381_v25  ;;  %v7030_v24 = vcombine.low %v1524_v10, %v1528_v27  ;;  %v7158_v25 = vcombine.low %v1652_v15, %v1656_v16  ;;  %v1684_v54 = vld [vmem:[#allocation22 + $0x598] sm:$0xff] }
 0x7b0   :  { %5330 = vmatprep.subr.bf16.mxu0 %v7509_v26  ;;  %v7039_v26 = vcombine.high %v1532_v0, %v1536_v1  ;;  %v1564_v27 = vld [vmem:[#allocation22 + $0x1d8] sm:$0xff] }
 0x7b2   :  { %5290 = vmatpush1.bf16.msra.mxu1 %v7380_v5  ;;  %v7166_v5 = vcombine.low %v1660_v59, %v1664_v8 }
 0x7b3   :  { %5331 = vmatpush1.bf16.msra.mxu0 %v7508_v33  ;;  %5291 = vmatprep.subr.bf16.mxu1 %v7389_v62  ;;  %v7047_v33 = vcombine.high %v1540_v13, %v1544_v29  ;;  %v7175_v62 = vcombine.high %v1668_v31, %v1672_v32 }
 0x7b4   :  { %5332 = vmatprep.subr.bf16.mxu0 %v7517_v37  ;;  %v1548_v37 = vld [vmem:[#allocation22 + $0x158] sm:$0xff] }
 0x7b5   :  { %v7054_v55 = vcombine.low %v1548_v37, %v1552_v63 }
 0x7b6   :  { %5292 = vmatpush1.bf16.msra.mxu1 %v7388_v46  ;;  %v7174_v46 = vcombine.low %v1668_v31, %v1672_v32  ;;  %v1572_v31 = vld [vmem:[#allocation22 + $0x218] sm:$0xff] }
 0x7b7   :  { %5333 = vmatpush1.bf16.msra.mxu0 %v7516_v49  ;;  %5343 = vmatprep.subr.bf16.mxu1 %v7015_v50  ;;  %v7055_v49 = vcombine.high %v1548_v37, %v1552_v63  ;;  %v7183_v50 = vcombine.high %v1676_v39, %v1680_v40  ;;  %v1576_v32 = vld [vmem:[#allocation22 + $0x238] sm:$0xff] }
 0x7b8   :  { %5384 = vmatprep.subr.bf16.mxu0 %v7143_v51  ;;  %v1556_v51 = vld [vmem:[#allocation22 + $0x198] sm:$0xff] }
 0x7b9   :  { %5294 = vmatmul.mubr.bf16.vlgmr.msra.gmra.mrb[52].mxu1 %v9185_v44  ;;  %v1580_v63 = vld [vmem:[#allocation22 + $0x258] sm:$0xff] }
 0x7ba   :  { %5335 = vmatmul.mubr.bf16.vlgmr.msra.gmra.mrb[56].mxu0 %v9189_v48  ;;  %5344 = vmatpush1.bf16.msra.mxu1 %v7014_v21  ;;  %v1688_v21 = vld [vmem:[#allocation22 + $0x5b8] sm:$0xff] }
 0x7bb   :  { %5375 = vmatprep.mubr.bf16.mxu1 %v9155_v35  ;;  %5385 = vmatpush1.bf16.msra.mxu0 %v7142_v22  ;;  %v7167_v35 = vcombine.high %v1660_v59, %v1664_v8  ;;  %v7063_v22 = vcombine.high %v1556_v51, %v1560_v53  ;;  %v7191_v10 = vcombine.high %v1684_v54, %v1688_v21  ;;  %v1584_v39 = vld [vmem:[#allocation22 + $0x278] sm:$0xff] }
 0x7bc   :  { %5416 = vmatprep.mubr.bf16.mxu0 %v9159_v28  ;;  %5345 = vmatprep.subr.bf16.mxu1 %v7023_v7  ;;  %v7038_v28 = vcombine.low %v1532_v0, %v1536_v1  ;;  %v7062_v59 = vcombine.low %v1556_v51, %v1560_v53  ;;  %v1708_v40 = vld [vmem:[#allocation22 + $0x658] sm:$0xff] }
 0x7bd   :  { %5386 = vmatprep.subr.bf16.mxu0 %v7151_v14  ;;  %v1568_v14 = vld [vmem:[#allocation22 + $0x1f8] sm:$0xff] }
 0x7be   :  { %5346 = vmatpush1.bf16.msra.mxu1 %v7022_v18  ;;  %v1588_v53 = vld [vmem:[#allocation22 + $0x298] sm:$0xff] }
 0x7bf   :  { %5387 = vmatpush1.bf16.msra.mxu0 %v7150_v23  ;;  %5347 = vmatprep.subr.bf16.mxu1 %v7031_v19  ;;  %v1692_v23 = vld [vmem:[#allocation22 + $0x5d8] sm:$0xff] }
 0x7c0   :  { %5388 = vmatprep.subr.bf16.mxu0 %v7159_v20  ;;  %v1696_v19 = vld [vmem:[#allocation22 + $0x5f8] sm:$0xff] }
 0x7c1   :  { %v7199_v29 = vcombine.high %v1692_v23, %v1696_v19 }
 0x7c2   :  { %5348 = vmatpush1.bf16.msra.mxu1 %v7030_v24 }
 0x7c3   :  { %5389 = vmatpush1.bf16.msra.mxu0 %v7158_v25  ;;  %5349 = vmatprep.subr.bf16.mxu1 %v7039_v26  ;;  %v7190_v26 = vcombine.low %v1684_v54, %v1688_v21  ;;  %v1592_v54 = vld [vmem:[#allocation22 + $0x2b8] sm:$0xff] }
 0x7c4   :  { %5390 = vmatprep.subr.bf16.mxu0 %v7167_v35  ;;  %v7071_v35 = vcombine.high %v1564_v27, %v1568_v14  ;;  %v1716_v21 = vld [vmem:[#allocation22 + $0x698] sm:$0xff] }
 0x7c6   :  { %5350 = vmatpush1.bf16.msra.mxu1 %v7038_v28  ;;  %v1704_v28 = vld [vmem:[#allocation22 + $0x638] sm:$0xff] }
 0x7c7   :  { %5391 = vmatpush1.bf16.msra.mxu0 %v7166_v5  ;;  %5351 = vmatprep.subr.bf16.mxu1 %v7047_v33  ;;  %v7070_v5 = vcombine.low %v1564_v27, %v1568_v14  ;;  %v7198_v33 = vcombine.low %v1692_v23, %v1696_v19  ;;  %v1596_v27 = vld [vmem:[#allocation22 + $0x2d8] sm:$0xff] }
 0x7c8   :  { %5392 = vmatprep.subr.bf16.mxu0 %v7175_v62  ;;  %v7079_v62 = vcombine.high %v1572_v31, %v1576_v32  ;;  %v1600_v14 = vld [vmem:[#allocation22 + $0x2f8] sm:$0xff] }
 0x7c9   :  { %v7103_v19 = vcombine.high %v1596_v27, %v1600_v14 }
 0x7ca   :  { %5352 = vmatpush1.bf16.msra.mxu1 %v7046_v41  ;;  %v1712_v41 = vld [vmem:[#allocation22 + $0x678] sm:$0xff] }
 0x7cb   :  { %5393 = vmatpush1.bf16.msra.mxu0 %v7174_v46  ;;  %5353 = vmatprep.subr.bf16.mxu1 %v7055_v49  ;;  %v7078_v46 = vcombine.low %v1572_v31, %v1576_v32  ;;  %v7215_v51 = vcombine.high %v1708_v40, %v1712_v41  ;;  %v1616_v31 = vld [vmem:[#allocation22 + $0x378] sm:$0xff] }
 0x7cc   :  { %v5049_v7 = vpop.f32.mrb[40].mxu1  ;;  %5394 = vmatprep.subr.bf16.mxu0 %v7183_v50  ;;  %v7087_v50 = vcombine.high %v1580_v63, %v1584_v39  ;;  %v1740_v32 = vld [vmem:[#allocation22 + $0x758] sm:$0xff] }
 0x7cd   :  { %v5050_v15 = vadd.f32 %v5049_v7, %v9201_v3  ;;  %v5090_v16 = vpop.f32.mrb[44].mxu0  ;;  %v5051_v18 = vpop.f32.mrb[41].mxu1  ;;  %v7095_v7 = vcombine.high %v1588_v53, %v1592_v54 }
 0x7ce   :  { %v5052_v20 = vadd.f32 %v5051_v18, %v9205_v17  ;;  %v5092_v0 = vpop.f32.mrb[45].mxu0  ;;  %v5053_v1 = vpop.f32.mrb[42].mxu1  ;;  %5354 = vmatpush1.bf16.msra.mxu1 %v7054_v55  ;;  %v1700_v17 = vld [vmem:[#allocation22 + $0x618] sm:$0xff]  ;;  %v7094_v18 = vcombine.low %v1588_v53, %v1592_v54 }
 0x7cf   :  { %v9241_v8 = vadd.f32 %v5090_v16, %v5050_v15  ;;  %v5094_v24 = vpop.f32.mrb[46].mxu0  ;;  %5395 = vmatpush1.bf16.msra.mxu0 %v7182_v9  ;;  %v5054_v25 = vpop.f32.mrb[43].mxu1  ;;  %5355 = vmatprep.subr.bf16.mxu1 %v7063_v22  ;;  %v7207_v37 = vcombine.high %v1700_v17, %v1704_v28  ;;  %v7206_v49 = vcombine.low %v1700_v17, %v1704_v28  ;;  %v1720_v55 = vld [vmem:[#allocation22 + $0x6b8] sm:$0xff] }
 0x7d0   :  { %v9243_v13 = vadd.f32 %v5092_v0, %v5052_v20  ;;  %v5095_v3 = vpop.f32.mrb[47].mxu0  ;;  %5396 = vmatprep.subr.bf16.mxu0 %v7191_v10  ;;  %v7086_v9 = vcombine.low %v1580_v63, %v1584_v39  ;;  %v7214_v22 = vcombine.low %v1708_v40, %v1712_v41  ;;  %v7223_v10 = vcombine.high %v1716_v21, %v1720_v55  ;;  %v1724_v15 = vld [vmem:[#allocation22 + $0x6d8] sm:$0xff] }
 0x7d1   :  { %v1728_v16 = vld [vmem:[#allocation22 + $0x6f8] sm:$0xff]  ;;  %v7222_v23 = vcombine.low %v1716_v21, %v1720_v55  ;;  %v7102_v25 = vcombine.low %v1596_v27, %v1600_v14 }
 0x7d2   :  { %5356 = vmatpush1.bf16.msra.mxu1 %v7062_v59  ;;  %v7231_v20 = vcombine.high %v1724_v15, %v1728_v16  ;;  %v1604_v0 = vld [vmem:[#allocation22 + $0x318] sm:$0xff] }
 0x7d3   :  { %5397 = vmatpush1.bf16.msra.mxu0 %v7190_v26  ;;  %5357 = vmatprep.subr.bf16.mxu1 %v7071_v35  ;;  %v1608_v1 = vld [vmem:[#allocation22 + $0x338] sm:$0xff]  ;;  %v7230_v26 = vcombine.low %v1724_v15, %v1728_v16 }
 0x7d4   :  { %5398 = vmatprep.subr.bf16.mxu0 %v7199_v29  ;;  %v1732_v59 = vld [vmem:[#allocation22 + $0x718] sm:$0xff]  ;;  %v7111_v35 = vcombine.high %v1604_v0, %v1608_v1  ;;  %v7110_v28 = vcombine.low %v1604_v0, %v1608_v1 }
 0x7d5   :  { %v1736_v24 = vld [vmem:[#allocation22 + $0x738] sm:$0xff] }
 0x7d6   :  { %5358 = vmatpush1.bf16.msra.mxu1 %v7070_v5  ;;  %v7239_v3 = vcombine.high %v1732_v59, %v1736_v24  ;;  %v1612_v29 = vld [vmem:[#allocation22 + $0x358] sm:$0xff]  ;;  %v7238_v5 = vcombine.low %v1732_v59, %v1736_v24 }
 0x7d7   :  { %5399 = vmatpush1.bf16.msra.mxu0 %v7198_v33  ;;  %5359 = vmatprep.subr.bf16.mxu1 %v7079_v62  ;;  %v1744_v17 = vld [vmem:[#allocation22 + $0x778] sm:$0xff]  ;;  %v7119_v33 = vcombine.high %v1612_v29, %v1616_v31  ;;  %v7118_v41 = vcombine.low %v1612_v29, %v1616_v31 }
 0x7d8   :  { %5400 = vmatprep.subr.bf16.mxu0 %v7207_v37  ;;  %v7247_v62 = vcombine.high %v1740_v32, %v1744_v17  ;;  %v1620_v37 = vld [vmem:[#allocation22 + $0x398] sm:$0xff] }
 0x7d9   :  { %v1624_v63 = vld [vmem:[#allocation22 + $0x3b8] sm:$0xff] }
 0x7da   :  { %5360 = vmatpush1.bf16.msra.mxu1 %v7078_v46  ;;  %v1748_v39 = vld [vmem:[#allocation22 + $0x798] sm:$0xff]  ;;  %v7246_v46 = vcombine.low %v1740_v32, %v1744_v17  ;;  %v7126_v55 = vcombine.low %v1620_v37, %v1624_v63 }
 0x7db   :  { %5401 = vmatpush1.bf16.msra.mxu0 %v7206_v49  ;;  %5361 = vmatprep.subr.bf16.mxu1 %v7087_v50  ;;  %v1752_v40 = vld [vmem:[#allocation22 + $0x7b8] sm:$0xff]  ;;  %v7127_v49 = vcombine.high %v1620_v37, %v1624_v63 }
 0x7dc   :  { %5402 = vmatprep.subr.bf16.mxu0 %v7215_v51  ;;  %v7255_v50 = vcombine.high %v1748_v39, %v1752_v40  ;;  %v1628_v51 = vld [vmem:[#allocation22 + $0x3d8] sm:$0xff] }
 0x7dd   :  { %v1632_v53 = vld [vmem:[#allocation22 + $0x3f8] sm:$0xff] }
 0x7de   :  { %5362 = vmatpush1.bf16.msra.mxu1 %v7086_v9  ;;  %v1756_v54 = vld [vmem:[#allocation22 + $0x7d8] sm:$0xff]  ;;  %v7254_v9 = vcombine.low %v1748_v39, %v1752_v40  ;;  %v7134_v16 = vcombine.low %v1628_v51, %v1632_v53 }
 0x7df   :  { %5403 = vmatpush1.bf16.msra.mxu0 %v7214_v22  ;;  %5363 = vmatprep.subr.bf16.mxu1 %v7095_v7  ;;  %v1760_v21 = vld [vmem:[#allocation22 + $0x7f8] sm:$0xff]  ;;  %v7135_v22 = vcombine.high %v1628_v51, %v1632_v53 }
 0x7e0   :  { %5404 = vmatprep.subr.bf16.mxu0 %v7223_v10  ;;  %v7263_v7 = vcombine.high %v1756_v54, %v1760_v21  ;;  %v1764_v10 = vld [vmem:[#allocation22 + $0x818] sm:$0xff] }
 0x7e1   :  { %v1768_v27 = vld [vmem:[#allocation22 + $0x838] sm:$0xff] }
 0x7e2   :  { %5364 = vmatpush1.bf16.msra.mxu1 %v7094_v18  ;;  %v1892_v14 = vld [vmem:[#allocation22 + $0xc18] sm:$0xff]  ;;  %v7262_v18 = vcombine.low %v1756_v54, %v1760_v21  ;;  %v7270_v1 = vcombine.low %v1764_v10, %v1768_v27 }
 0x7e3   :  { %5405 = vmatpush1.bf16.msra.mxu0 %v7222_v23  ;;  %5365 = vmatprep.subr.bf16.mxu1 %v7103_v19  ;;  %v1896_v15 = vld [vmem:[#allocation22 + $0xc38] sm:$0xff]  ;;  %v7271_v23 = vcombine.high %v1764_v10, %v1768_v27 }
 0x7e4   :  { %5406 = vmatprep.subr.bf16.mxu0 %v7231_v20  ;;  %v7399_v19 = vcombine.high %v1892_v14, %v1896_v15  ;;  %v1772_v20 = vld [vmem:[#allocation22 + $0x858] sm:$0xff] }
 0x7e5   :  { %v1776_v0 = vld [vmem:[#allocation22 + $0x878] sm:$0xff] }
 0x7e6   :  { %5366 = vmatpush1.bf16.msra.mxu1 %v7102_v25  ;;  %v1900_v59 = vld [vmem:[#allocation22 + $0xc58] sm:$0xff]  ;;  %v7398_v25 = vcombine.low %v1892_v14, %v1896_v15  ;;  %v7278_v17 = vcombine.low %v1772_v20, %v1776_v0 }
 0x7e7   :  { %5407 = vmatpush1.bf16.msra.mxu0 %v7230_v26  ;;  %5367 = vmatprep.subr.bf16.mxu1 %v7111_v35  ;;  %v1904_v24 = vld [vmem:[#allocation22 + $0xc78] sm:$0xff]  ;;  %v7279_v26 = vcombine.high %v1772_v20, %v1776_v0 }
 0x7e8   :  { %5408 = vmatprep.subr.bf16.mxu0 %v7239_v3  ;;  %v1780_v35 = vld [vmem:[#allocation22 + $0x898] sm:$0xff]  ;;  %v7407_v29 = vcombine.high %v1900_v59, %v1904_v24 }
 0x7e9   :  { %v1784_v3 = vld [vmem:[#allocation22 + $0x8b8] sm:$0xff] }
 0x7ea   :  { %5368 = vmatpush1.bf16.msra.mxu1 %v7110_v28  ;;  %v1908_v31 = vld [vmem:[#allocation22 + $0xc98] sm:$0xff]  ;;  %v7406_v28 = vcombine.low %v1900_v59, %v1904_v24  ;;  %v7286_v39 = vcombine.low %v1780_v35, %v1784_v3 }
 0x7eb   :  { %5409 = vmatpush1.bf16.msra.mxu0 %v7238_v5  ;;  %5369 = vmatprep.subr.bf16.mxu1 %v7119_v33  ;;  %v1912_v32 = vld [vmem:[#allocation22 + $0xcb8] sm:$0xff]  ;;  %v7287_v5 = vcombine.high %v1780_v35, %v1784_v3 }
 0x7ec   :  { %5410 = vmatprep.subr.bf16.mxu0 %v7247_v62  ;;  %v7415_v33 = vcombine.high %v1908_v31, %v1912_v32  ;;  %v1788_v62 = vld [vmem:[#allocation22 + $0x8d8] sm:$0xff] }
 0x7ed   :  { %v1792_v37 = vld [vmem:[#allocation22 + $0x8f8] sm:$0xff] }
 0x7ee   :  { %5370 = vmatpush1.bf16.msra.mxu1 %v7118_v41  ;;  %v1920_v63 = vld [vmem:[#allocation22 + $0xcf8] sm:$0xff]  ;;  %v7295_v40 = vcombine.high %v1788_v62, %v1792_v37 }
 0x7ef   :  { %5411 = vmatpush1.bf16.msra.mxu0 %v7246_v46  ;;  %5371 = vmatprep.subr.bf16.mxu1 %v7127_v49  ;;  %v1796_v41 = vld [vmem:[#allocation22 + $0x918] sm:$0xff] }
 0x7f0   :  { %5412 = vmatprep.subr.bf16.mxu0 %v7255_v50  ;;  %v1800_v46 = vld [vmem:[#allocation22 + $0x938] sm:$0xff] }
 0x7f1   :  { %v1924_v49 = vld [vmem:[#allocation22 + $0xd18] sm:$0xff]  ;;  %v7303_v53 = vcombine.high %v1796_v41, %v1800_v46 }
 0x7f2   :  { %5372 = vmatpush1.bf16.msra.mxu1 %v7126_v55  ;;  %v1928_v50 = vld [vmem:[#allocation22 + $0xd38] sm:$0xff] }
 0x7f3   :  { %5413 = vmatpush1.bf16.msra.mxu0 %v7254_v9  ;;  %5373 = vmatprep.subr.bf16.mxu1 %v7135_v22  ;;  %v7431_v54 = vcombine.high %v1924_v49, %v1928_v50  ;;  %v1804_v21 = vld [vmem:[#allocation22 + $0x958] sm:$0xff]  ;;  %v7430_v10 = vcombine.low %v1924_v49, %v1928_v50 }
 0x7f4   :  { %5414 = vmatprep.subr.bf16.mxu0 %v7263_v7  ;;  %v1808_v55 = vld [vmem:[#allocation22 + $0x978] sm:$0xff]  ;;  %v7302_v7 = vcombine.low %v1796_v41, %v1800_v46 }
 0x7f5   :  { %v1932_v9 = vld [vmem:[#allocation22 + $0xd58] sm:$0xff]  ;;  %v7311_v27 = vcombine.high %v1804_v21, %v1808_v55 }
 0x7f6   :  { %5374 = vmatpush1.bf16.msra.mxu1 %v7134_v16  ;;  %v1936_v22 = vld [vmem:[#allocation22 + $0xd78] sm:$0xff] }
 0x7f7   :  { %5415 = vmatpush1.bf16.msra.mxu0 %v7262_v18  ;;  %5425 = vmatprep.subr.bf16.mxu1 %v7271_v23  ;;  %v7439_v14 = vcombine.high %v1932_v9, %v1936_v22  ;;  %v1812_v15 = vld [vmem:[#allocation22 + $0x998] sm:$0xff]  ;;  %v7438_v20 = vcombine.low %v1932_v9, %v1936_v22 }
 0x7f8   :  { %5466 = vmatprep.subr.bf16.mxu0 %v7399_v19  ;;  %v1816_v16 = vld [vmem:[#allocation22 + $0x9b8] sm:$0xff]  ;;  %v7310_v19 = vcombine.low %v1804_v21, %v1808_v55 }
 0x7f9   :  { %5376 = vmatmul.mubr.bf16.vlgmr.msra.gmra.mrb[56].mxu1 %v9165_v11  ;;  %v1916_v11 = vld [vmem:[#allocation22 + $0xcd8] sm:$0xff]  ;;  %v7319_v0 = vcombine.high %v1812_v15, %v1816_v16 }
 0x7fa   :  { %5417 = vmatmul.mubr.bf16.vlgmr.msra.gmra.mrb[60].mxu0 %v9169_v12  ;;  %5426 = vmatpush1.bf16.msra.mxu1 %v7270_v1  ;;  %v7414_v12 = vcombine.low %v1908_v31, %v1912_v32  ;;  %v7422_v51 = vcombine.low %v1916_v11, %v1920_v63  ;;  %v1940_v18 = vld [vmem:[#allocation22 + $0xd98] sm:$0xff] }
 0x7fb   :  { %5457 = vmatprep.mubr.bf16.mxu1 %v9173_v2  ;;  %5467 = vmatpush1.bf16.msra.mxu0 %v7398_v25  ;;  %v7423_v2 = vcombine.high %v1916_v11, %v1920_v63  ;;  %v1944_v23 = vld [vmem:[#allocation22 + $0xdb8] sm:$0xff] }
 0x7fc   :  { %5498 = vmatprep.mubr.bf16.mxu0 %v9179_v4  ;;  %5427 = vmatprep.subr.bf16.mxu1 %v7279_v26  ;;  %v7294_v4 = vcombine.low %v1788_v62, %v1792_v37  ;;  %v7447_v59 = vcombine.high %v1940_v18, %v1944_v23  ;;  %v1820_v24 = vld [vmem:[#allocation22 + $0x9d8] sm:$0xff]  ;;  %v7446_v11 = vcombine.low %v1940_v18, %v1944_v23 }
 0x7fd   :  { %5468 = vmatprep.subr.bf16.mxu0 %v7407_v29  ;;  %v1824_v25 = vld [vmem:[#allocation22 + $0x9f8] sm:$0xff] }
 0x7fe   :  { %5428 = vmatpush1.bf16.msra.mxu1 %v7278_v17  ;;  %v1948_v29 = vld [vmem:[#allocation22 + $0xdd8] sm:$0xff]  ;;  %v7327_v63 = vcombine.high %v1820_v24, %v1824_v25  ;;  %v7326_v46 = vcombine.low %v1820_v24, %v1824_v25 }
 0x7ff   :  { %5469 = vmatpush1.bf16.msra.mxu0 %v7406_v28  ;;  %5429 = vmatprep.subr.bf16.mxu1 %v7287_v5  ;;  %v1952_v31 = vld [vmem:[#allocation22 + $0xdf8] sm:$0xff]  ;;  %v7318_v5 = vcombine.low %v1812_v15, %v1816_v16 }
 0x800   :  { %5470 = vmatprep.subr.bf16.mxu0 %v7415_v33  ;;  %v1960_v41 = vld [vmem:[#allocation22 + $0xe38] sm:$0xff]  ;;  %v7454_v49 = vcombine.low %v1948_v29, %v1952_v31 }
 0x801   :  { %v1968_v21 = vld [vmem:[#allocation22 + $0xe78] sm:$0xff] }
 0x802   :  { %5430 = vmatpush1.bf16.msra.mxu1 %v7286_v39  ;;  %v1976_v15 = vld [vmem:[#allocation22 + $0xeb8] sm:$0xff] }
 0x803   :  { %5471 = vmatpush1.bf16.msra.mxu0 %v7414_v12  ;;  %5431 = vmatprep.subr.bf16.mxu1 %v7295_v40  ;;  %v7455_v12 = vcombine.high %v1948_v29, %v1952_v31  ;;  %v1828_v40 = vld [vmem:[#allocation22 + $0xa18] sm:$0xff] }
 0x804   :  { %5472 = vmatprep.subr.bf16.mxu0 %v7423_v2  ;;  %v1832_v2 = vld [vmem:[#allocation22 + $0xa38] sm:$0xff] }
 0x805   :  { %v7335_v50 = vcombine.high %v1828_v40, %v1832_v2  ;;  %v7334_v55 = vcombine.low %v1828_v40, %v1832_v2  ;;  %v1864_v29 = vld [vmem:[#allocation22 + $0xb38] sm:$0xff] }
 0x806   :  { %5432 = vmatpush1.bf16.msra.mxu1 %v7294_v4  ;;  %v1988_v31 = vld [vmem:[#allocation22 + $0xf18] sm:$0xff] }
 0x807   :  { %5473 = vmatpush1.bf16.msra.mxu0 %v7422_v51  ;;  %5433 = vmatprep.subr.bf16.mxu1 %v7303_v53  ;;  %v1836_v51 = vld [vmem:[#allocation22 + $0xa58] sm:$0xff] }
 0x808   :  { %5474 = vmatprep.subr.bf16.mxu0 %v7431_v54  ;;  %v1840_v53 = vld [vmem:[#allocation22 + $0xa78] sm:$0xff] }
 0x809   :  { %v1964_v54 = vld [vmem:[#allocation22 + $0xe58] sm:$0xff]  ;;  %v7343_v22 = vcombine.high %v1836_v51, %v1840_v53  ;;  %v7342_v16 = vcombine.low %v1836_v51, %v1840_v53 }
 0x80a   :  { %5434 = vmatpush1.bf16.msra.mxu1 %v7302_v7  ;;  %v7471_v7 = vcombine.high %v1964_v54, %v1968_v21  ;;  %v7470_v18 = vcombine.low %v1964_v54, %v1968_v21 }
 0x80b   :  { %5475 = vmatpush1.bf16.msra.mxu0 %v7430_v10  ;;  %5435 = vmatprep.subr.bf16.mxu1 %v7311_v27  ;;  %v1844_v10 = vld [vmem:[#allocation22 + $0xa98] sm:$0xff] }
 0x80c   :  { %v5131_v1 = vpop.f32.mrb[44].mxu1  ;;  %5476 = vmatprep.subr.bf16.mxu0 %v7439_v14  ;;  %v1848_v27 = vld [vmem:[#allocation22 + $0xab8] sm:$0xff] }
 0x80d   :  { %v5132_v26 = vadd.f32 %v5131_v1, %v9241_v8  ;;  %v5172_v35 = vpop.f32.mrb[48].mxu0  ;;  %v5133_v3 = vpop.f32.mrb[45].mxu1  ;;  %v1972_v14 = vld [vmem:[#allocation22 + $0xe98] sm:$0xff]  ;;  %v7351_v23 = vcombine.high %v1844_v10, %v1848_v27  ;;  %v7350_v24 = vcombine.low %v1844_v10, %v1848_v27 }
 0x80e   :  { %v5134_v32 = vadd.f32 %v5133_v3, %v9243_v13  ;;  %v5174_v17 = vpop.f32.mrb[49].mxu0  ;;  %v5135_v28 = vpop.f32.mrb[46].mxu1  ;;  %5436 = vmatpush1.bf16.msra.mxu1 %v7310_v19  ;;  %v1956_v13 = vld [vmem:[#allocation22 + $0xe18] sm:$0xff]  ;;  %v7479_v19 = vcombine.high %v1972_v14, %v1976_v15  ;;  %v7478_v25 = vcombine.low %v1972_v14, %v1976_v15 }
 0x80f   :  { %v9251_v33 = vadd.f32 %v5172_v35, %v5132_v26  ;;  %v5176_v62 = vpop.f32.mrb[50].mxu0  ;;  %5477 = vmatpush1.bf16.msra.mxu0 %v7438_v20  ;;  %v5136_v37 = vpop.f32.mrb[47].mxu1  ;;  %5437 = vmatprep.subr.bf16.mxu1 %v7319_v0  ;;  %v7463_v4 = vcombine.high %v1956_v13, %v1960_v41  ;;  %v7462_v9 = vcombine.low %v1956_v13, %v1960_v41  ;;  %v1852_v20 = vld [vmem:[#allocation22 + $0xad8] sm:$0xff] }
 0x810   :  { %v9253_v39 = vadd.f32 %v5174_v17, %v5134_v32  ;;  %v5177_v8 = vpop.f32.mrb[51].mxu0  ;;  %5478 = vmatprep.subr.bf16.mxu0 %v7447_v59  ;;  %v1856_v0 = vld [vmem:[#allocation22 + $0xaf8] sm:$0xff] }
 0x811   :  { %v1980_v1 = vld [vmem:[#allocation22 + $0xed8] sm:$0xff]  ;;  %v7359_v26 = vcombine.high %v1852_v20, %v1856_v0  ;;  %v7358_v17 = vcombine.low %v1852_v20, %v1856_v0  ;;  %v7852_v20 = vld [vmem:[#allocation26 + $0x4] ss:$8 sps:$4 sm:$0xff]  }
 0x812   :  { %5438 = vmatpush1.bf16.msra.mxu1 %v7318_v5  ;;  %v1984_v59 = vld [vmem:[#allocation22 + $0xef8] sm:$0xff] }
 0x813   :  { %5479 = vmatpush1.bf16.msra.mxu0 %v7446_v11  ;;  %5439 = vmatprep.subr.bf16.mxu1 %v7327_v63  ;;  %v7487_v35 = vcombine.high %v1980_v1, %v1984_v59  ;;  %v1860_v3 = vld [vmem:[#allocation22 + $0xb18] sm:$0xff]  ;;  %v7486_v28 = vcombine.low %v1980_v1, %v1984_v59  ;;  %v7850_v59 = vld [vmem:[#allocation26] ss:$8 sps:$4 sm:$0xff]  }
 0x814   :  { %5480 = vmatprep.subr.bf16.mxu0 %v7455_v12  ;;  %v1992_v32 = vld [vmem:[#allocation22 + $0xf38] sm:$0xff]  ;;  %v7367_v5 = vcombine.high %v1860_v3, %v1864_v29  ;;  %v7366_v12 = vcombine.low %v1860_v3, %v1864_v29  ;;  %v7858_v3 = vld [vmem:[#allocation26 + $0x24] ss:$8 sps:$4 sm:$0xff]  }
 0x815   :  { %v7495_v62 = vcombine.high %v1988_v31, %v1992_v32  ;;  %v1868_v37 = vld [vmem:[#allocation22 + $0xb58] sm:$0xff]  ;;  %v7494_v40 = vcombine.low %v1988_v31, %v1992_v32  ;;  %v7856_v32 = vld [vmem:[#allocation26 + $0x20] ss:$8 sps:$4 sm:$0xff]  }
 0x816   :  { %5440 = vmatpush1.bf16.msra.mxu1 %v7326_v46  ;;  %v1872_v11 = vld [vmem:[#allocation22 + $0xb78] sm:$0xff] }
 0x817   :  { %5481 = vmatpush1.bf16.msra.mxu0 %v7454_v49  ;;  %5441 = vmatprep.subr.bf16.mxu1 %v7335_v50  ;;  %v1996_v63 = vld [vmem:[#allocation22 + $0xf58] sm:$0xff]  ;;  %v7375_v2 = vcombine.high %v1868_v37, %v1872_v11  ;;  %v7374_v51 = vcombine.low %v1868_v37, %v1872_v11  ;;  %v7862_v11 = vld [vmem:[#allocation26 + $0x40] ss:$8 sps:$4 sm:$0xff]  }
 0x818   :  { %5482 = vmatprep.subr.bf16.mxu0 %v7463_v4  ;;  %v2000_v8 = vld [vmem:[#allocation22 + $0xf78] sm:$0xff]  ;;  %v9255_v4 = vld [vmem:[#allocation25] sm:$0xff] }
 0x819   :  { %v7503_v13 = vcombine.high %v1996_v63, %v2000_v8  ;;  %v1876_v41 = vld [vmem:[#allocation22 + $0xb98] sm:$0xff]  ;;  %v7502_v53 = vcombine.low %v1996_v63, %v2000_v8  ;;  %v7901_v8 = vld [vmem:[#allocation29 + $0x40] ss:$8 sps:$4 sm:$0xff]  }
 0x81a   :  { %5442 = vmatpush1.bf16.msra.mxu1 %v7334_v55  ;;  %v1880_v46 = vld [vmem:[#allocation22 + $0xbb8] sm:$0xff] }
 0x81b   :  { %5483 = vmatpush1.bf16.msra.mxu0 %v7462_v9  ;;  %5443 = vmatprep.subr.bf16.mxu1 %v7343_v22  ;;  %v2004_v49 = vld [vmem:[#allocation22 + $0xf98] sm:$0xff]  ;;  %v7383_v54 = vcombine.high %v1876_v41, %v1880_v46  ;;  %v5516_v22 = vrot.slane %v9255_v4, %v9083_v60  ;;  %v7382_v27 = vcombine.low %v1876_v41, %v1880_v46 }
 0x81c   :  { %5484 = vmatprep.subr.bf16.mxu0 %v7471_v7  ;;  %v2008_v50 = vld [vmem:[#allocation22 + $0xfb8] sm:$0xff] }
 0x81d   :  { %v7511_v21 = vcombine.high %v2004_v49, %v2008_v50  ;;  %v1884_v55 = vld [vmem:[#allocation22 + $0xbd8] sm:$0xff]  ;;  %v7510_v14 = vcombine.low %v2004_v49, %v2008_v50 }
 0x81e   :  { %5444 = vmatpush1.bf16.msra.mxu1 %v7342_v16  ;;  %v1888_v9 = vld [vmem:[#allocation22 + $0xbf8] sm:$0xff] }
 0x81f   :  { %5485 = vmatpush1.bf16.msra.mxu0 %v7470_v18  ;;  %5445 = vmatprep.subr.bf16.mxu1 %v7351_v23  ;;  %v2012_v7 = vld [vmem:[#allocation22 + $0xfd8] sm:$0xff]  ;;  %v7391_v15 = vcombine.high %v1884_v55, %v1888_v9  ;;  %v5550_v18 = vadd.f32 %v5516_v22, %v9233_v6  ;;  %v7390_v23 = vcombine.low %v1884_v55, %v1888_v9  ;;  %v7868_v55 = vld [vmem:[#allocation26 + $0x60] ss:$8 sps:$4 sm:$0xff]  }
 0x820   :  { %5486 = vmatprep.subr.bf16.mxu0 %v7479_v19  ;;  %v2016_v10 = vld [vmem:[#allocation22 + $0xff8] sm:$0xff] }
 0x821   :  { %v7519_v16 = vcombine.high %v2012_v7, %v2016_v10  ;;  %v7518_v19 = vcombine.low %v2012_v7, %v2016_v10  ;;  %v7879_v0 = vld [vmem:[#allocation29 + $0x4] ss:$8 sps:$4 sm:$0xff]   ;;  %v5558_v1 = vmax.f32 %v5550_v18, 0.0  ;;  %v7885_v6 = vld [vmem:[#allocation29 + $0x14] ss:$8 sps:$4 sm:$0xff]  }
 0x822   :  { %5446 = vmatpush1.bf16.msra.mxu1 %v7350_v24  ;;  %v7855_v24 = vld [vmem:[#allocation26 + $0x14] ss:$8 sps:$4 sm:$0xff]   ;;  %v7891_v31 = vld [vmem:[#allocation29 + $0x24] ss:$8 sps:$4 sm:$0xff]  }
 0x823   :  { %5487 = vmatpush1.bf16.msra.mxu0 %v7478_v25  ;;  %5447 = vmatprep.subr.bf16.mxu1 %v7359_v26  ;;  %v7877_v25 = vld [vmem:[#allocation29] ss:$8 sps:$4 sm:$0xff]   ;;  %v5566_v26 = vpack.c.bf16 %v5558_v1, %v5558_v1  ;;  %v7883_v29 = vld [vmem:[#allocation29 + $0x10] ss:$8 sps:$4 sm:$0xff]   ;;  %v7903_v37 = vld [vmem:[#allocation29 + $0x44] ss:$8 sps:$4 sm:$0xff]  }
 0x824   :  { %5488 = vmatprep.subr.bf16.mxu0 %v7487_v35  ;;  %v7853_v35 = vld [vmem:[#allocation26 + $0x10] ss:$8 sps:$4 sm:$0xff]   ;;  %v7867_v63 = vld [vmem:[#allocation26 + $0x54] ss:$8 sps:$4 sm:$0xff]  }
 0x825   :  { %v7907_v41 = vld [vmem:[#allocation29 + $0x50] ss:$8 sps:$4 sm:$0xff]   ;;  %v7933_v1 = vld [vmem:[#allocation29 + $0x94] ss:$8 sps:$4 sm:$0xff]  }
 0x826   :  { %5448 = vmatpush1.bf16.msra.mxu1 %v7358_v17  ;;  %v7861_v17 = vld [vmem:[#allocation26 + $0x34] ss:$8 sps:$4 sm:$0xff]  }
 0x827   :  { %5489 = vmatpush1.bf16.msra.mxu0 %v7486_v28  ;;  %5449 = vmatprep.subr.bf16.mxu1 %v7367_v5  ;;  %v7889_v28 = vld [vmem:[#allocation29 + $0x20] ss:$8 sps:$4 sm:$0xff]   ;;  %v7859_v5 = vld [vmem:[#allocation26 + $0x30] ss:$8 sps:$4 sm:$0xff]   ;;  %v7873_v10 = vld [vmem:[#allocation26 + $0x74] ss:$8 sps:$4 sm:$0xff]  }
 0x828   :  { %5490 = vmatprep.subr.bf16.mxu0 %v7495_v62  ;;  %v7895_v62 = vld [vmem:[#allocation29 + $0x30] ss:$8 sps:$4 sm:$0xff]  }
 0x829   :  { %v7919_v18 = vld [vmem:[#allocation29 + $0x70] ss:$8 sps:$4 sm:$0xff]  }
 0x82a   :  { %5450 = vmatpush1.bf16.msra.mxu1 %v7366_v12  ;;  %v7909_v12 = vld [vmem:[#allocation29 + $0x54] ss:$8 sps:$4 sm:$0xff]  }
 0x82b   :  { %5491 = vmatpush1.bf16.msra.mxu0 %v7494_v40  ;;  %5451 = vmatprep.subr.bf16.mxu1 %v7375_v2  ;;  %v7865_v40 = vld [vmem:[#allocation26 + $0x50] ss:$8 sps:$4 sm:$0xff]   ;;  %v7870_v2 = vld [vmem:[#allocation26 + $0x64] ss:$8 sps:$4 sm:$0xff]  }
 0x82c   :  { %5492 = vmatprep.subr.bf16.mxu0 %v7503_v13 }
 0x82e   :  { %5452 = vmatpush1.bf16.msra.mxu1 %v7374_v51  ;;  %v7915_v51 = vld [vmem:[#allocation29 + $0x64] ss:$8 sps:$4 sm:$0xff]  }
 0x82f   :  { %5493 = vmatpush1.bf16.msra.mxu0 %v7502_v53  ;;  %5453 = vmatprep.subr.bf16.mxu1 %v7383_v54 }
 0x830   :  { %5494 = vmatprep.subr.bf16.mxu0 %v7511_v21 }
 0x832   :  { %5454 = vmatpush1.bf16.msra.mxu1 %v7382_v27 }
 0x833   :  { %5495 = vmatpush1.bf16.msra.mxu0 %v7510_v14  ;;  %5455 = vmatprep.subr.bf16.mxu1 %v7391_v15  ;;  %v7921_v15 = vld [vmem:[#allocation29 + $0x74] ss:$8 sps:$4 sm:$0xff]  }
 0x834   :  { %5496 = vmatprep.subr.bf16.mxu0 %v7519_v16  ;;  %v7871_v16 = vld [vmem:[#allocation26 + $0x70] ss:$8 sps:$4 sm:$0xff]  }
 0x836   :  { %5456 = vmatpush1.bf16.msra.mxu1 %v7390_v23  ;;  %v7927_v23 = vld [vmem:[#allocation29 + $0x84] ss:$8 sps:$4 sm:$0xff]  }
 0x837   :  { %5497 = vmatpush1.bf16.msra.mxu0 %v7518_v19  ;;  %5965 = vmatprep.subr.bf16.mxu1 %v7852_v20  ;;  %v7874_v19 = vld [vmem:[#allocation26 + $0x80] ss:$8 sps:$4 sm:$0xff]   ;;  %v7882_v20 = vld [vmem:[#allocation26 + $0x94] ss:$8 sps:$4 sm:$0xff]  }
 0x838   :  { %6449 = vmatprep.subr.bf16.mxu0 %v7879_v0  ;;  %v7925_v0 = vld [vmem:[#allocation29 + $0x80] ss:$8 sps:$4 sm:$0xff]  }
 0x839   :  { %5458 = vmatmul.mubr.bf16.vlgmr.msra.gmra.mrb[60].mxu1 %v9185_v44  ;;  %v7897_v44 = vld [vmem:[#allocation29 + $0x34] ss:$8 sps:$4 sm:$0xff]  }
 0x83a   :  { %5499 = vmatmul.mubr.bf16.vlgmr.msra.gmra.mrb[64].mxu0 %v9189_v48  ;;  %5966 = vmatpush1.bf16.msra.mxu1 %v7850_v59  ;;  %v7864_v48 = vld [vmem:[#allocation26 + $0x44] ss:$8 sps:$4 sm:$0xff]   ;;  %v7880_v59 = vld [vmem:[#allocation26 + $0x90] ss:$8 sps:$4 sm:$0xff]  }
 0x83b   :  { %5997 = vmatprep.mubr.bf16.mxu1 %v5566_v26  ;;  %5967 = vmatprep.subr.bf16.mxu1 %v7855_v24  ;;  %v7888_v24 = vld [vmem:[#allocation26 + $0xa4] ss:$8 sps:$4 sm:$0xff]  }
 0x83c   :  { %6450 = vmatpush1.bf16.msra.mxu0 %v7877_v25  ;;  %v7931_v25 = vld [vmem:[#allocation29 + $0x90] ss:$8 sps:$4 sm:$0xff]   ;;  %v7939_v26 = vld [vmem:[#allocation29 + $0xa4] ss:$8 sps:$4 sm:$0xff]  }
 0x83d   :  { %6451 = vmatprep.subr.bf16.mxu0 %v7885_v6  ;;  %v7886_v6 = vld [vmem:[#allocation26 + $0xa0] ss:$8 sps:$4 sm:$0xff]  }
 0x83e   :  { %5968 = vmatpush1.bf16.msra.mxu1 %v7853_v35  ;;  %v7894_v35 = vld [vmem:[#allocation26 + $0xb4] ss:$8 sps:$4 sm:$0xff]  }
 0x83f   :  { %5969 = vmatprep.subr.bf16.mxu1 %v7858_v3  ;;  %v7937_v3 = vld [vmem:[#allocation29 + $0xa0] ss:$8 sps:$4 sm:$0xff]  }
 0x840   :  { %6452 = vmatpush1.bf16.msra.mxu0 %v7883_v29  ;;  %v7945_v29 = vld [vmem:[#allocation29 + $0xb4] ss:$8 sps:$4 sm:$0xff]  }
 0x841   :  { %6453 = vmatprep.subr.bf16.mxu0 %v7891_v31  ;;  %v7892_v31 = vld [vmem:[#allocation26 + $0xb0] ss:$8 sps:$4 sm:$0xff]  }
 0x842   :  { %5970 = vmatpush1.bf16.msra.mxu1 %v7856_v32  ;;  %v7900_v32 = vld [vmem:[#allocation26 + $0xc4] ss:$8 sps:$4 sm:$0xff]  }
 0x843   :  { %5971 = vmatprep.subr.bf16.mxu1 %v7861_v17  ;;  %v7943_v17 = vld [vmem:[#allocation29 + $0xb0] ss:$8 sps:$4 sm:$0xff]  }
 0x844   :  { %6454 = vmatpush1.bf16.msra.mxu0 %v7889_v28  ;;  %v7951_v28 = vld [vmem:[#allocation29 + $0xc4] ss:$8 sps:$4 sm:$0xff]  }
 0x845   :  { %6455 = vmatprep.subr.bf16.mxu0 %v7897_v44  ;;  %v7898_v44 = vld [vmem:[#allocation26 + $0xc0] ss:$8 sps:$4 sm:$0xff]  }
 0x846   :  { %5972 = vmatpush1.bf16.msra.mxu1 %v7859_v5  ;;  %v7906_v5 = vld [vmem:[#allocation26 + $0xd4] ss:$8 sps:$4 sm:$0xff]  }
 0x847   :  { %5973 = vmatprep.subr.bf16.mxu1 %v7864_v48  ;;  %v7949_v48 = vld [vmem:[#allocation29 + $0xc0] ss:$8 sps:$4 sm:$0xff]  }
 0x848   :  { %6456 = vmatpush1.bf16.msra.mxu0 %v7895_v62  ;;  %v7957_v62 = vld [vmem:[#allocation29 + $0xd4] ss:$8 sps:$4 sm:$0xff]  }
 0x849   :  { %6457 = vmatprep.subr.bf16.mxu0 %v7903_v37  ;;  %v7904_v37 = vld [vmem:[#allocation26 + $0xd0] ss:$8 sps:$4 sm:$0xff]  }
 0x84a   :  { %5974 = vmatpush1.bf16.msra.mxu1 %v7862_v11  ;;  %v5512_v11 = vrot.slane %v9255_v4, %v9077_v57 }
 0x84b   :  { %5975 = vmatprep.subr.bf16.mxu1 %v7867_v63  ;;  %v7912_v63 = vld [vmem:[#allocation26 + $0xe4] ss:$8 sps:$4 sm:$0xff]  }
 0x84c   :  { %v5213_v13 = vpop.f32.mrb[48].mxu1  ;;  %6458 = vmatpush1.bf16.msra.mxu0 %v7901_v8  ;;  %v5524_v8 = vrot.slane %v9255_v4, %v595_v61  ;;  %v7924_v61 = vld [vmem:[#allocation26 + $0x104] ss:$8 sps:$4 sm:$0xff]  }
 0x84d   :  { %v5214_v46 = vadd.f32 %v5213_v13, %v9207_v34  ;;  %v5254_v49 = vpop.f32.mrb[52].mxu0  ;;  %v5215_v50 = vpop.f32.mrb[49].mxu1  ;;  %6459 = vmatprep.subr.bf16.mxu0 %v7909_v12  ;;  %v7913_v34 = vld [vmem:[#allocation29 + $0x60] ss:$8 sps:$4 sm:$0xff]   ;;  %v7955_v12 = vld [vmem:[#allocation29 + $0xd0] ss:$8 sps:$4 sm:$0xff]   ;;  %v5549_v13 = vadd.f32 %v5512_v11, %v9231_v52 }
 0x84e   :  { %v5216_v53 = vadd.f32 %v5215_v50, %v9211_v45  ;;  %v5256_v54 = vpop.f32.mrb[53].mxu0  ;;  %v5217_v21 = vpop.f32.mrb[50].mxu1  ;;  %5976 = vmatpush1.bf16.msra.mxu1 %v7865_v40  ;;  %v7876_v45 = vld [vmem:[#allocation26 + $0x84] ss:$8 sps:$4 sm:$0xff]   ;;  %v7969_v50 = vld [vmem:[#allocation29 + $0xf4] ss:$8 sps:$4 sm:$0xff]  }
 0x84f   :  { %v9264_v9 = vadd.f32 %v5254_v49, %v5214_v46  ;;  %v5258_v22 = vpop.f32.mrb[54].mxu0  ;;  %v5218_v7 = vpop.f32.mrb[51].mxu1  ;;  %5977 = vmatprep.subr.bf16.mxu1 %v7870_v2  ;;  %v7963_v40 = vld [vmem:[#allocation29 + $0xe4] ss:$8 sps:$4 sm:$0xff]   ;;  %v5552_v46 = vadd.f32 %v5524_v8, %v9253_v39  ;;  %v7961_v49 = vld [vmem:[#allocation29 + $0xe0] ss:$8 sps:$4 sm:$0xff]  }
 0x850   :  { %v9266_v27 = vadd.f32 %v5256_v54, %v5216_v53  ;;  %v5259_v14 = vpop.f32.mrb[55].mxu0  ;;  %6460 = vmatpush1.bf16.msra.mxu0 %v7907_v41  ;;  %v7910_v2 = vld [vmem:[#allocation26 + $0xe0] ss:$8 sps:$4 sm:$0xff]   ;;  %v7918_v41 = vld [vmem:[#allocation26 + $0xf4] ss:$8 sps:$4 sm:$0xff]   ;;  %v5557_v53 = vmax.f32 %v5549_v13, 0.0 }
 0x851   :  { %6461 = vmatprep.subr.bf16.mxu0 %v7915_v51  ;;  %v7916_v51 = vld [vmem:[#allocation26 + $0xf0] ss:$8 sps:$4 sm:$0xff]   ;;  %v5560_v54 = vmax.f32 %v5552_v46, 0.0  ;;  %v7922_v52 = vld [vmem:[#allocation26 + $0x100] ss:$8 sps:$4 sm:$0xff]  }
 0x852   :  { %5978 = vmatpush1.bf16.msra.mxu1 %v7868_v55  ;;  %v7967_v21 = vld [vmem:[#allocation29 + $0xf0] ss:$8 sps:$4 sm:$0xff]   ;;  %v7996_v55 = vld [vmem:[#allocation29 + $0x104] ss:$8 sps:$4 sm:$0xff]   ;;  %v5565_v22 = vpack.c.bf16 %v5557_v53, %v5557_v53  ;;  %v8005_v53 = vld [vmem:[#allocation29 + $0x134] ss:$8 sps:$4 sm:$0xff]  }
 0x853   :  { %5979 = vmatprep.subr.bf16.mxu1 %v7873_v10  ;;  %v7930_v7 = vld [vmem:[#allocation26 + $0x114] ss:$8 sps:$4 sm:$0xff]   ;;  %v5568_v39 = vpack.c.bf16 %v5560_v54, %v5560_v54  ;;  %v7928_v10 = vld [vmem:[#allocation26 + $0x110] ss:$8 sps:$4 sm:$0xff]   ;;  %v7936_v14 = vld [vmem:[#allocation26 + $0x124] ss:$8 sps:$4 sm:$0xff]  }
 0x854   :  { %6462 = vmatpush1.bf16.msra.mxu0 %v7913_v34  ;;  %v7934_v34 = vld [vmem:[#allocation26 + $0x120] ss:$8 sps:$4 sm:$0xff]   ;;  %v7997_v13 = vld [vmem:[#allocation29 + $0x110] ss:$8 sps:$4 sm:$0xff]  }
 0x855   :  { %6463 = vmatprep.subr.bf16.mxu0 %v7921_v15  ;;  %v7942_v15 = vld [vmem:[#allocation26 + $0x134] ss:$8 sps:$4 sm:$0xff]   ;;  %v8002_v46 = vld [vmem:[#allocation29 + $0x124] ss:$8 sps:$4 sm:$0xff]  }
 0x856   :  { %5980 = vmatpush1.bf16.msra.mxu1 %v7871_v16  ;;  %v7940_v16 = vld [vmem:[#allocation26 + $0x130] ss:$8 sps:$4 sm:$0xff]  }
 0x857   :  { %5981 = vmatprep.subr.bf16.mxu1 %v7876_v45  ;;  %v7948_v45 = vld [vmem:[#allocation26 + $0x144] ss:$8 sps:$4 sm:$0xff]   ;;  %v8003_v54 = vld [vmem:[#allocation29 + $0x130] ss:$8 sps:$4 sm:$0xff]  }
 0x858   :  { %6464 = vmatpush1.bf16.msra.mxu0 %v7919_v18  ;;  %v7946_v18 = vld [vmem:[#allocation26 + $0x140] ss:$8 sps:$4 sm:$0xff]  }
 0x859   :  { %6465 = vmatprep.subr.bf16.mxu0 %v7927_v23  ;;  %v7954_v23 = vld [vmem:[#allocation26 + $0x154] ss:$8 sps:$4 sm:$0xff]  }
 0x85a   :  { %5982 = vmatpush1.bf16.msra.mxu1 %v7874_v19  ;;  %v7952_v19 = vld [vmem:[#allocation26 + $0x150] ss:$8 sps:$4 sm:$0xff]  }
 0x85b   :  { %5983 = vmatprep.subr.bf16.mxu1 %v7882_v20  ;;  %v7960_v20 = vld [vmem:[#allocation26 + $0x164] ss:$8 sps:$4 sm:$0xff]  }
 0x85c   :  { %6466 = vmatpush1.bf16.msra.mxu0 %v7925_v0 }
 0x85d   :  { %6467 = vmatprep.subr.bf16.mxu0 %v7933_v1 }
 0x85e   :  { %5984 = vmatpush1.bf16.msra.mxu1 %v7880_v59 }
 0x85f   :  { %5985 = vmatprep.subr.bf16.mxu1 %v7888_v24  ;;  %v5528_v24 = vrot.slane %v9255_v4, %v599_v30 }
 0x860   :  { %6468 = vmatpush1.bf16.msra.mxu0 %v7931_v25 }
 0x861   :  { %6469 = vmatprep.subr.bf16.mxu0 %v7939_v26 }
 0x862   :  { %5986 = vmatpush1.bf16.msra.mxu1 %v7886_v6 }
 0x863   :  { %5987 = vmatprep.subr.bf16.mxu1 %v7894_v35  ;;  %v5532_v35 = vrot.slane %v9255_v4, %v603_v43  ;;  %v7970_v43 = vld [vmem:[#allocation26 + $0x180] ss:$8 sps:$4 sm:$0xff]  }
 0x864   :  { %6470 = vmatpush1.bf16.msra.mxu0 %v7937_v3 }
 0x865   :  { %6471 = vmatprep.subr.bf16.mxu0 %v7945_v29  ;;  %v7958_v29 = vld [vmem:[#allocation26 + $0x160] ss:$8 sps:$4 sm:$0xff]  }
 0x866   :  { %5988 = vmatpush1.bf16.msra.mxu1 %v7892_v31 }
 0x867   :  { %5989 = vmatprep.subr.bf16.mxu1 %v7900_v32 }
 0x868   :  { %6472 = vmatpush1.bf16.msra.mxu0 %v7943_v17 }
 0x869   :  { %6473 = vmatprep.subr.bf16.mxu0 %v7951_v28 }
 0x86a   :  { %5990 = vmatpush1.bf16.msra.mxu1 %v7898_v44 }
 0x86b   :  { %5991 = vmatprep.subr.bf16.mxu1 %v7906_v5 }
 0x86c   :  { %6474 = vmatpush1.bf16.msra.mxu0 %v7949_v48  ;;  %v7964_v48 = vld [vmem:[#allocation26 + $0x170] ss:$8 sps:$4 sm:$0xff]  }
 0x86d   :  { %6475 = vmatprep.subr.bf16.mxu0 %v7957_v62  ;;  %v7972_v62 = vld [vmem:[#allocation26 + $0x184] ss:$8 sps:$4 sm:$0xff]  }
 0x86e   :  { %5992 = vmatpush1.bf16.msra.mxu1 %v7904_v37 }
 0x86f   :  { %5993 = vmatprep.subr.bf16.mxu1 %v7912_v63  ;;  %v7994_v63 = vld [vmem:[#allocation29 + $0x100] ss:$8 sps:$4 sm:$0xff]  }
 0x870   :  { %6476 = vmatpush1.bf16.msra.mxu0 %v7955_v12  ;;  %v7975_v12 = vld [vmem:[#allocation26 + $0x194] ss:$8 sps:$4 sm:$0xff]  }
 0x871   :  { %6477 = vmatprep.subr.bf16.mxu0 %v7963_v40  ;;  %v7999_v40 = vld [vmem:[#allocation29 + $0x114] ss:$8 sps:$4 sm:$0xff]  }
 0x872   :  { %5994 = vmatpush1.bf16.msra.mxu1 %v7910_v2  ;;  %v7973_v2 = vld [vmem:[#allocation26 + $0x190] ss:$8 sps:$4 sm:$0xff]  }
 0x873   :  { %5995 = vmatprep.subr.bf16.mxu1 %v7918_v41  ;;  %v7978_v41 = vld [vmem:[#allocation26 + $0x1a4] ss:$8 sps:$4 sm:$0xff]  }
 0x874   :  { %6478 = vmatpush1.bf16.msra.mxu0 %v7961_v49  ;;  %v7976_v49 = vld [vmem:[#allocation26 + $0x1a0] ss:$8 sps:$4 sm:$0xff]  }
 0x875   :  { %6479 = vmatprep.subr.bf16.mxu0 %v7969_v50  ;;  %v8000_v50 = vld [vmem:[#allocation29 + $0x120] ss:$8 sps:$4 sm:$0xff]  }
 0x876   :  { %5996 = vmatpush1.bf16.msra.mxu1 %v7916_v51  ;;  %v7981_v51 = vld [vmem:[#allocation26 + $0x1b4] ss:$8 sps:$4 sm:$0xff]  }
 0x877   :  { %6006 = vmatprep.subr.bf16.mxu1 %v7924_v61  ;;  %v7979_v61 = vld [vmem:[#allocation26 + $0x1b0] ss:$8 sps:$4 sm:$0xff]  }
 0x878   :  { %6480 = vmatpush1.bf16.msra.mxu0 %v7967_v21  ;;  %v7984_v21 = vld [vmem:[#allocation26 + $0x1c4] ss:$8 sps:$4 sm:$0xff]  }
 0x879   :  { %5998 = vmatmul.mubr.bf16.vlgmr.msra.gmra.mrb[64].mxu1 %v5565_v22  ;;  %6490 = vmatprep.subr.bf16.mxu0 %v7996_v55  ;;  %v8008_v55 = vld [vmem:[#allocation29 + $0x144] ss:$8 sps:$4 sm:$0xff]   ;;  %v8006_v22 = vld [vmem:[#allocation29 + $0x140] ss:$8 sps:$4 sm:$0xff]  }
 0x87a   :  { %6007 = vmatpush1.bf16.msra.mxu1 %v7922_v52  ;;  %6038 = vmatprep.mubr.bf16.mxu1 %v5568_v39  ;;  %v7982_v52 = vld [vmem:[#allocation26 + $0x1c0] ss:$8 sps:$4 sm:$0xff]  }
 0x87b   :  { %6008 = vmatprep.subr.bf16.mxu1 %v7930_v7  ;;  %v7987_v7 = vld [vmem:[#allocation26 + $0x1d4] ss:$8 sps:$4 sm:$0xff]  }
 0x87c   :  { %v8011_v39 = vld [vmem:[#allocation29 + $0x154] ss:$8 sps:$4 sm:$0xff]  }
 0x87e   :  { %6009 = vmatpush1.bf16.msra.mxu1 %v7928_v10  ;;  %v7985_v10 = vld [vmem:[#allocation26 + $0x1d0] ss:$8 sps:$4 sm:$0xff]  }
 0x87f   :  { %6010 = vmatprep.subr.bf16.mxu1 %v7936_v14  ;;  %v8009_v14 = vld [vmem:[#allocation29 + $0x150] ss:$8 sps:$4 sm:$0xff]  }
 0x882   :  { %6011 = vmatpush1.bf16.msra.mxu1 %v7934_v34  ;;  %v5520_v34 = vrot.slane %v9255_v4, %v591_v58  ;;  %v8020_v58 = vld [vmem:[#allocation29 + $0x184] ss:$8 sps:$4 sm:$0xff]  }
 0x883   :  { %6012 = vmatprep.subr.bf16.mxu1 %v7942_v15  ;;  %v7990_v15 = vld [vmem:[#allocation26 + $0x1e4] ss:$8 sps:$4 sm:$0xff]  }
 0x886   :  { %6013 = vmatpush1.bf16.msra.mxu1 %v7940_v16  ;;  %v8014_v16 = vld [vmem:[#allocation29 + $0x164] ss:$8 sps:$4 sm:$0xff]  }
 0x887   :  { %6014 = vmatprep.subr.bf16.mxu1 %v7948_v45  ;;  %v7988_v45 = vld [vmem:[#allocation26 + $0x1e0] ss:$8 sps:$4 sm:$0xff]  }
 0x88a   :  { %6015 = vmatpush1.bf16.msra.mxu1 %v7946_v18  ;;  %v8012_v18 = vld [vmem:[#allocation29 + $0x160] ss:$8 sps:$4 sm:$0xff]  }
 0x88b   :  { %6016 = vmatprep.subr.bf16.mxu1 %v7954_v23  ;;  %v5551_v23 = vadd.f32 %v5520_v34, %v9251_v33  ;;  %v8023_v33 = vld [vmem:[#allocation29 + $0x194] ss:$8 sps:$4 sm:$0xff]  }
 0x88c   :  { %v5295_v0 = vpop.f32.mrb[52].mxu1 }
 0x88d   :  { %v5296_v1 = vadd.f32 %v5295_v0, %v9264_v9  ;;  %v5336_v59 = vpop.f32.mrb[56].mxu0  ;;  %v5297_v25 = vpop.f32.mrb[53].mxu1  ;;  %v7966_v9 = vld [vmem:[#allocation26 + $0x174] ss:$8 sps:$4 sm:$0xff]   ;;  %v7991_v0 = vld [vmem:[#allocation26 + $0x1f0] ss:$8 sps:$4 sm:$0xff]  }
 0x88e   :  { %v5298_v26 = vadd.f32 %v5297_v25, %v9266_v27  ;;  %v5338_v6 = vpop.f32.mrb[57].mxu0  ;;  %v5299_v3 = vpop.f32.mrb[54].mxu1  ;;  %6017 = vmatpush1.bf16.msra.mxu1 %v7952_v19  ;;  %v7993_v19 = vld [vmem:[#allocation26 + $0x1f4] ss:$8 sps:$4 sm:$0xff]   ;;  %v8018_v25 = vld [vmem:[#allocation29 + $0x180] ss:$8 sps:$4 sm:$0xff]  }
 0x88f   :  { %v5337_v31 = vadd.f32 %v5336_v59, %v5296_v1  ;;  %v5340_v32 = vpop.f32.mrb[58].mxu0  ;;  %v5300_v17 = vpop.f32.mrb[55].mxu1  ;;  %6018 = vmatprep.subr.bf16.mxu1 %v7960_v20  ;;  %v8017_v20 = vld [vmem:[#allocation29 + $0x174] ss:$8 sps:$4 sm:$0xff]   ;;  %v8015_v1 = vld [vmem:[#allocation29 + $0x170] ss:$8 sps:$4 sm:$0xff]  }
 0x890   :  { %v5339_v28 = vadd.f32 %v5338_v6, %v5298_v26  ;;  %v5341_v44 = vpop.f32.mrb[59].mxu0  ;;  %v5559_v59 = vmax.f32 %v5551_v23, 0.0  ;;  %v8043_v26 = vld [vmem:[#allocation32] sm:$0xff]   ;;  %v8021_v3 = vld [vmem:[#allocation29 + $0x190] ss:$8 sps:$4 sm:$0xff]  }
 0x891   :  { %v5553_v5 = vadd.f32 %v5528_v24, %v5337_v31  ;;  %v8042_v24 = vld [vmem:[#allocation32 + $0x40] sm:$0xff]   ;;  %v8046_v32 = vld [vmem:[#allocation32 + $0x50] sm:$0xff]   ;;  %v8048_v44 = vld [vmem:[#allocation32 + $0x58] sm:$0xff]  }
 0x892   :  { %v5554_v30 = vadd.f32 %v5532_v35, %v5339_v28  ;;  %6019 = vmatpush1.bf16.msra.mxu1 %v7958_v29  ;;  %v5567_v6 = vpack.c.bf16 %v5559_v59, %v5559_v59  ;;  %v8044_v35 = vld [vmem:[#allocation32 + $0x48] sm:$0xff]   ;;  %v8029_v28 = vld [vmem:[#allocation29 + $0x1b4] ss:$8 sps:$4 sm:$0xff]  }
 0x893   :  { %v5561_v27 = vmax.f32 %v5553_v5, 0.0  ;;  %6020 = vmatprep.subr.bf16.mxu1 %v7966_v9  ;;  %v8045_v29 = vld [vmem:[#allocation32 + $0x8] sm:$0xff]   ;;  %v8047_v9 = vld [vmem:[#allocation32 + $0x10] sm:$0xff]  }
 0x894   :  { %v5562_v37 = vmax.f32 %v5554_v30, 0.0  ;;  %v8026_v31 = vld [vmem:[#allocation29 + $0x1a4] ss:$8 sps:$4 sm:$0xff]   ;;  %v8024_v17 = vld [vmem:[#allocation29 + $0x1a0] ss:$8 sps:$4 sm:$0xff]  }
 0x895   :  { %v6049_v8 = vpack.c.bf16 %v5561_v27, %v5561_v27  ;;  %v8027_v5 = vld [vmem:[#allocation29 + $0x1b0] ss:$8 sps:$4 sm:$0xff]   ;;  %v8050_v27 = vld [vmem:[#allocation32 + $0x60] sm:$0xff]  }
 0x896   :  { %v6050_v11 = vpack.c.bf16 %v5562_v37, %v5562_v37  ;;  %6021 = vmatpush1.bf16.msra.mxu1 %v7964_v48  ;;  %v8049_v30 = vld [vmem:[#allocation32 + $0x18] sm:$0xff]   ;;  %v8032_v48 = vld [vmem:[#allocation29 + $0x1c4] ss:$8 sps:$4 sm:$0xff]  }
 0x897   :  { %6022 = vmatprep.subr.bf16.mxu1 %v7972_v62  ;;  %v8030_v62 = vld [vmem:[#allocation29 + $0x1c0] ss:$8 sps:$4 sm:$0xff]  }
 0x898   :  { %6481 = vmatprep.mubr.bf16.mxu0 %v6050_v11  ;;  %v8051_v37 = vld [vmem:[#allocation32 + $0x20] sm:$0xff]   ;;  %v8035_v11 = vld [vmem:[#allocation29 + $0x1d4] ss:$8 sps:$4 sm:$0xff]  }
 0x899   :  { %6482 = vmatmul.mubr.bf16.vlgmr.msra.gmra.mrb[68].mxu0 %v6049_v8  ;;  %v8053_v8 = vld [vmem:[#allocation32 + $0x28] sm:$0xff]  }
 0x89a   :  { %6023 = vmatpush1.bf16.msra.mxu1 %v7970_v43  ;;  %6491 = vmatpush1.bf16.msra.mxu0 %v7994_v63  ;;  %v8052_v43 = vld [vmem:[#allocation32 + $0x68] sm:$0xff]  }
 0x89b   :  { %6024 = vmatprep.subr.bf16.mxu1 %v7975_v12  ;;  %6492 = vmatprep.subr.bf16.mxu0 %v7999_v40  ;;  %v8033_v63 = vld [vmem:[#allocation29 + $0x1d0] ss:$8 sps:$4 sm:$0xff]   ;;  %v8038_v12 = vld [vmem:[#allocation29 + $0x1e4] ss:$8 sps:$4 sm:$0xff]  }
 0x89e   :  { %6025 = vmatpush1.bf16.msra.mxu1 %v7973_v2  ;;  %6493 = vmatpush1.bf16.msra.mxu0 %v7997_v13 }
 0x89f   :  { %6026 = vmatprep.subr.bf16.mxu1 %v7978_v41  ;;  %6494 = vmatprep.subr.bf16.mxu0 %v8002_v46 }
 0x8a2   :  { %6027 = vmatpush1.bf16.msra.mxu1 %v7976_v49  ;;  %6495 = vmatpush1.bf16.msra.mxu0 %v8000_v50 }
 0x8a3   :  { %6028 = vmatprep.subr.bf16.mxu1 %v7981_v51  ;;  %6496 = vmatprep.subr.bf16.mxu0 %v8005_v53  ;;  %v8036_v51 = vld [vmem:[#allocation29 + $0x1e0] ss:$8 sps:$4 sm:$0xff]  }
 0x8a6   :  { %6029 = vmatpush1.bf16.msra.mxu1 %v7979_v61  ;;  %6497 = vmatpush1.bf16.msra.mxu0 %v8003_v54 }
 0x8a7   :  { %6030 = vmatprep.subr.bf16.mxu1 %v7984_v21  ;;  %6498 = vmatprep.subr.bf16.mxu0 %v8008_v55  ;;  %v8041_v21 = vld [vmem:[#allocation29 + $0x1f4] ss:$8 sps:$4 sm:$0xff]  }
 0x8aa   :  { %6031 = vmatpush1.bf16.msra.mxu1 %v7982_v52  ;;  %6499 = vmatpush1.bf16.msra.mxu0 %v8006_v22  ;;  %v8039_v22 = vld [vmem:[#allocation29 + $0x1f0] ss:$8 sps:$4 sm:$0xff]  }
 0x8ab   :  { %6032 = vmatprep.subr.bf16.mxu1 %v7987_v7  ;;  %6500 = vmatprep.subr.bf16.mxu0 %v8011_v39 }
 0x8ae   :  { %6033 = vmatpush1.bf16.msra.mxu1 %v7985_v10  ;;  %6501 = vmatpush1.bf16.msra.mxu0 %v8009_v14  ;;  %v8054_v14 = vld [vmem:[#allocation32 + $0x70] sm:$0xff]  }
 0x8af   :  { %6034 = vmatprep.subr.bf16.mxu1 %v7990_v15  ;;  %6502 = vmatprep.subr.bf16.mxu0 %v8014_v16  ;;  %v5540_v16 = vrot.slane %v9255_v4, %v611_v47  ;;  %v8059_v47 = vld [vmem:[#allocation32 + $0x80] sm:$0xff]  }
 0x8b2   :  { %6035 = vmatpush1.bf16.msra.mxu1 %v7988_v45  ;;  %6503 = vmatpush1.bf16.msra.mxu0 %v8012_v18  ;;  %v8055_v18 = vld [vmem:[#allocation32 + $0x30] sm:$0xff]  }
 0x8b3   :  { %6036 = vmatprep.subr.bf16.mxu1 %v7993_v19  ;;  %6504 = vmatprep.subr.bf16.mxu0 %v8017_v20 }
 0x8b6   :  { %6037 = vmatpush1.bf16.msra.mxu1 %v7991_v0  ;;  %6505 = vmatpush1.bf16.msra.mxu0 %v8015_v1 }
 0x8b7   :  { %6506 = vmatprep.subr.bf16.mxu0 %v8020_v58  ;;  %7702 = vmatprep.subr.bf16.mxu1 %v8042_v24  ;;  %v8056_v58 = vld [vmem:[#allocation32 + $0x78] sm:$0xff]  }
 0x8b8   :  { %v8057_v24 = vld [vmem:[#allocation32 + $0x38] sm:$0xff]  }
 0x8b9   :  { %6039 = vmatmul.mubr.bf16.vlgmr.msra.gmra.mrb[64].mxu1 %v5567_v6 }
 0x8ba   :  { %6507 = vmatpush1.bf16.msra.mxu0 %v8018_v25  ;;  %7703 = vmatpush3.bf16.msra.mxu1 %v8043_v26 }
 0x8bb   :  { %6508 = vmatprep.subr.bf16.mxu0 %v8023_v33  ;;  %7704 = vmatprep.subr.bf16.mxu1 %v8044_v35  ;;  %v8060_v33 = vld [vmem:[#allocation32 + $0xc8] sm:$0xff]  }
 0x8bc   :  { %v8061_v35 = vld [vmem:[#allocation32 + $0x88] sm:$0xff]  }
 0x8be   :  { %6509 = vmatpush1.bf16.msra.mxu0 %v8021_v3  ;;  %7705 = vmatpush3.bf16.msra.mxu1 %v8045_v29  ;;  %v8062_v3 = vld [vmem:[#allocation32 + $0xd0] sm:$0xff]  }
 0x8bf   :  { %6510 = vmatprep.subr.bf16.mxu0 %v8026_v31  ;;  %7706 = vmatprep.subr.bf16.mxu1 %v8046_v32  ;;  %v8063_v29 = vld [vmem:[#allocation32 + $0x90] sm:$0xff]   ;;  %v8064_v31 = vld [vmem:[#allocation32 + $0xd8] sm:$0xff]  }
 0x8c0   :  { %v8065_v32 = vld [vmem:[#allocation32 + $0x98] sm:$0xff]  }
 0x8c2   :  { %6511 = vmatpush1.bf16.msra.mxu0 %v8024_v17  ;;  %7707 = vmatpush3.bf16.msra.mxu1 %v8047_v9  ;;  %v8066_v17 = vld [vmem:[#allocation32 + $0xe0] sm:$0xff]  }
 0x8c3   :  { %6512 = vmatprep.subr.bf16.mxu0 %v8029_v28  ;;  %7708 = vmatprep.subr.bf16.mxu1 %v8048_v44  ;;  %v8067_v9 = vld [vmem:[#allocation32 + $0xa0] sm:$0xff]   ;;  %v8068_v28 = vld [vmem:[#allocation32 + $0xe8] sm:$0xff]  }
 0x8c4   :  { %v8069_v44 = vld [vmem:[#allocation32 + $0xa8] sm:$0xff]  }
 0x8c6   :  { %6513 = vmatpush1.bf16.msra.mxu0 %v8027_v5  ;;  %7709 = vmatpush3.bf16.msra.mxu1 %v8049_v30  ;;  %v8070_v5 = vld [vmem:[#allocation32 + $0xf0] sm:$0xff]  }
 0x8c7   :  { %6514 = vmatprep.subr.bf16.mxu0 %v8032_v48  ;;  %7710 = vmatprep.subr.bf16.mxu1 %v8050_v27  ;;  %v8071_v30 = vld [vmem:[#allocation32 + $0xb0] sm:$0xff]   ;;  %v8072_v48 = vld [vmem:[#allocation32 + $0xf8] sm:$0xff]  }
 0x8c8   :  { %v8073_v27 = vld [vmem:[#allocation32 + $0xb8] sm:$0xff]  }
 0x8ca   :  { %6515 = vmatpush1.bf16.msra.mxu0 %v8030_v62  ;;  %7711 = vmatpush3.bf16.msra.mxu1 %v8051_v37  ;;  %v5633_v62 = vld [vmem:[#allocation28] sm:$0x3] }
 0x8cb   :  { %6516 = vmatprep.subr.bf16.mxu0 %v8035_v11  ;;  %7712 = vmatprep.subr.bf16.mxu1 %v8052_v43  ;;  %v5638_v37 = vrot.slane %v5633_v62, %v9077_v57  ;;  %v5642_v11 = vrot.slane %v5633_v62, %v9083_v60 }
 0x8cc   :  { %v5377_v40 = vpop.f32.mrb[56].mxu1 }
 0x8cd   :  { %v5378_v2 = vadd.f32 %v5377_v40, %v9209_v36  ;;  %v5418_v13 = vpop.f32.mrb[60].mxu0  ;;  %v5379_v41 = vpop.f32.mrb[57].mxu1 }
 0x8ce   :  { %v5380_v46 = vadd.f32 %v5379_v41, %v9213_v38  ;;  %v5420_v49 = vpop.f32.mrb[61].mxu0  ;;  %v5381_v50 = vpop.f32.mrb[58].mxu1  ;;  %6517 = vmatpush1.bf16.msra.mxu0 %v8033_v63  ;;  %7713 = vmatpush3.bf16.msra.mxu1 %v8053_v8  ;;  %v5536_v38 = vrot.slane %v9255_v4, %v607_v42 }
 0x8cf   :  { %v5419_v53 = vadd.f32 %v5418_v13, %v5378_v2  ;;  %v5422_v61 = vpop.f32.mrb[62].mxu0  ;;  %v5382_v54 = vpop.f32.mrb[59].mxu1  ;;  %6518 = vmatprep.subr.bf16.mxu0 %v8038_v12  ;;  %7714 = vmatprep.subr.bf16.mxu1 %v8054_v14  ;;  %v6117_v50 = vld [vmem:[#allocation31] sm:$0x3] }
 0x8d0   :  { %v5421_v55 = vadd.f32 %v5420_v49, %v5380_v46  ;;  %v5423_v52 = vpop.f32.mrb[63].mxu0 }
 0x8d2   :  { %6519 = vmatpush1.bf16.msra.mxu0 %v8036_v51  ;;  %7715 = vmatpush3.bf16.msra.mxu1 %v8055_v18  ;;  %v6122_v51 = vrot.slane %v6117_v50, %v9077_v57  ;;  %v7648_v57 = vld [vmem:[#allocation34] ss:$0 sm:$0xff] }
 0x8d3   :  { %6520 = vmatprep.subr.bf16.mxu0 %v8041_v21  ;;  %7716 = vmatprep.subr.bf16.mxu1 %v8056_v58 }
 0x8d6   :  { %6521 = vmatpush1.bf16.msra.mxu0 %v8039_v22  ;;  %7717 = vmatpush3.bf16.msra.mxu1 %v8057_v24 }
 0x8d7   :  { %7724 = vmatprep.subr.bf16.mxu0 %v8058_v56 }
 0x90c   :  { %v5459_v36 = vpop.f32.mrb[60].mxu1 }
 0x90d   :  { %v5460_v7 = vadd.f32 %v5459_v36, %v5419_v53  ;;  %v5500_v39 = vpop.f32.mrb[64].mxu0  ;;  %v5461_v10 = vpop.f32.mrb[61].mxu1  ;;  %v6126_v53 = vrot.slane %v6117_v50, %v9083_v60 }
 0x90e   :  { %v5462_v34 = vadd.f32 %v5461_v10, %v5421_v55  ;;  %v5502_v15 = vpop.f32.mrb[65].mxu0  ;;  %v5463_v45 = vpop.f32.mrb[62].mxu1 }
 0x90f   :  { %v5501_v23 = vadd.f32 %v5500_v39, %v5460_v7  ;;  %v5504_v19 = vpop.f32.mrb[66].mxu0  ;;  %v5464_v20 = vpop.f32.mrb[63].mxu1 }
 0x910   :  { %v5503_v0 = vadd.f32 %v5502_v15, %v5462_v34  ;;  %v5505_v1 = vpop.f32.mrb[67].mxu0 }
 0x911   :  { %v5555_v59 = vadd.f32 %v5536_v38, %v5501_v23 }
 0x912   :  { %v5556_v42 = vadd.f32 %v5540_v16, %v5503_v0 }
 0x913   :  { %v5563_v25 = vmax.f32 %v5555_v59, 0.0 }
 0x914   :  { %v5564_v26 = vmax.f32 %v5556_v42, 0.0 }
 0x915   :  { %v6051_v4 = vpack.c.bf16 %v5563_v25, %v5563_v25 }
 0x916   :  { %v6052_v6 = vpack.c.bf16 %v5564_v26, %v5564_v26 }
 0x918   :  { %6522 = vmatprep.mubr.bf16.mxu0 %v6052_v6 }
 0x919   :  { %6523 = vmatmul.mubr.bf16.vlgmr.msra.gmra.mrb[68].mxu0 %v6051_v4 }
 0x91a   :  { %7725 = vmatpush3.bf16.msra.mxu0 %v8059_v47 }
 0x91b   :  { %7726 = vmatprep.subr.bf16.mxu0 %v8060_v33 }
 0x91e   :  { %7727 = vmatpush3.bf16.msra.mxu0 %v8061_v35 }
 0x91f   :  { %7728 = vmatprep.subr.bf16.mxu0 %v8062_v3 }
 0x922   :  { %7729 = vmatpush3.bf16.msra.mxu0 %v8063_v29 }
 0x923   :  { %7730 = vmatprep.subr.bf16.mxu0 %v8064_v31 }
 0x926   :  { %7731 = vmatpush3.bf16.msra.mxu0 %v8065_v32 }
 0x927   :  { %7732 = vmatprep.subr.bf16.mxu0 %v8066_v17 }
 0x92a   :  { %7733 = vmatpush3.bf16.msra.mxu0 %v8067_v9 }
 0x92b   :  { %7734 = vmatprep.subr.bf16.mxu0 %v8068_v28 }
 0x92e   :  { %7735 = vmatpush3.bf16.msra.mxu0 %v8069_v44 }
 0x92f   :  { %7736 = vmatprep.subr.bf16.mxu0 %v8070_v5 }
 0x932   :  { %7737 = vmatpush3.bf16.msra.mxu0 %v8071_v30 }
 0x933   :  { %7738 = vmatprep.subr.bf16.mxu0 %v8072_v48 }
 0x936   :  { %7739 = vmatpush3.bf16.msra.mxu0 %v8073_v27 }
 0x98c   :  { %v6040_v43 = vpop.f32.mrb[64].mxu1 }
 0x98d   :  { %v7794_v63 = vadd.f32 %v6040_v43, %v5638_v37  ;;  %v6042_v8 = vpop.f32.mrb[65].mxu1 }
 0x98e   :  { %v7795_v12 = vadd.f32 %v6042_v8, %v5642_v11  ;;  %v6044_v40 = vpop.f32.mrb[66].mxu1 }
 0x98f   :  { %v6047_v2 = vmax.f32 %v7794_v63, 0.0  ;;  %v6045_v13 = vpop.f32.mrb[67].mxu1 }
 0x990   :  { %v6048_v41 = vmax.f32 %v7795_v12, 0.0 }
 0x991   :  { %v6533_v49 = vpack.c.bf16 %v6047_v2, %v6047_v2 }
 0x992   :  { %v6534_v46 = vpack.c.bf16 %v6048_v41, %v6048_v41 }
 0x994   :  { %6832 = vmatprep.mubr.bf16.mxu1 %v6534_v46 }
 0x995   :  { %6833 = vmatmul.mubr.bf16.vlgmr.msra.gmra.mrb[68].mxu1 %v6533_v49 }
 0x9ec   :  { %v6524_v61 = vpop.f32.mrb[68].mxu0 }
 0x9ed   :  { %v7796_v54 = vadd.f32 %v6524_v61, %v6122_v51  ;;  %v6526_v21 = vpop.f32.mrb[69].mxu0 }
 0x9ee   :  { %v7797_v55 = vadd.f32 %v6526_v21, %v6126_v53  ;;  %v6528_v52 = vpop.f32.mrb[70].mxu0 }
 0x9ef   :  { %v6531_v22 = vmax.f32 %v7796_v54, 0.0  ;;  %v6529_v36 = vpop.f32.mrb[71].mxu0 }
 0x9f0   :  { %v6532_v7 = vmax.f32 %v7797_v55, 0.0 }
 0x9f1   :  { %v6535_v38 = vpack.c.bf16 %v6531_v22, %v6531_v22 }
 0x9f2   :  { %v6536_v39 = vpack.c.bf16 %v6532_v7, %v6532_v7 }
 0x9f4   :  { %6872 = vmatprep.mubr.bf16.mxu0 %v6536_v39 }
 0x9f5   :  { %6873 = vmatmul.mubr.bf16.vlgmr.msra.gmra.mrb[72].mxu0 %v6535_v38 }
 0xa68   :  { %v7718_v10 = vpop.f32.mrb[68].mxu1 }
 0xa69   :  { %v7719_v14 = vpop.f32.mrb[69].mxu1 }
 0xa6a   :  { %v7720_v34 = vadd.f32 %v7719_v14, %v7718_v10  ;;  %v7721_v15 = vpop.f32.mrb[70].mxu1 }
 0xa6b   :  { %v7722_v16 = vpop.f32.mrb[71].mxu1 }
 0xa6c   :  { %v6835_v18 = vadd.f32 %v7720_v34, %v7648_v57 }
 0xac8   :  { %v7740_v45 = vpop.f32.mrb[72].mxu0 }
 0xac9   :  { %v7741_v60 = vpop.f32.mrb[73].mxu0 }
 0xaca   :  { %v7742_v23 = vadd.f32 %v7741_v60, %v7740_v45  ;;  %v7743_v19 = vpop.f32.mrb[74].mxu0 }
 0xacb   :  { %v7744_v20 = vpop.f32.mrb[75].mxu0 }
 0xacc   :  { %v6875_v0 = vadd.f32 %v7742_v23, %v6835_v18 }
 0xace   :  { %v6881_v1 = vmul.f32 0.2, %v6875_v0 }
 0xad0   :  { %6882 = vst [vmem:[#allocation35] sm:$0x3] %v6881_v1 }
 0xad1   :  { %8547 = shalt.err (!%p8544_p4)
}
 0xad2   :  { %s9370_s5 = sld [smem:[#allocation57_spill]] }
 0xad8   :  { %s8548_s9 = scalar_lea.hbm %s9370_s5, 32 }
 0xad9   :  { %p8549_p5 = scmp.ne.s32.totalorder %s9370_s5, %s8548_s9  ;;  %p8552_p6 = scmp.lt.u32.totalorder %s8548_s9, %s9370_s5 }
 0xadb   :  { %p8554_p7 = pnand %p8552_p6, %p8549_p5 }
 0xadd   :  { %8557 = shalt.err (!%p8554_p7)
}
 0xade   :  { %6892 = dma.vmem_to_hbm [thread:$0]  %s6890_s21, 32, %s9370_s5, [#allocation4]  }
 0xadf   :  { %8580 = dma.done.wait [#allocation4], 32  }
 0xae0   :  { %8581 = vsyncadd [#allocation4], 4294967264 }
 0xae1   :  { %6896 = vsyncpa [#allocation3], 1 }
 0xae2   :  { %6897 = vsyncpa [#allocation6], 1 }
 0xae3   :  { %6898 = vsyncpa [#allocation9], 1 }
 0xae4   :  { %6899 = vsyncpa [#allocation12], 1 }
 0xae5   :  { %6900 = vsyncpa [#allocation15], 1 }
 0xae6   :  { %6901 = vsyncpa [#allocation18], 1 }
 0xae7   :  { %6902 = vsyncpa [#allocation21], 1 }
 0xae8   :  { %6903 = vsyncpa [#allocation24], 1 }
 0xae9   :  { %6904 = vsyncpa [#allocation27], 1 }
 0xaea   :  { %6905 = vsyncpa [#allocation30], 1 }
 0xaeb   :  { %6906 = vsyncpa [#allocation33], 1 }
 0xaec   :  { %6907 = vsyncpa [#allocation4], 1 }

</bundles_post_ra>
